<compile_context>
chip_gen: v7x
topology: tpu7x:2x2x1
jax: 0.10.0
libtpu: 0.0.40
codegen_flags: <defaults>
</compile_context>

<pallas_src>
import functools

import jax
import jax.numpy as jnp
from jax import lax
from jax.experimental import pallas as pl
from jax.experimental.pallas import tpu as pltpu


def _vmem():
    return pl.BlockSpec(memory_space=pltpu.MemorySpace.VMEM)


_SQRT_2_OVER_PI = 0.7978845608028654


def _ln(x, g, b, eps):
    mu = jnp.mean(x, axis=-1, keepdims=True)
    xc = x - mu
    var = jnp.mean(xc * xc, axis=-1, keepdims=True)
    return xc * lax.rsqrt(var + eps) * g + b


def _gelu_tanh(x):  # tanh-approx GELU (EUP slot)
    return 0.5 * x * (1.0 + jnp.tanh(_SQRT_2_OVER_PI * (x + 0.044715 * x * x * x)))


def _bf16(x):
    return x.astype(jnp.bfloat16)


# ----------------------------------------------------------------------------
# Single fused Pallas kernel: embedding LN -> L encoder layers -> head
# ----------------------------------------------------------------------------
def _fused_forward_kernel(x_ref, mask_ref, embg_ref, embb_ref,
                          wqkv_ref, bqkv_ref, wo_ref, bo_ref,
                          ln1g_ref, ln1b_ref, wi_ref, bi_ref,
                          wo2_ref, bo2_ref, ln2g_ref, ln2b_ref,
                          fcw_ref, fcb_ref, ddw_ref, lblw_ref,
                          o_ref, *, B, S, nH, dh, L, eps):
    H = nH * dh

    # ---- embedding layernorm (f32 VPU math) ---------------------------------
    x = _ln(x_ref[...], embg_ref[...], embb_ref[...], eps)          # [B*S, H]

    addmask = mask_ref[...].reshape(B, 1, S)                        # [B, 1, S]
    scale = jnp.float32(1.0 / float(dh) ** 0.5)

    # ---- encoder layers (L static -> unrolled at trace time) ----------------
    for l in range(L):
        # Fused QKV projection: one [B*S, H] @ [H, 3H] bf16 matmul, f32 acc.
        qkv = jnp.dot(_bf16(x), wqkv_ref[l],
                      preferred_element_type=jnp.float32) + bqkv_ref[l]   # [B*S, 3H]

        # Attention: per head (dh=128 lane-aligned slice), batched over B.
        ctx_heads = []
        for h in range(nH):
            q = (qkv[:, h * dh:(h + 1) * dh] * scale).reshape(B, S, dh)
            k = qkv[:, H + h * dh:H + (h + 1) * dh].reshape(B, S, dh)
            v = qkv[:, 2 * H + h * dh:2 * H + (h + 1) * dh].reshape(B, S, dh)
            s = jnp.einsum("bqd,bkd->bqk", _bf16(q), _bf16(k),
                           preferred_element_type=jnp.float32)            # [B, S, S]
            s = s + addmask
            s = s - jnp.max(s, axis=-1, keepdims=True)
            p = jnp.exp(s)
            p = p / jnp.sum(p, axis=-1, keepdims=True)                    # exact softmax
            c = jnp.einsum("bqk,bkd->bqd", _bf16(p), _bf16(v),
                           preferred_element_type=jnp.float32)            # [B, S, dh]
            ctx_heads.append(c.reshape(B * S, dh))
        ctx = jnp.concatenate(ctx_heads, axis=-1)                         # [B*S, H]

        # Attention output projection + residual + LN.
        attn = jnp.dot(_bf16(ctx), wo_ref[l],
                       preferred_element_type=jnp.float32) + bo_ref[l]
        x = _ln(attn + x, ln1g_ref[l], ln1b_ref[l], eps)

        # FFN (GELU) + residual + LN.
        h1 = jnp.dot(_bf16(x), wi_ref[l],
                     preferred_element_type=jnp.float32) + bi_ref[l]
        h1 = _gelu_tanh(h1)
        ffn = jnp.dot(_bf16(h1), wo2_ref[l],
                      preferred_element_type=jnp.float32) + bo2_ref[l]
        x = _ln(ffn + x, ln2g_ref[l], ln2b_ref[l], eps)

    # ---- in-kernel [CLS] row select (row b*S per batch) ----------------------
    cls = jnp.concatenate([x[b * S:b * S + 1, :] for b in range(B)], axis=0)  # [B, H]

    # ---- head: fc_bert -> 3x shared bias-free dd gate -> label ---------------
    d = jnp.dot(_bf16(cls), fcw_ref[...],
                preferred_element_type=jnp.float32) + fcb_ref[...]
    for _ in range(3):
        g = jnp.dot(_bf16(d), ddw_ref[...], preferred_element_type=jnp.float32)
        d = g * d + g
    # label_w is zero-padded to 128 lanes -> lane-dense (B, 128) store.
    o_ref[...] = jnp.dot(_bf16(d), lblw_ref[...],
                         preferred_element_type=jnp.float32).astype(o_ref.dtype)


# ----------------------------------------------------------------------------
# Deterministic synthetic parameters (small ELECTRA-style config, hidden=256)
# ----------------------------------------------------------------------------
def init_params(key, *, vocab=100, type_vocab=2, max_pos=16, hidden=256,
                heads=2, inter=512, n_layers=2, num_classes=5):
    assert hidden % heads == 0 and (hidden // heads) % 128 == 0

    def nxt():
        nonlocal key
        key, sub = jax.random.split(key)
        return sub

    def w(shape, dtype=jnp.bfloat16):
        return (0.02 * jax.random.normal(nxt(), shape)).astype(dtype)

    def stack_w(shape):
        return jnp.stack([w(shape) for _ in range(n_layers)])

    label_full = w((hidden, num_classes), jnp.float32)
    label_pad = jnp.zeros((hidden, 128), jnp.float32).at[:, :num_classes].set(label_full)

    params = {
        "hidden": hidden, "heads": heads, "head_dim": hidden // heads,
        "num_classes": num_classes, "n_layers": n_layers,
        # embedding tables (integer gathers stay in JAX glue; f32)
        "word_emb": w((vocab, hidden), jnp.float32),
        "pos_emb": w((max_pos, hidden), jnp.float32),
        "type_emb": w((type_vocab, hidden), jnp.float32),
        "emb_ln_g": jnp.ones((1, hidden), jnp.float32),
        "emb_ln_b": jnp.zeros((1, hidden), jnp.float32),
        # encoder layer weights stacked over layers (matmul weights bf16)
        "wqkv": stack_w((hidden, 3 * hidden)),
        "bqkv": jnp.zeros((n_layers, 1, 3 * hidden), jnp.float32),
        "wo": stack_w((hidden, hidden)),
        "bo": jnp.zeros((n_layers, 1, hidden), jnp.float32),
        "ln1_g": jnp.ones((n_layers, 1, hidden), jnp.float32),
        "ln1_b": jnp.zeros((n_layers, 1, hidden), jnp.float32),
        "wi": stack_w((hidden, inter)),
        "bi": jnp.zeros((n_layers, 1, inter), jnp.float32),
        "wo2": stack_w((inter, hidden)),
        "bo2": jnp.zeros((n_layers, 1, hidden), jnp.float32),
        "ln2_g": jnp.ones((n_layers, 1, hidden), jnp.float32),
        "ln2_b": jnp.zeros((n_layers, 1, hidden), jnp.float32),
        # head: fc_bert (bias), dd (shared, no bias), label (no bias, lane-padded)
        "fc_w": w((hidden, hidden)),
        "fc_b": jnp.zeros((1, hidden), jnp.float32),
        "dd_w": w((hidden, hidden)),
        "label_w_pad": label_pad.astype(jnp.bfloat16),
    }
    return params


# ----------------------------------------------------------------------------
# Forward pass (mirrors electra_LSTM_cat_DD_model.forward)
# ----------------------------------------------------------------------------
def electra_dd_forward(params, bert_token, bert_mask, token_type):
    B, S = bert_token.shape
    H = params["hidden"]
    nH = params["heads"]
    dh = params["head_dim"]
    L = params["n_layers"]
    num_classes = params["num_classes"]

    # Embeddings (integer gathers kept in plain JAX glue).
    emb = (params["word_emb"][bert_token]
           + params["pos_emb"][jnp.arange(S)][None, :, :]
           + params["type_emb"][token_type])
    x = emb.reshape(B * S, H).astype(jnp.float32)

    # Additive attention mask: [B, S] with 0 for valid, -1e9 for padding.
    addmask = (1.0 - bert_mask.astype(jnp.float32)) * jnp.float32(-1e9)

    kernel = functools.partial(_fused_forward_kernel,
                               B=B, S=S, nH=nH, dh=dh, L=L, eps=1e-12)
    out = pl.pallas_call(
        kernel,
        out_shape=jax.ShapeDtypeStruct((B, 128), jnp.float32),  # lane-dense
        in_specs=[_vmem()] * 20,
        out_specs=_vmem(),
    )(x, addmask,
      params["emb_ln_g"], params["emb_ln_b"],
      params["wqkv"], params["bqkv"], params["wo"], params["bo"],
      params["ln1_g"], params["ln1_b"], params["wi"], params["bi"],
      params["wo2"], params["bo2"], params["ln2_g"], params["ln2_b"],
      params["fc_w"], params["fc_b"], params["dd_w"], params["label_w_pad"])

    return out[:, :num_classes]


if __name__ == "__main__":
    key = jax.random.PRNGKey(0)
    B, S = 2, 8
    vocab, num_classes = 100, 5

    params = init_params(key, vocab=vocab, type_vocab=2, max_pos=S,
                         hidden=256, heads=2, inter=512, n_layers=2,
                         num_classes=num_classes)

    k1, k2 = jax.random.split(jax.random.PRNGKey(0))
    bert_token = jax.random.randint(k1, (B, S), 0, vocab, dtype=jnp.int32)
    # mask: first sequence fully valid, second has 2 padding tokens at the end
    bert_mask = jnp.array([[1] * S, [1] * (S - 2) + [0] * 2], dtype=jnp.int32)
    token_type = jnp.zeros((B, S), dtype=jnp.int32)

    out = electra_dd_forward(params, bert_token, bert_mask, token_type)
    out = jax.block_until_ready(out)
    assert out.shape == (B, num_classes)
    assert bool(jnp.all(jnp.isfinite(out)))
    print("KERNEL_OK")
</pallas_src>

<mosaic_0001>
module attributes {stable_mosaic.version = 11 : i64} {
  func.func @_fused_forward_kernel(%arg0: memref<16x256xf32, #tpu.memory_space<vmem>>, %arg1: memref<2x8xf32, #tpu.memory_space<vmem>>, %arg2: memref<1x256xf32, #tpu.memory_space<vmem>>, %arg3: memref<1x256xf32, #tpu.memory_space<vmem>>, %arg4: memref<2x256x768xbf16, #tpu.memory_space<vmem>>, %arg5: memref<2x1x768xf32, #tpu.memory_space<vmem>>, %arg6: memref<2x256x256xbf16, #tpu.memory_space<vmem>>, %arg7: memref<2x1x256xf32, #tpu.memory_space<vmem>>, %arg8: memref<2x1x256xf32, #tpu.memory_space<vmem>>, %arg9: memref<2x1x256xf32, #tpu.memory_space<vmem>>, %arg10: memref<2x256x512xbf16, #tpu.memory_space<vmem>>, %arg11: memref<2x1x512xf32, #tpu.memory_space<vmem>>, %arg12: memref<2x512x256xbf16, #tpu.memory_space<vmem>>, %arg13: memref<2x1x256xf32, #tpu.memory_space<vmem>>, %arg14: memref<2x1x256xf32, #tpu.memory_space<vmem>>, %arg15: memref<2x1x256xf32, #tpu.memory_space<vmem>>, %arg16: memref<256x256xbf16, #tpu.memory_space<vmem>>, %arg17: memref<1x256xf32, #tpu.memory_space<vmem>>, %arg18: memref<256x256xbf16, #tpu.memory_space<vmem>>, %arg19: memref<256x128xbf16, #tpu.memory_space<vmem>>, %arg20: memref<2x128xf32, #tpu.memory_space<vmem>>) attributes {dimension_semantics = [], scalar_prefetch = 0 : i64, scratch_operands = 0 : i64, tpu.core_type = #tpu.core_type<tc>} {
    %c0 = arith.constant 0 : index
    %c0_0 = arith.constant 0 : index
    %0 = vector.load %arg0[%c0, %c0_0] : memref<16x256xf32, #tpu.memory_space<vmem>>, vector<16x256xf32>
    %c0_1 = arith.constant 0 : index
    %c0_2 = arith.constant 0 : index
    %1 = vector.load %arg2[%c0_1, %c0_2] : memref<1x256xf32, #tpu.memory_space<vmem>>, vector<1x256xf32>
    %c0_3 = arith.constant 0 : index
    %c0_4 = arith.constant 0 : index
    %2 = vector.load %arg3[%c0_3, %c0_4] : memref<1x256xf32, #tpu.memory_space<vmem>>, vector<1x256xf32>
    %cst = arith.constant dense<0.000000e+00> : vector<16xf32>
    %3 = vector.multi_reduction <add>, %0, %cst [1] : vector<16x256xf32> to vector<16xf32>
    %4 = vector.shape_cast %3 : vector<16xf32> to vector<16x1xf32>
    %cst_5 = arith.constant 2.560000e+02 : f32
    %5 = vector.broadcast %cst_5 : f32 to vector<16x1xf32>
    %6 = arith.divf %4, %5 : vector<16x1xf32>
    %7 = vector.broadcast %6 : vector<16x1xf32> to vector<16x256xf32>
    %8 = arith.subf %0, %7 : vector<16x256xf32>
    %9 = arith.mulf %8, %8 : vector<16x256xf32>
    %cst_6 = arith.constant dense<0.000000e+00> : vector<16xf32>
    %10 = vector.multi_reduction <add>, %9, %cst_6 [1] : vector<16x256xf32> to vector<16xf32>
    %11 = vector.shape_cast %10 : vector<16xf32> to vector<16x1xf32>
    %cst_7 = arith.constant 2.560000e+02 : f32
    %12 = vector.broadcast %cst_7 : f32 to vector<16x1xf32>
    %13 = arith.divf %11, %12 : vector<16x1xf32>
    %cst_8 = arith.constant 9.99999996E-13 : f32
    %14 = vector.broadcast %cst_8 : f32 to vector<16x1xf32>
    %15 = arith.addf %13, %14 : vector<16x1xf32>
    %16 = math.rsqrt %15 : vector<16x1xf32>
    %17 = vector.broadcast %16 : vector<16x1xf32> to vector<16x256xf32>
    %18 = arith.mulf %8, %17 : vector<16x256xf32>
    %19 = vector.broadcast %1 : vector<1x256xf32> to vector<16x256xf32>
    %20 = arith.mulf %18, %19 : vector<16x256xf32>
    %21 = vector.broadcast %2 : vector<1x256xf32> to vector<16x256xf32>
    %22 = arith.addf %20, %21 : vector<16x256xf32>
    %c0_9 = arith.constant 0 : index
    %c0_10 = arith.constant 0 : index
    %23 = vector.load %arg1[%c0_9, %c0_10] : memref<2x8xf32, #tpu.memory_space<vmem>>, vector<2x8xf32>
    %24 = vector.shape_cast %23 : vector<2x8xf32> to vector<2x1x8xf32>
    %25 = arith.truncf %22 : vector<16x256xf32> to vector<16x256xbf16>
    %c0_11 = arith.constant 0 : index
    %c0_12 = arith.constant 0 : index
    %c0_13 = arith.constant 0 : index
    %26 = vector.load %arg4[%c0_11, %c0_12, %c0_13] : memref<2x256x768xbf16, #tpu.memory_space<vmem>>, vector<1x256x768xbf16>
    %27 = vector.shape_cast %26 : vector<1x256x768xbf16> to vector<256x768xbf16>
    %cst_14 = arith.constant dense<0.000000e+00> : vector<16x768xf32>
    %28 = tpu.matmul %25, %27, %cst_14 {dimension_numbers = #tpu.dot_dimension_numbers<[1], [0], [0], [1], [0, 0, 1, 1], [], []>} : vector<16x256xbf16>, vector<256x768xbf16>, vector<16x768xf32> -> vector<16x768xf32>
    %c0_15 = arith.constant 0 : index
    %c0_16 = arith.constant 0 : index
    %c0_17 = arith.constant 0 : index
    %29 = vector.load %arg5[%c0_15, %c0_16, %c0_17] : memref<2x1x768xf32, #tpu.memory_space<vmem>>, vector<1x1x768xf32>
    %30 = vector.shape_cast %29 : vector<1x1x768xf32> to vector<1x768xf32>
    %31 = vector.broadcast %30 : vector<1x768xf32> to vector<16x768xf32>
    %32 = arith.addf %28, %31 : vector<16x768xf32>
    %33 = vector.extract_strided_slice %32 {offsets = [0, 0], sizes = [16, 128], strides = [1, 1]} : vector<16x768xf32> to vector<16x128xf32>
    %cst_18 = arith.constant 0.0883883461 : f32
    %34 = vector.broadcast %cst_18 : f32 to vector<16x128xf32>
    %35 = arith.mulf %33, %34 : vector<16x128xf32>
    %36 = vector.shape_cast %35 : vector<16x128xf32> to vector<2x8x128xf32>
    %37 = vector.extract_strided_slice %32 {offsets = [0, 256], sizes = [16, 128], strides = [1, 1]} : vector<16x768xf32> to vector<16x128xf32>
    %38 = vector.shape_cast %37 : vector<16x128xf32> to vector<2x8x128xf32>
    %39 = vector.extract_strided_slice %32 {offsets = [0, 512], sizes = [16, 128], strides = [1, 1]} : vector<16x768xf32> to vector<16x128xf32>
    %40 = vector.shape_cast %39 : vector<16x128xf32> to vector<2x8x128xf32>
    %41 = arith.truncf %36 : vector<2x8x128xf32> to vector<2x8x128xbf16>
    %42 = arith.truncf %38 : vector<2x8x128xf32> to vector<2x8x128xbf16>
    "tpu.trace_start"() <{level = 10 : i32, message = "bqd,bkd->bqk"}> : () -> ()
    %cst_19 = arith.constant dense<0.000000e+00> : vector<2x8x8xf32>
    %43 = tpu.matmul %41, %42, %cst_19 {dimension_numbers = #tpu.dot_dimension_numbers<[2], [2], [1], [1], [0, 0, 0, 1, 1, 1], [0], [0]>} : vector<2x8x128xbf16>, vector<2x8x128xbf16>, vector<2x8x8xf32> -> vector<2x8x8xf32>
    "tpu.trace_stop"() : () -> ()
    %44 = vector.broadcast %24 : vector<2x1x8xf32> to vector<2x8x8xf32>
    %45 = arith.addf %43, %44 : vector<2x8x8xf32>
    %cst_20 = arith.constant dense<0xFF800000> : vector<2x8xf32>
    %46 = vector.multi_reduction <maximumf>, %45, %cst_20 [2] : vector<2x8x8xf32> to vector<2x8xf32>
    %47 = vector.shape_cast %46 : vector<2x8xf32> to vector<2x8x1xf32>
    %48 = vector.broadcast %47 : vector<2x8x1xf32> to vector<2x8x8xf32>
    %49 = arith.subf %45, %48 : vector<2x8x8xf32>
    %50 = math.exp %49 : vector<2x8x8xf32>
    %cst_21 = arith.constant dense<0.000000e+00> : vector<2x8xf32>
    %51 = vector.multi_reduction <add>, %50, %cst_21 [2] : vector<2x8x8xf32> to vector<2x8xf32>
    %52 = vector.shape_cast %51 : vector<2x8xf32> to vector<2x8x1xf32>
    %53 = vector.broadcast %52 : vector<2x8x1xf32> to vector<2x8x8xf32>
    %54 = arith.divf %50, %53 : vector<2x8x8xf32>
    %55 = arith.truncf %54 : vector<2x8x8xf32> to vector<2x8x8xbf16>
    %56 = arith.truncf %40 : vector<2x8x128xf32> to vector<2x8x128xbf16>
    "tpu.trace_start"() <{level = 10 : i32, message = "bqk,bkd->bqd"}> : () -> ()
    %cst_22 = arith.constant dense<0.000000e+00> : vector<2x8x128xf32>
    %57 = tpu.matmul %55, %56, %cst_22 {dimension_numbers = #tpu.dot_dimension_numbers<[2], [1], [1], [2], [0, 0, 0, 1, 1, 2], [0], [0]>} : vector<2x8x8xbf16>, vector<2x8x128xbf16>, vector<2x8x128xf32> -> vector<2x8x128xf32>
    "tpu.trace_stop"() : () -> ()
    %58 = vector.shape_cast %57 : vector<2x8x128xf32> to vector<16x128xf32>
    %59 = vector.extract_strided_slice %32 {offsets = [0, 128], sizes = [16, 128], strides = [1, 1]} : vector<16x768xf32> to vector<16x128xf32>
    %cst_23 = arith.constant 0.0883883461 : f32
    %60 = vector.broadcast %cst_23 : f32 to vector<16x128xf32>
    %61 = arith.mulf %59, %60 : vector<16x128xf32>
    %62 = vector.shape_cast %61 : vector<16x128xf32> to vector<2x8x128xf32>
    %63 = vector.extract_strided_slice %32 {offsets = [0, 384], sizes = [16, 128], strides = [1, 1]} : vector<16x768xf32> to vector<16x128xf32>
    %64 = vector.shape_cast %63 : vector<16x128xf32> to vector<2x8x128xf32>
    %65 = vector.extract_strided_slice %32 {offsets = [0, 640], sizes = [16, 128], strides = [1, 1]} : vector<16x768xf32> to vector<16x128xf32>
    %66 = vector.shape_cast %65 : vector<16x128xf32> to vector<2x8x128xf32>
    %67 = arith.truncf %62 : vector<2x8x128xf32> to vector<2x8x128xbf16>
    %68 = arith.truncf %64 : vector<2x8x128xf32> to vector<2x8x128xbf16>
    "tpu.trace_start"() <{level = 10 : i32, message = "bqd,bkd->bqk"}> : () -> ()
    %cst_24 = arith.constant dense<0.000000e+00> : vector<2x8x8xf32>
    %69 = tpu.matmul %67, %68, %cst_24 {dimension_numbers = #tpu.dot_dimension_numbers<[2], [2], [1], [1], [0, 0, 0, 1, 1, 1], [0], [0]>} : vector<2x8x128xbf16>, vector<2x8x128xbf16>, vector<2x8x8xf32> -> vector<2x8x8xf32>
    "tpu.trace_stop"() : () -> ()
    %70 = vector.broadcast %24 : vector<2x1x8xf32> to vector<2x8x8xf32>
    %71 = arith.addf %69, %70 : vector<2x8x8xf32>
    %cst_25 = arith.constant dense<0xFF800000> : vector<2x8xf32>
    %72 = vector.multi_reduction <maximumf>, %71, %cst_25 [2] : vector<2x8x8xf32> to vector<2x8xf32>
    %73 = vector.shape_cast %72 : vector<2x8xf32> to vector<2x8x1xf32>
    %74 = vector.broadcast %73 : vector<2x8x1xf32> to vector<2x8x8xf32>
    %75 = arith.subf %71, %74 : vector<2x8x8xf32>
    %76 = math.exp %75 : vector<2x8x8xf32>
    %cst_26 = arith.constant dense<0.000000e+00> : vector<2x8xf32>
    %77 = vector.multi_reduction <add>, %76, %cst_26 [2] : vector<2x8x8xf32> to vector<2x8xf32>
    %78 = vector.shape_cast %77 : vector<2x8xf32> to vector<2x8x1xf32>
    %79 = vector.broadcast %78 : vector<2x8x1xf32> to vector<2x8x8xf32>
    %80 = arith.divf %76, %79 : vector<2x8x8xf32>
    %81 = arith.truncf %80 : vector<2x8x8xf32> to vector<2x8x8xbf16>
    %82 = arith.truncf %66 : vector<2x8x128xf32> to vector<2x8x128xbf16>
    "tpu.trace_start"() <{level = 10 : i32, message = "bqk,bkd->bqd"}> : () -> ()
    %cst_27 = arith.constant dense<0.000000e+00> : vector<2x8x128xf32>
    %83 = tpu.matmul %81, %82, %cst_27 {dimension_numbers = #tpu.dot_dimension_numbers<[2], [1], [1], [2], [0, 0, 0, 1, 1, 2], [0], [0]>} : vector<2x8x8xbf16>, vector<2x8x128xbf16>, vector<2x8x128xf32> -> vector<2x8x128xf32>
    "tpu.trace_stop"() : () -> ()
    %84 = vector.shape_cast %83 : vector<2x8x128xf32> to vector<16x128xf32>
    %85 = tpu.concatenate %58, %84 in 1 : vector<16x128xf32>, vector<16x128xf32> -> vector<16x256xf32>
    %86 = arith.truncf %85 : vector<16x256xf32> to vector<16x256xbf16>
    %c0_28 = arith.constant 0 : index
    %c0_29 = arith.constant 0 : index
    %c0_30 = arith.constant 0 : index
    %87 = vector.load %arg6[%c0_28, %c0_29, %c0_30] : memref<2x256x256xbf16, #tpu.memory_space<vmem>>, vector<1x256x256xbf16>
    %88 = vector.shape_cast %87 : vector<1x256x256xbf16> to vector<256x256xbf16>
    %cst_31 = arith.constant dense<0.000000e+00> : vector<16x256xf32>
    %89 = tpu.matmul %86, %88, %cst_31 {dimension_numbers = #tpu.dot_dimension_numbers<[1], [0], [0], [1], [0, 0, 1, 1], [], []>} : vector<16x256xbf16>, vector<256x256xbf16>, vector<16x256xf32> -> vector<16x256xf32>
    %c0_32 = arith.constant 0 : index
    %c0_33 = arith.constant 0 : index
    %c0_34 = arith.constant 0 : index
    %90 = vector.load %arg7[%c0_32, %c0_33, %c0_34] : memref<2x1x256xf32, #tpu.memory_space<vmem>>, vector<1x1x256xf32>
    %91 = vector.shape_cast %90 : vector<1x1x256xf32> to vector<1x256xf32>
    %92 = vector.broadcast %91 : vector<1x256xf32> to vector<16x256xf32>
    %93 = arith.addf %89, %92 : vector<16x256xf32>
    %94 = arith.addf %93, %22 : vector<16x256xf32>
    %c0_35 = arith.constant 0 : index
    %c0_36 = arith.constant 0 : index
    %c0_37 = arith.constant 0 : index
    %95 = vector.load %arg8[%c0_35, %c0_36, %c0_37] : memref<2x1x256xf32, #tpu.memory_space<vmem>>, vector<1x1x256xf32>
    %96 = vector.shape_cast %95 : vector<1x1x256xf32> to vector<1x256xf32>
    %c0_38 = arith.constant 0 : index
    %c0_39 = arith.constant 0 : index
    %c0_40 = arith.constant 0 : index
    %97 = vector.load %arg9[%c0_38, %c0_39, %c0_40] : memref<2x1x256xf32, #tpu.memory_space<vmem>>, vector<1x1x256xf32>
    %98 = vector.shape_cast %97 : vector<1x1x256xf32> to vector<1x256xf32>
    %cst_41 = arith.constant dense<0.000000e+00> : vector<16xf32>
    %99 = vector.multi_reduction <add>, %94, %cst_41 [1] : vector<16x256xf32> to vector<16xf32>
    %100 = vector.shape_cast %99 : vector<16xf32> to vector<16x1xf32>
    %cst_42 = arith.constant 2.560000e+02 : f32
    %101 = vector.broadcast %cst_42 : f32 to vector<16x1xf32>
    %102 = arith.divf %100, %101 : vector<16x1xf32>
    %103 = vector.broadcast %102 : vector<16x1xf32> to vector<16x256xf32>
    %104 = arith.subf %94, %103 : vector<16x256xf32>
    %105 = arith.mulf %104, %104 : vector<16x256xf32>
    %cst_43 = arith.constant dense<0.000000e+00> : vector<16xf32>
    %106 = vector.multi_reduction <add>, %105, %cst_43 [1] : vector<16x256xf32> to vector<16xf32>
    %107 = vector.shape_cast %106 : vector<16xf32> to vector<16x1xf32>
    %cst_44 = arith.constant 2.560000e+02 : f32
    %108 = vector.broadcast %cst_44 : f32 to vector<16x1xf32>
    %109 = arith.divf %107, %108 : vector<16x1xf32>
    %cst_45 = arith.constant 9.99999996E-13 : f32
    %110 = vector.broadcast %cst_45 : f32 to vector<16x1xf32>
    %111 = arith.addf %109, %110 : vector<16x1xf32>
    %112 = math.rsqrt %111 : vector<16x1xf32>
    %113 = vector.broadcast %112 : vector<16x1xf32> to vector<16x256xf32>
    %114 = arith.mulf %104, %113 : vector<16x256xf32>
    %115 = vector.broadcast %96 : vector<1x256xf32> to vector<16x256xf32>
    %116 = arith.mulf %114, %115 : vector<16x256xf32>
    %117 = vector.broadcast %98 : vector<1x256xf32> to vector<16x256xf32>
    %118 = arith.addf %116, %117 : vector<16x256xf32>
    %119 = arith.truncf %118 : vector<16x256xf32> to vector<16x256xbf16>
    %c0_46 = arith.constant 0 : index
    %c0_47 = arith.constant 0 : index
    %c0_48 = arith.constant 0 : index
    %120 = vector.load %arg10[%c0_46, %c0_47, %c0_48] : memref<2x256x512xbf16, #tpu.memory_space<vmem>>, vector<1x256x512xbf16>
    %121 = vector.shape_cast %120 : vector<1x256x512xbf16> to vector<256x512xbf16>
    %cst_49 = arith.constant dense<0.000000e+00> : vector<16x512xf32>
    %122 = tpu.matmul %119, %121, %cst_49 {dimension_numbers = #tpu.dot_dimension_numbers<[1], [0], [0], [1], [0, 0, 1, 1], [], []>} : vector<16x256xbf16>, vector<256x512xbf16>, vector<16x512xf32> -> vector<16x512xf32>
    %c0_50 = arith.constant 0 : index
    %c0_51 = arith.constant 0 : index
    %c0_52 = arith.constant 0 : index
    %123 = vector.load %arg11[%c0_50, %c0_51, %c0_52] : memref<2x1x512xf32, #tpu.memory_space<vmem>>, vector<1x1x512xf32>
    %124 = vector.shape_cast %123 : vector<1x1x512xf32> to vector<1x512xf32>
    %125 = vector.broadcast %124 : vector<1x512xf32> to vector<16x512xf32>
    %126 = arith.addf %122, %125 : vector<16x512xf32>
    %cst_53 = arith.constant 5.000000e-01 : f32
    %127 = vector.broadcast %cst_53 : f32 to vector<16x512xf32>
    %128 = arith.mulf %127, %126 : vector<16x512xf32>
    %cst_54 = arith.constant 4.471500e-02 : f32
    %129 = vector.broadcast %cst_54 : f32 to vector<16x512xf32>
    %130 = arith.mulf %129, %126 : vector<16x512xf32>
    %131 = arith.mulf %130, %126 : vector<16x512xf32>
    %132 = arith.mulf %131, %126 : vector<16x512xf32>
    %133 = arith.addf %126, %132 : vector<16x512xf32>
    %cst_55 = arith.constant 0.797884583 : f32
    %134 = vector.broadcast %cst_55 : f32 to vector<16x512xf32>
    %135 = arith.mulf %134, %133 : vector<16x512xf32>
    %136 = math.tanh %135 : vector<16x512xf32>
    %cst_56 = arith.constant 1.000000e+00 : f32
    %137 = vector.broadcast %cst_56 : f32 to vector<16x512xf32>
    %138 = arith.addf %137, %136 : vector<16x512xf32>
    %139 = arith.mulf %128, %138 : vector<16x512xf32>
    %140 = arith.truncf %139 : vector<16x512xf32> to vector<16x512xbf16>
    %c0_57 = arith.constant 0 : index
    %c0_58 = arith.constant 0 : index
    %c0_59 = arith.constant 0 : index
    %141 = vector.load %arg12[%c0_57, %c0_58, %c0_59] : memref<2x512x256xbf16, #tpu.memory_space<vmem>>, vector<1x512x256xbf16>
    %142 = vector.shape_cast %141 : vector<1x512x256xbf16> to vector<512x256xbf16>
    %cst_60 = arith.constant dense<0.000000e+00> : vector<16x256xf32>
    %143 = tpu.matmul %140, %142, %cst_60 {dimension_numbers = #tpu.dot_dimension_numbers<[1], [0], [0], [1], [0, 0, 1, 1], [], []>} : vector<16x512xbf16>, vector<512x256xbf16>, vector<16x256xf32> -> vector<16x256xf32>
    %c0_61 = arith.constant 0 : index
    %c0_62 = arith.constant 0 : index
    %c0_63 = arith.constant 0 : index
    %144 = vector.load %arg13[%c0_61, %c0_62, %c0_63] : memref<2x1x256xf32, #tpu.memory_space<vmem>>, vector<1x1x256xf32>
    %145 = vector.shape_cast %144 : vector<1x1x256xf32> to vector<1x256xf32>
    %146 = vector.broadcast %145 : vector<1x256xf32> to vector<16x256xf32>
    %147 = arith.addf %143, %146 : vector<16x256xf32>
    %148 = arith.addf %147, %118 : vector<16x256xf32>
    %c0_64 = arith.constant 0 : index
    %c0_65 = arith.constant 0 : index
    %c0_66 = arith.constant 0 : index
    %149 = vector.load %arg14[%c0_64, %c0_65, %c0_66] : memref<2x1x256xf32, #tpu.memory_space<vmem>>, vector<1x1x256xf32>
    %150 = vector.shape_cast %149 : vector<1x1x256xf32> to vector<1x256xf32>
    %c0_67 = arith.constant 0 : index
    %c0_68 = arith.constant 0 : index
    %c0_69 = arith.constant 0 : index
    %151 = vector.load %arg15[%c0_67, %c0_68, %c0_69] : memref<2x1x256xf32, #tpu.memory_space<vmem>>, vector<1x1x256xf32>
    %152 = vector.shape_cast %151 : vector<1x1x256xf32> to vector<1x256xf32>
    %cst_70 = arith.constant dense<0.000000e+00> : vector<16xf32>
    %153 = vector.multi_reduction <add>, %148, %cst_70 [1] : vector<16x256xf32> to vector<16xf32>
    %154 = vector.shape_cast %153 : vector<16xf32> to vector<16x1xf32>
    %cst_71 = arith.constant 2.560000e+02 : f32
    %155 = vector.broadcast %cst_71 : f32 to vector<16x1xf32>
    %156 = arith.divf %154, %155 : vector<16x1xf32>
    %157 = vector.broadcast %156 : vector<16x1xf32> to vector<16x256xf32>
    %158 = arith.subf %148, %157 : vector<16x256xf32>
    %159 = arith.mulf %158, %158 : vector<16x256xf32>
    %cst_72 = arith.constant dense<0.000000e+00> : vector<16xf32>
    %160 = vector.multi_reduction <add>, %159, %cst_72 [1] : vector<16x256xf32> to vector<16xf32>
    %161 = vector.shape_cast %160 : vector<16xf32> to vector<16x1xf32>
    %cst_73 = arith.constant 2.560000e+02 : f32
    %162 = vector.broadcast %cst_73 : f32 to vector<16x1xf32>
    %163 = arith.divf %161, %162 : vector<16x1xf32>
    %cst_74 = arith.constant 9.99999996E-13 : f32
    %164 = vector.broadcast %cst_74 : f32 to vector<16x1xf32>
    %165 = arith.addf %163, %164 : vector<16x1xf32>
    %166 = math.rsqrt %165 : vector<16x1xf32>
    %167 = vector.broadcast %166 : vector<16x1xf32> to vector<16x256xf32>
    %168 = arith.mulf %158, %167 : vector<16x256xf32>
    %169 = vector.broadcast %150 : vector<1x256xf32> to vector<16x256xf32>
    %170 = arith.mulf %168, %169 : vector<16x256xf32>
    %171 = vector.broadcast %152 : vector<1x256xf32> to vector<16x256xf32>
    %172 = arith.addf %170, %171 : vector<16x256xf32>
    %173 = arith.truncf %172 : vector<16x256xf32> to vector<16x256xbf16>
    %c1 = arith.constant 1 : index
    %c0_75 = arith.constant 0 : index
    %c0_76 = arith.constant 0 : index
    %174 = vector.load %arg4[%c1, %c0_75, %c0_76] : memref<2x256x768xbf16, #tpu.memory_space<vmem>>, vector<1x256x768xbf16>
    %175 = vector.shape_cast %174 : vector<1x256x768xbf16> to vector<256x768xbf16>
    %cst_77 = arith.constant dense<0.000000e+00> : vector<16x768xf32>
    %176 = tpu.matmul %173, %175, %cst_77 {dimension_numbers = #tpu.dot_dimension_numbers<[1], [0], [0], [1], [0, 0, 1, 1], [], []>} : vector<16x256xbf16>, vector<256x768xbf16>, vector<16x768xf32> -> vector<16x768xf32>
    %c1_78 = arith.constant 1 : index
    %c0_79 = arith.constant 0 : index
    %c0_80 = arith.constant 0 : index
    %177 = vector.load %arg5[%c1_78, %c0_79, %c0_80] : memref<2x1x768xf32, #tpu.memory_space<vmem>>, vector<1x1x768xf32>
    %178 = vector.shape_cast %177 : vector<1x1x768xf32> to vector<1x768xf32>
    %179 = vector.broadcast %178 : vector<1x768xf32> to vector<16x768xf32>
    %180 = arith.addf %176, %179 : vector<16x768xf32>
    %181 = vector.extract_strided_slice %180 {offsets = [0, 0], sizes = [16, 128], strides = [1, 1]} : vector<16x768xf32> to vector<16x128xf32>
    %cst_81 = arith.constant 0.0883883461 : f32
    %182 = vector.broadcast %cst_81 : f32 to vector<16x128xf32>
    %183 = arith.mulf %181, %182 : vector<16x128xf32>
    %184 = vector.shape_cast %183 : vector<16x128xf32> to vector<2x8x128xf32>
    %185 = vector.extract_strided_slice %180 {offsets = [0, 256], sizes = [16, 128], strides = [1, 1]} : vector<16x768xf32> to vector<16x128xf32>
    %186 = vector.shape_cast %185 : vector<16x128xf32> to vector<2x8x128xf32>
    %187 = vector.extract_strided_slice %180 {offsets = [0, 512], sizes = [16, 128], strides = [1, 1]} : vector<16x768xf32> to vector<16x128xf32>
    %188 = vector.shape_cast %187 : vector<16x128xf32> to vector<2x8x128xf32>
    %189 = arith.truncf %184 : vector<2x8x128xf32> to vector<2x8x128xbf16>
    %190 = arith.truncf %186 : vector<2x8x128xf32> to vector<2x8x128xbf16>
    "tpu.trace_start"() <{level = 10 : i32, message = "bqd,bkd->bqk"}> : () -> ()
    %cst_82 = arith.constant dense<0.000000e+00> : vector<2x8x8xf32>
    %191 = tpu.matmul %189, %190, %cst_82 {dimension_numbers = #tpu.dot_dimension_numbers<[2], [2], [1], [1], [0, 0, 0, 1, 1, 1], [0], [0]>} : vector<2x8x128xbf16>, vector<2x8x128xbf16>, vector<2x8x8xf32> -> vector<2x8x8xf32>
    "tpu.trace_stop"() : () -> ()
    %192 = vector.broadcast %24 : vector<2x1x8xf32> to vector<2x8x8xf32>
    %193 = arith.addf %191, %192 : vector<2x8x8xf32>
    %cst_83 = arith.constant dense<0xFF800000> : vector<2x8xf32>
    %194 = vector.multi_reduction <maximumf>, %193, %cst_83 [2] : vector<2x8x8xf32> to vector<2x8xf32>
    %195 = vector.shape_cast %194 : vector<2x8xf32> to vector<2x8x1xf32>
    %196 = vector.broadcast %195 : vector<2x8x1xf32> to vector<2x8x8xf32>
    %197 = arith.subf %193, %196 : vector<2x8x8xf32>
    %198 = math.exp %197 : vector<2x8x8xf32>
    %cst_84 = arith.constant dense<0.000000e+00> : vector<2x8xf32>
    %199 = vector.multi_reduction <add>, %198, %cst_84 [2] : vector<2x8x8xf32> to vector<2x8xf32>
    %200 = vector.shape_cast %199 : vector<2x8xf32> to vector<2x8x1xf32>
    %201 = vector.broadcast %200 : vector<2x8x1xf32> to vector<2x8x8xf32>
    %202 = arith.divf %198, %201 : vector<2x8x8xf32>
    %203 = arith.truncf %202 : vector<2x8x8xf32> to vector<2x8x8xbf16>
    %204 = arith.truncf %188 : vector<2x8x128xf32> to vector<2x8x128xbf16>
    "tpu.trace_start"() <{level = 10 : i32, message = "bqk,bkd->bqd"}> : () -> ()
    %cst_85 = arith.constant dense<0.000000e+00> : vector<2x8x128xf32>
    %205 = tpu.matmul %203, %204, %cst_85 {dimension_numbers = #tpu.dot_dimension_numbers<[2], [1], [1], [2], [0, 0, 0, 1, 1, 2], [0], [0]>} : vector<2x8x8xbf16>, vector<2x8x128xbf16>, vector<2x8x128xf32> -> vector<2x8x128xf32>
    "tpu.trace_stop"() : () -> ()
    %206 = vector.shape_cast %205 : vector<2x8x128xf32> to vector<16x128xf32>
    %207 = vector.extract_strided_slice %180 {offsets = [0, 128], sizes = [16, 128], strides = [1, 1]} : vector<16x768xf32> to vector<16x128xf32>
    %cst_86 = arith.constant 0.0883883461 : f32
    %208 = vector.broadcast %cst_86 : f32 to vector<16x128xf32>
    %209 = arith.mulf %207, %208 : vector<16x128xf32>
    %210 = vector.shape_cast %209 : vector<16x128xf32> to vector<2x8x128xf32>
    %211 = vector.extract_strided_slice %180 {offsets = [0, 384], sizes = [16, 128], strides = [1, 1]} : vector<16x768xf32> to vector<16x128xf32>
    %212 = vector.shape_cast %211 : vector<16x128xf32> to vector<2x8x128xf32>
    %213 = vector.extract_strided_slice %180 {offsets = [0, 640], sizes = [16, 128], strides = [1, 1]} : vector<16x768xf32> to vector<16x128xf32>
    %214 = vector.shape_cast %213 : vector<16x128xf32> to vector<2x8x128xf32>
    %215 = arith.truncf %210 : vector<2x8x128xf32> to vector<2x8x128xbf16>
    %216 = arith.truncf %212 : vector<2x8x128xf32> to vector<2x8x128xbf16>
    "tpu.trace_start"() <{level = 10 : i32, message = "bqd,bkd->bqk"}> : () -> ()
    %cst_87 = arith.constant dense<0.000000e+00> : vector<2x8x8xf32>
    %217 = tpu.matmul %215, %216, %cst_87 {dimension_numbers = #tpu.dot_dimension_numbers<[2], [2], [1], [1], [0, 0, 0, 1, 1, 1], [0], [0]>} : vector<2x8x128xbf16>, vector<2x8x128xbf16>, vector<2x8x8xf32> -> vector<2x8x8xf32>
    "tpu.trace_stop"() : () -> ()
    %218 = vector.broadcast %24 : vector<2x1x8xf32> to vector<2x8x8xf32>
    %219 = arith.addf %217, %218 : vector<2x8x8xf32>
    %cst_88 = arith.constant dense<0xFF800000> : vector<2x8xf32>
    %220 = vector.multi_reduction <maximumf>, %219, %cst_88 [2] : vector<2x8x8xf32> to vector<2x8xf32>
    %221 = vector.shape_cast %220 : vector<2x8xf32> to vector<2x8x1xf32>
    %222 = vector.broadcast %221 : vector<2x8x1xf32> to vector<2x8x8xf32>
    %223 = arith.subf %219, %222 : vector<2x8x8xf32>
    %224 = math.exp %223 : vector<2x8x8xf32>
    %cst_89 = arith.constant dense<0.000000e+00> : vector<2x8xf32>
    %225 = vector.multi_reduction <add>, %224, %cst_89 [2] : vector<2x8x8xf32> to vector<2x8xf32>
    %226 = vector.shape_cast %225 : vector<2x8xf32> to vector<2x8x1xf32>
    %227 = vector.broadcast %226 : vector<2x8x1xf32> to vector<2x8x8xf32>
    %228 = arith.divf %224, %227 : vector<2x8x8xf32>
    %229 = arith.truncf %228 : vector<2x8x8xf32> to vector<2x8x8xbf16>
    %230 = arith.truncf %214 : vector<2x8x128xf32> to vector<2x8x128xbf16>
    "tpu.trace_start"() <{level = 10 : i32, message = "bqk,bkd->bqd"}> : () -> ()
    %cst_90 = arith.constant dense<0.000000e+00> : vector<2x8x128xf32>
    %231 = tpu.matmul %229, %230, %cst_90 {dimension_numbers = #tpu.dot_dimension_numbers<[2], [1], [1], [2], [0, 0, 0, 1, 1, 2], [0], [0]>} : vector<2x8x8xbf16>, vector<2x8x128xbf16>, vector<2x8x128xf32> -> vector<2x8x128xf32>
    "tpu.trace_stop"() : () -> ()
    %232 = vector.shape_cast %231 : vector<2x8x128xf32> to vector<16x128xf32>
    %233 = tpu.concatenate %206, %232 in 1 : vector<16x128xf32>, vector<16x128xf32> -> vector<16x256xf32>
    %234 = arith.truncf %233 : vector<16x256xf32> to vector<16x256xbf16>
    %c1_91 = arith.constant 1 : index
    %c0_92 = arith.constant 0 : index
    %c0_93 = arith.constant 0 : index
    %235 = vector.load %arg6[%c1_91, %c0_92, %c0_93] : memref<2x256x256xbf16, #tpu.memory_space<vmem>>, vector<1x256x256xbf16>
    %236 = vector.shape_cast %235 : vector<1x256x256xbf16> to vector<256x256xbf16>
    %cst_94 = arith.constant dense<0.000000e+00> : vector<16x256xf32>
    %237 = tpu.matmul %234, %236, %cst_94 {dimension_numbers = #tpu.dot_dimension_numbers<[1], [0], [0], [1], [0, 0, 1, 1], [], []>} : vector<16x256xbf16>, vector<256x256xbf16>, vector<16x256xf32> -> vector<16x256xf32>
    %c1_95 = arith.constant 1 : index
    %c0_96 = arith.constant 0 : index
    %c0_97 = arith.constant 0 : index
    %238 = vector.load %arg7[%c1_95, %c0_96, %c0_97] : memref<2x1x256xf32, #tpu.memory_space<vmem>>, vector<1x1x256xf32>
    %239 = vector.shape_cast %238 : vector<1x1x256xf32> to vector<1x256xf32>
    %240 = vector.broadcast %239 : vector<1x256xf32> to vector<16x256xf32>
    %241 = arith.addf %237, %240 : vector<16x256xf32>
    %242 = arith.addf %241, %172 : vector<16x256xf32>
    %c1_98 = arith.constant 1 : index
    %c0_99 = arith.constant 0 : index
    %c0_100 = arith.constant 0 : index
    %243 = vector.load %arg8[%c1_98, %c0_99, %c0_100] : memref<2x1x256xf32, #tpu.memory_space<vmem>>, vector<1x1x256xf32>
    %244 = vector.shape_cast %243 : vector<1x1x256xf32> to vector<1x256xf32>
    %c1_101 = arith.constant 1 : index
    %c0_102 = arith.constant 0 : index
    %c0_103 = arith.constant 0 : index
    %245 = vector.load %arg9[%c1_101, %c0_102, %c0_103] : memref<2x1x256xf32, #tpu.memory_space<vmem>>, vector<1x1x256xf32>
    %246 = vector.shape_cast %245 : vector<1x1x256xf32> to vector<1x256xf32>
    %cst_104 = arith.constant dense<0.000000e+00> : vector<16xf32>
    %247 = vector.multi_reduction <add>, %242, %cst_104 [1] : vector<16x256xf32> to vector<16xf32>
    %248 = vector.shape_cast %247 : vector<16xf32> to vector<16x1xf32>
    %cst_105 = arith.constant 2.560000e+02 : f32
    %249 = vector.broadcast %cst_105 : f32 to vector<16x1xf32>
    %250 = arith.divf %248, %249 : vector<16x1xf32>
    %251 = vector.broadcast %250 : vector<16x1xf32> to vector<16x256xf32>
    %252 = arith.subf %242, %251 : vector<16x256xf32>
    %253 = arith.mulf %252, %252 : vector<16x256xf32>
    %cst_106 = arith.constant dense<0.000000e+00> : vector<16xf32>
    %254 = vector.multi_reduction <add>, %253, %cst_106 [1] : vector<16x256xf32> to vector<16xf32>
    %255 = vector.shape_cast %254 : vector<16xf32> to vector<16x1xf32>
    %cst_107 = arith.constant 2.560000e+02 : f32
    %256 = vector.broadcast %cst_107 : f32 to vector<16x1xf32>
    %257 = arith.divf %255, %256 : vector<16x1xf32>
    %cst_108 = arith.constant 9.99999996E-13 : f32
    %258 = vector.broadcast %cst_108 : f32 to vector<16x1xf32>
    %259 = arith.addf %257, %258 : vector<16x1xf32>
    %260 = math.rsqrt %259 : vector<16x1xf32>
    %261 = vector.broadcast %260 : vector<16x1xf32> to vector<16x256xf32>
    %262 = arith.mulf %252, %261 : vector<16x256xf32>
    %263 = vector.broadcast %244 : vector<1x256xf32> to vector<16x256xf32>
    %264 = arith.mulf %262, %263 : vector<16x256xf32>
    %265 = vector.broadcast %246 : vector<1x256xf32> to vector<16x256xf32>
    %266 = arith.addf %264, %265 : vector<16x256xf32>
    %267 = arith.truncf %266 : vector<16x256xf32> to vector<16x256xbf16>
    %c1_109 = arith.constant 1 : index
    %c0_110 = arith.constant 0 : index
    %c0_111 = arith.constant 0 : index
    %268 = vector.load %arg10[%c1_109, %c0_110, %c0_111] : memref<2x256x512xbf16, #tpu.memory_space<vmem>>, vector<1x256x512xbf16>
    %269 = vector.shape_cast %268 : vector<1x256x512xbf16> to vector<256x512xbf16>
    %cst_112 = arith.constant dense<0.000000e+00> : vector<16x512xf32>
    %270 = tpu.matmul %267, %269, %cst_112 {dimension_numbers = #tpu.dot_dimension_numbers<[1], [0], [0], [1], [0, 0, 1, 1], [], []>} : vector<16x256xbf16>, vector<256x512xbf16>, vector<16x512xf32> -> vector<16x512xf32>
    %c1_113 = arith.constant 1 : index
    %c0_114 = arith.constant 0 : index
    %c0_115 = arith.constant 0 : index
    %271 = vector.load %arg11[%c1_113, %c0_114, %c0_115] : memref<2x1x512xf32, #tpu.memory_space<vmem>>, vector<1x1x512xf32>
    %272 = vector.shape_cast %271 : vector<1x1x512xf32> to vector<1x512xf32>
    %273 = vector.broadcast %272 : vector<1x512xf32> to vector<16x512xf32>
    %274 = arith.addf %270, %273 : vector<16x512xf32>
    %cst_116 = arith.constant 5.000000e-01 : f32
    %275 = vector.broadcast %cst_116 : f32 to vector<16x512xf32>
    %276 = arith.mulf %275, %274 : vector<16x512xf32>
    %cst_117 = arith.constant 4.471500e-02 : f32
    %277 = vector.broadcast %cst_117 : f32 to vector<16x512xf32>
    %278 = arith.mulf %277, %274 : vector<16x512xf32>
    %279 = arith.mulf %278, %274 : vector<16x512xf32>
    %280 = arith.mulf %279, %274 : vector<16x512xf32>
    %281 = arith.addf %274, %280 : vector<16x512xf32>
    %cst_118 = arith.constant 0.797884583 : f32
    %282 = vector.broadcast %cst_118 : f32 to vector<16x512xf32>
    %283 = arith.mulf %282, %281 : vector<16x512xf32>
    %284 = math.tanh %283 : vector<16x512xf32>
    %cst_119 = arith.constant 1.000000e+00 : f32
    %285 = vector.broadcast %cst_119 : f32 to vector<16x512xf32>
    %286 = arith.addf %285, %284 : vector<16x512xf32>
    %287 = arith.mulf %276, %286 : vector<16x512xf32>
    %288 = arith.truncf %287 : vector<16x512xf32> to vector<16x512xbf16>
    %c1_120 = arith.constant 1 : index
    %c0_121 = arith.constant 0 : index
    %c0_122 = arith.constant 0 : index
    %289 = vector.load %arg12[%c1_120, %c0_121, %c0_122] : memref<2x512x256xbf16, #tpu.memory_space<vmem>>, vector<1x512x256xbf16>
    %290 = vector.shape_cast %289 : vector<1x512x256xbf16> to vector<512x256xbf16>
    %cst_123 = arith.constant dense<0.000000e+00> : vector<16x256xf32>
    %291 = tpu.matmul %288, %290, %cst_123 {dimension_numbers = #tpu.dot_dimension_numbers<[1], [0], [0], [1], [0, 0, 1, 1], [], []>} : vector<16x512xbf16>, vector<512x256xbf16>, vector<16x256xf32> -> vector<16x256xf32>
    %c1_124 = arith.constant 1 : index
    %c0_125 = arith.constant 0 : index
    %c0_126 = arith.constant 0 : index
    %292 = vector.load %arg13[%c1_124, %c0_125, %c0_126] : memref<2x1x256xf32, #tpu.memory_space<vmem>>, vector<1x1x256xf32>
    %293 = vector.shape_cast %292 : vector<1x1x256xf32> to vector<1x256xf32>
    %294 = vector.broadcast %293 : vector<1x256xf32> to vector<16x256xf32>
    %295 = arith.addf %291, %294 : vector<16x256xf32>
    %296 = arith.addf %295, %266 : vector<16x256xf32>
    %c1_127 = arith.constant 1 : index
    %c0_128 = arith.constant 0 : index
    %c0_129 = arith.constant 0 : index
    %297 = vector.load %arg14[%c1_127, %c0_128, %c0_129] : memref<2x1x256xf32, #tpu.memory_space<vmem>>, vector<1x1x256xf32>
    %298 = vector.shape_cast %297 : vector<1x1x256xf32> to vector<1x256xf32>
    %c1_130 = arith.constant 1 : index
    %c0_131 = arith.constant 0 : index
    %c0_132 = arith.constant 0 : index
    %299 = vector.load %arg15[%c1_130, %c0_131, %c0_132] : memref<2x1x256xf32, #tpu.memory_space<vmem>>, vector<1x1x256xf32>
    %300 = vector.shape_cast %299 : vector<1x1x256xf32> to vector<1x256xf32>
    %cst_133 = arith.constant dense<0.000000e+00> : vector<16xf32>
    %301 = vector.multi_reduction <add>, %296, %cst_133 [1] : vector<16x256xf32> to vector<16xf32>
    %302 = vector.shape_cast %301 : vector<16xf32> to vector<16x1xf32>
    %cst_134 = arith.constant 2.560000e+02 : f32
    %303 = vector.broadcast %cst_134 : f32 to vector<16x1xf32>
    %304 = arith.divf %302, %303 : vector<16x1xf32>
    %305 = vector.broadcast %304 : vector<16x1xf32> to vector<16x256xf32>
    %306 = arith.subf %296, %305 : vector<16x256xf32>
    %307 = arith.mulf %306, %306 : vector<16x256xf32>
    %cst_135 = arith.constant dense<0.000000e+00> : vector<16xf32>
    %308 = vector.multi_reduction <add>, %307, %cst_135 [1] : vector<16x256xf32> to vector<16xf32>
    %309 = vector.shape_cast %308 : vector<16xf32> to vector<16x1xf32>
    %cst_136 = arith.constant 2.560000e+02 : f32
    %310 = vector.broadcast %cst_136 : f32 to vector<16x1xf32>
    %311 = arith.divf %309, %310 : vector<16x1xf32>
    %cst_137 = arith.constant 9.99999996E-13 : f32
    %312 = vector.broadcast %cst_137 : f32 to vector<16x1xf32>
    %313 = arith.addf %311, %312 : vector<16x1xf32>
    %314 = math.rsqrt %313 : vector<16x1xf32>
    %315 = vector.broadcast %314 : vector<16x1xf32> to vector<16x256xf32>
    %316 = arith.mulf %306, %315 : vector<16x256xf32>
    %317 = vector.broadcast %298 : vector<1x256xf32> to vector<16x256xf32>
    %318 = arith.mulf %316, %317 : vector<16x256xf32>
    %319 = vector.broadcast %300 : vector<1x256xf32> to vector<16x256xf32>
    %320 = arith.addf %318, %319 : vector<16x256xf32>
    %321 = vector.extract_strided_slice %320 {offsets = [0, 0], sizes = [1, 256], strides = [1, 1]} : vector<16x256xf32> to vector<1x256xf32>
    %322 = vector.extract_strided_slice %320 {offsets = [8, 0], sizes = [1, 256], strides = [1, 1]} : vector<16x256xf32> to vector<1x256xf32>
    %323 = tpu.concatenate %321, %322 in 0 : vector<1x256xf32>, vector<1x256xf32> -> vector<2x256xf32>
    %324 = arith.truncf %323 : vector<2x256xf32> to vector<2x256xbf16>
    %c0_138 = arith.constant 0 : index
    %c0_139 = arith.constant 0 : index
    %325 = vector.load %arg16[%c0_138, %c0_139] : memref<256x256xbf16, #tpu.memory_space<vmem>>, vector<256x256xbf16>
    %cst_140 = arith.constant dense<0.000000e+00> : vector<2x256xf32>
    %326 = tpu.matmul %324, %325, %cst_140 {dimension_numbers = #tpu.dot_dimension_numbers<[1], [0], [0], [1], [0, 0, 1, 1], [], []>} : vector<2x256xbf16>, vector<256x256xbf16>, vector<2x256xf32> -> vector<2x256xf32>
    %c0_141 = arith.constant 0 : index
    %c0_142 = arith.constant 0 : index
    %327 = vector.load %arg17[%c0_141, %c0_142] : memref<1x256xf32, #tpu.memory_space<vmem>>, vector<1x256xf32>
    %328 = vector.broadcast %327 : vector<1x256xf32> to vector<2x256xf32>
    %329 = arith.addf %326, %328 : vector<2x256xf32>
    %330 = arith.truncf %329 : vector<2x256xf32> to vector<2x256xbf16>
    %c0_143 = arith.constant 0 : index
    %c0_144 = arith.constant 0 : index
    %331 = vector.load %arg18[%c0_143, %c0_144] : memref<256x256xbf16, #tpu.memory_space<vmem>>, vector<256x256xbf16>
    %cst_145 = arith.constant dense<0.000000e+00> : vector<2x256xf32>
    %332 = tpu.matmul %330, %331, %cst_145 {dimension_numbers = #tpu.dot_dimension_numbers<[1], [0], [0], [1], [0, 0, 1, 1], [], []>} : vector<2x256xbf16>, vector<256x256xbf16>, vector<2x256xf32> -> vector<2x256xf32>
    %333 = arith.mulf %332, %329 : vector<2x256xf32>
    %334 = arith.addf %333, %332 : vector<2x256xf32>
    %335 = arith.truncf %334 : vector<2x256xf32> to vector<2x256xbf16>
    %c0_146 = arith.constant 0 : index
    %c0_147 = arith.constant 0 : index
    %336 = vector.load %arg18[%c0_146, %c0_147] : memref<256x256xbf16, #tpu.memory_space<vmem>>, vector<256x256xbf16>
    %cst_148 = arith.constant dense<0.000000e+00> : vector<2x256xf32>
    %337 = tpu.matmul %335, %336, %cst_148 {dimension_numbers = #tpu.dot_dimension_numbers<[1], [0], [0], [1], [0, 0, 1, 1], [], []>} : vector<2x256xbf16>, vector<256x256xbf16>, vector<2x256xf32> -> vector<2x256xf32>
    %338 = arith.mulf %337, %334 : vector<2x256xf32>
    %339 = arith.addf %338, %337 : vector<2x256xf32>
    %340 = arith.truncf %339 : vector<2x256xf32> to vector<2x256xbf16>
    %c0_149 = arith.constant 0 : index
    %c0_150 = arith.constant 0 : index
    %341 = vector.load %arg18[%c0_149, %c0_150] : memref<256x256xbf16, #tpu.memory_space<vmem>>, vector<256x256xbf16>
    %cst_151 = arith.constant dense<0.000000e+00> : vector<2x256xf32>
    %342 = tpu.matmul %340, %341, %cst_151 {dimension_numbers = #tpu.dot_dimension_numbers<[1], [0], [0], [1], [0, 0, 1, 1], [], []>} : vector<2x256xbf16>, vector<256x256xbf16>, vector<2x256xf32> -> vector<2x256xf32>
    %343 = arith.mulf %342, %339 : vector<2x256xf32>
    %344 = arith.addf %343, %342 : vector<2x256xf32>
    %345 = arith.truncf %344 : vector<2x256xf32> to vector<2x256xbf16>
    %c0_152 = arith.constant 0 : index
    %c0_153 = arith.constant 0 : index
    %346 = vector.load %arg19[%c0_152, %c0_153] : memref<256x128xbf16, #tpu.memory_space<vmem>>, vector<256x128xbf16>
    %cst_154 = arith.constant dense<0.000000e+00> : vector<2x128xf32>
    %347 = tpu.matmul %345, %346, %cst_154 {dimension_numbers = #tpu.dot_dimension_numbers<[1], [0], [0], [1], [0, 0, 1, 1], [], []>} : vector<2x256xbf16>, vector<256x128xbf16>, vector<2x128xf32> -> vector<2x128xf32>
    %c0_155 = arith.constant 0 : index
    %c0_156 = arith.constant 0 : index
    %348 = vector.load %arg20[%c0_155, %c0_156] : memref<2x128xf32, #tpu.memory_space<vmem>>, vector<2x128xf32>
    tpu.vector_store %arg20[%c0_155, %c0_156], %347 {strides = array<i32>} : memref<2x128xf32, #tpu.memory_space<vmem>>, vector<2x128xf32>,
    return
  }
}

</mosaic_0001>

<bundles_post_ra>
// kernel: tpu_custom_call.1
= control target key start
LH: loop header
LB: loop body
LE: loop exit
PB: predicated region body
PF: predicated region fallthrough
CT: control target
= control target key end

     0   :  { %s9404_s0 = inlined_call_operand.hbm [shape: f32[16,256], index: 0, kind: input, shape index: {}]   ;;  %s9405_s1 = inlined_call_operand.hbm [shape: f32[2,8], index: 1, kind: input, shape index: {}]   ;;  %s9406_s2 = inlined_call_operand.hbm [shape: f32[1,256], index: 2, kind: input, shape index: {}]   ;;  %s9407_s3 = inlined_call_operand.hbm [shape: f32[1,256], index: 3, kind: input, shape index: {}]   ;;  %s9408_s4 = inlined_call_operand.hbm [shape: bf16[2,256,768], index: 4, kind: input, shape index: {}]   ;;  %s9409_s5 = inlined_call_operand.vmem [shape: f32[2,1,768], index: 5, kind: input, shape index: {}]   ;;  %s9410_s6 = inlined_call_operand.hbm [shape: bf16[2,256,256], index: 6, kind: input, shape index: {}]   ;;  %s9411_s7 = inlined_call_operand.vmem [shape: f32[2,1,256], index: 7, kind: input, shape index: {}]   ;;  %s9412_s8 = inlined_call_operand.vmem [shape: f32[2,1,256], index: 8, kind: input, shape index: {}]   ;;  %s9413_s9 = inlined_call_operand.vmem [shape: f32[2,1,256], index: 9, kind: input, shape index: {}]   ;;  %s9414_s10 = inlined_call_operand.hbm [shape: bf16[2,256,512], index: 10, kind: input, shape index: {}]   ;;  %s9415_s11 = inlined_call_operand.vmem [shape: f32[2,1,512], index: 11, kind: input, shape index: {}]   ;;  %s9416_s12 = inlined_call_operand.hbm [shape: bf16[2,512,256], index: 12, kind: input, shape index: {}]   ;;  %s9417_s13 = inlined_call_operand.vmem [shape: f32[2,1,256], index: 13, kind: input, shape index: {}]   ;;  %s9418_s14 = inlined_call_operand.vmem [shape: f32[2,1,256], index: 14, kind: input, shape index: {}]   ;;  %s9419_s15 = inlined_call_operand.vmem [shape: f32[2,1,256], index: 15, kind: input, shape index: {}]   ;;  %s9420_s16 = inlined_call_operand.hbm [shape: bf16[256,256], index: 16, kind: input, shape index: {}]   ;;  %s9421_s17 = inlined_call_operand.vmem [shape: f32[1,256], index: 17, kind: input, shape index: {}]   ;;  %s9422_s18 = inlined_call_operand.hbm [shape: bf16[256,256], index: 18, kind: input, shape index: {}]   ;;  %s9423_s19 = inlined_call_operand.hbm [shape: bf16[256,128], index: 19, kind: input, shape index: {}]   ;;  %s9424_s20 = inlined_call_operand.hbm [shape: f32[2,128], index: 20, kind: output, shape index: {}]  }
   0x1   :  { %9433 = sst [smem:[#allocation28_spill]] %s9404_s0 }
   0x2   :  { %9434 = sst [smem:[#allocation29_spill]] %s9405_s1 }
   0x3   :  { %9435 = sst [smem:[#allocation30_spill]] %s9406_s2 }
   0x4   :  { %9436 = sst [smem:[#allocation31_spill]] %s9407_s3 }
   0x5   :  { %9437 = sst [smem:[#allocation32_spill]] %s9408_s4 }
   0x6   :  { %9438 = sst [smem:[#allocation33_spill]] %s9424_s20 }
   0x7   :  { %25 = vsyncpa [#allocation3], 0 }
   0x8   :  { %26 = vsyncpa [#allocation6], 0 }
   0x9   :  { %27 = vsyncpa [#allocation9], 0 }
   0xa   :  { %28 = vsyncpa [#allocation12], 0 }
   0xb   :  { %29 = vsyncpa [#allocation15], 0 }
   0xc   :  { %30 = vsyncpa [#allocation18], 0 }
   0xd   :  { %31 = vsyncpa [#allocation4], 0  ;;  %s8315_s1 = smov [#allocation5]   ;;  %s8316_s23 = smov [#allocation8]  }
   0xe   :  { %s50_s22 = sshll.u32 %s8315_s1, 4  ;;  %s70_s24 = sshll.u32 %s8316_s23, 4  ;;  %s51_s22 = int_to_ptr.vmem [resolvable:$true] %s50_s22  ;;  %s71_s24 = int_to_ptr.vmem [resolvable:$true] %s70_s24 }
   0xf   :  { %s9439_s3 = sld [smem:[#allocation29_spill]] }
  0x15   :  { %s8037_s26 = scalar_lea.hbm %s9439_s3, 32 }
  0x16   :  { %p8038_p0 = scmp.ne.s32.totalorder %s9439_s3, %s8037_s26  ;;  %p8041_p1 = scmp.lt.u32.totalorder %s8037_s26, %s9439_s3 }
  0x18   :  { %p8043_p2 = pnand %p8041_p1, %p8038_p0 }
  0x1a   :  { %8046 = shalt.err (!%p8043_p2)
}
  0x1b   :  { %s8047_s30 = scalar_lea.vmem %s51_s22, 32  ;;  %p8052_p4 = scmp.lt.s32.totalorder %s51_s22, %s51_s22 }
  0x1c   :  { %p8048_p3 = scmp.ne.s32.totalorder %s51_s22, %s8047_s30  ;;  %p8053_p5 = scmp.lt.s32.totalorder %s8047_s30, %s8047_s30 }
  0x1e   :  { %p8054_p6 = por %p8053_p5, %p8052_p4 }
  0x20   :  { %p8055_p7 = pnand %p8054_p6, %p8048_p3 }
  0x22   :  { %8058 = shalt.err (!%p8055_p7)
}
  0x23   :  { %53 = dma.hbm_to_vmem [thread:$0]  %s9439_s3, 32, %s51_s22, [#allocation6]  }
  0x24   :  { %s9440_s2 = sld [smem:[#allocation31_spill]] }
  0x2a   :  { %s8059_s25 = scalar_lea.hbm %s9440_s2, 32 }
  0x2b   :  { %p8060_p8 = scmp.ne.s32.totalorder %s9440_s2, %s8059_s25  ;;  %p8063_p9 = scmp.lt.u32.totalorder %s8059_s25, %s9440_s2 }
  0x2d   :  { %p8065_p10 = pnand %p8063_p9, %p8060_p8 }
  0x2f   :  { %8068 = shalt.err (!%p8065_p10)
}
  0x30   :  { %s8069_s29 = scalar_lea.vmem %s71_s24, 32  ;;  %p8074_p12 = scmp.lt.s32.totalorder %s71_s24, %s71_s24 }
  0x31   :  { %p8070_p11 = scmp.ne.s32.totalorder %s71_s24, %s8069_s29  ;;  %p8075_p13 = scmp.lt.s32.totalorder %s8069_s29, %s8069_s29 }
  0x33   :  { %p8076_p0 = por %p8075_p13, %p8074_p12 }
  0x35   :  { %p8077_p1 = pnand %p8076_p0, %p8070_p11 }
  0x37   :  { %8080 = shalt.err (!%p8077_p1)
}
  0x38   :  { %73 = dma.hbm_to_vmem [thread:$0]  %s9440_s2, 32, %s71_s24, [#allocation9]  }
  0x39   :  { %s8317_s30 = smov [#allocation11]   ;;  %s8081_s23 = scalar_lea.hbm %s9410_s6, 8192 }
  0x3a   :  { %s93_s0 = sshll.u32 %s8317_s30, 4  ;;  %p8082_p2 = scmp.ne.s32.totalorder %s9410_s6, %s8081_s23  ;;  %s94_s0 = int_to_ptr.vmem [resolvable:$true] %s93_s0 }
  0x3b   :  { %p8085_p3 = scmp.lt.u32.totalorder %s8081_s23, %s9410_s6 }
  0x3d   :  { %p8087_p4 = pnand %p8085_p3, %p8082_p2 }
  0x3f   :  { %8090 = shalt.err (!%p8087_p4)
}
  0x40   :  { %s8091_s4 = scalar_lea.vmem %s94_s0, 8192  ;;  %p8096_p6 = scmp.lt.s32.totalorder %s94_s0, %s94_s0 }
  0x41   :  { %p8092_p5 = scmp.ne.s32.totalorder %s94_s0, %s8091_s4  ;;  %p8097_p7 = scmp.lt.s32.totalorder %s8091_s4, %s8091_s4 }
  0x43   :  { %p8098_p8 = por %p8097_p7, %p8096_p6 }
  0x45   :  { %p8099_p9 = pnand %p8098_p8, %p8092_p5 }
  0x47   :  { %8102 = shalt.err (!%p8099_p9)
}
  0x48   :  { %s9431_s24 = smov 128   ;;  %s9432_s2 = smov 8  }
  0x49   :  { %99 = dma.hbm_to_vmem [thread:$0]  %s9410_s6, 8192, %s94_s0, [#allocation12], %s9431_s24, %s9431_s24, %s9432_s2  }
  0x4a   :  { %s8320_s3 = smov [#allocation14]   ;;  %s8321_s21 = smov [#allocation17]  }
  0x4b   :  { %s125_s30 = sshll.u32 %s8320_s3, 4  ;;  %s157_s1 = sshll.u32 %s8321_s21, 4  ;;  %s126_s30 = int_to_ptr.vmem [resolvable:$true] %s125_s30  ;;  %s158_s1 = int_to_ptr.vmem [resolvable:$true] %s157_s1 }
  0x4c   :  { %s8103_s27 = scalar_lea.hbm %s9416_s12, 16384 }
  0x4d   :  { %p8104_p10 = scmp.ne.s32.totalorder %s9416_s12, %s8103_s27  ;;  %p8107_p11 = scmp.lt.u32.totalorder %s8103_s27, %s9416_s12 }
  0x4f   :  { %p8109_p12 = pnand %p8107_p11, %p8104_p10 }
  0x51   :  { %8112 = shalt.err (!%p8109_p12)
}
  0x52   :  { %s8113_s6 = scalar_lea.vmem %s126_s30, 16384  ;;  %p8118_p0 = scmp.lt.s32.totalorder %s126_s30, %s126_s30 }
  0x53   :  { %p8114_p13 = scmp.ne.s32.totalorder %s126_s30, %s8113_s6  ;;  %p8119_p1 = scmp.lt.s32.totalorder %s8113_s6, %s8113_s6 }
  0x55   :  { %p8120_p2 = por %p8119_p1, %p8118_p0 }
  0x57   :  { %p8121_p3 = pnand %p8120_p2, %p8114_p13 }
  0x59   :  { %8124 = shalt.err (!%p8121_p3)
}
  0x5a   :  { %131 = dma.hbm_to_vmem [thread:$0]  %s9416_s12, 16384, %s126_s30, [#allocation15], %s9431_s24, %s9431_s24, %s9432_s2  }
  0x5b   :  { %s8125_s3 = scalar_lea.hbm %s9422_s18, 4096 }
  0x5c   :  { %p8126_p4 = scmp.ne.s32.totalorder %s9422_s18, %s8125_s3  ;;  %p8129_p5 = scmp.lt.u32.totalorder %s8125_s3, %s9422_s18 }
  0x5e   :  { %p8131_p6 = pnand %p8129_p5, %p8126_p4 }
  0x60   :  { %8134 = shalt.err (!%p8131_p6)
}
  0x61   :  { %s8135_s28 = scalar_lea.vmem %s158_s1, 4096  ;;  %p8140_p8 = scmp.lt.s32.totalorder %s158_s1, %s158_s1 }
  0x62   :  { %p8136_p7 = scmp.ne.s32.totalorder %s158_s1, %s8135_s28  ;;  %p8141_p9 = scmp.lt.s32.totalorder %s8135_s28, %s8135_s28 }
  0x64   :  { %p8142_p10 = por %p8141_p9, %p8140_p8 }
  0x66   :  { %p8143_p11 = pnand %p8142_p10, %p8136_p7 }
  0x68   :  { %8146 = shalt.err (!%p8143_p11)
}
  0x69   :  { %163 = dma.hbm_to_vmem [thread:$0]  %s9422_s18, 4096, %s158_s1, [#allocation18], %s9431_s24, %s9431_s24, %s9432_s2  }
  0x6a   :  { %s8322_s26 = smov [#allocation2]   ;;  %s9441_s29 = sld [smem:[#allocation28_spill]] }
  0x6b   :  { %s37_s4 = sshll.u32 %s8322_s26, 4  ;;  %s38_s4 = int_to_ptr.vmem [resolvable:$true] %s37_s4 }
  0x70   :  { %s8147_s22 = scalar_lea.hbm %s9441_s29, 512 }
  0x71   :  { %p8148_p12 = scmp.ne.s32.totalorder %s9441_s29, %s8147_s22  ;;  %p8151_p13 = scmp.lt.u32.totalorder %s8147_s22, %s9441_s29 }
  0x73   :  { %p8153_p0 = pnand %p8151_p13, %p8148_p12 }
  0x75   :  { %8156 = shalt.err (!%p8153_p0)
}
  0x76   :  { %s8157_s25 = scalar_lea.vmem %s38_s4, 512  ;;  %p8162_p2 = scmp.lt.s32.totalorder %s38_s4, %s38_s4 }
  0x77   :  { %p8158_p1 = scmp.ne.s32.totalorder %s38_s4, %s8157_s25  ;;  %p8163_p3 = scmp.lt.s32.totalorder %s8157_s25, %s8157_s25 }
  0x79   :  { %p8164_p4 = por %p8163_p3, %p8162_p2 }
  0x7b   :  { %p8165_p5 = pnand %p8164_p4, %p8158_p1 }
  0x7d   :  { %8168 = shalt.err (!%p8165_p5)
}
  0x7e   :  { %s8323_s18 = smov 256   ;;  %s8324_s1 = smov 16  }
  0x7f   :  { %43 = dma.hbm_to_vmem [thread:$0]  %s9441_s29, 512, %s38_s4, [#allocation3], %s8323_s18, %s8323_s18, %s8324_s1  }
  0x80   :  { %s8325_s12 = smov [#allocation7]   ;;  %s8326_s26 = smov [#allocation10]  }
  0x81   :  { %s60_s30 = sshll.u32 %s8325_s12, 4  ;;  %s79_s6 = sshll.u32 %s8326_s26, 4  ;;  %s61_s30 = int_to_ptr.vmem [resolvable:$true] %s60_s30  ;;  %s8527_s6 = int_to_ptr.vmem [resolvable:$true] %s79_s6 }
  0x82   :  { %s9442_s20 = sld [smem:[#allocation30_spill]] }
  0x88   :  { %s8169_s3 = scalar_lea.hbm %s9442_s20, 32 }
  0x89   :  { %p8170_p6 = scmp.ne.s32.totalorder %s9442_s20, %s8169_s3  ;;  %p8173_p7 = scmp.lt.u32.totalorder %s8169_s3, %s9442_s20 }
  0x8b   :  { %p8175_p8 = pnand %p8173_p7, %p8170_p6 }
  0x8d   :  { %8178 = shalt.err (!%p8175_p8)
}
  0x8e   :  { %s8179_s4 = scalar_lea.vmem %s61_s30, 32  ;;  %p8184_p10 = scmp.lt.s32.totalorder %s61_s30, %s61_s30 }
  0x8f   :  { %p8180_p9 = scmp.ne.s32.totalorder %s61_s30, %s8179_s4  ;;  %p8185_p11 = scmp.lt.s32.totalorder %s8179_s4, %s8179_s4 }
  0x91   :  { %p8186_p12 = por %p8185_p11, %p8184_p10 }
  0x93   :  { %p8187_p13 = pnand %p8186_p12, %p8180_p9 }
  0x95   :  { %8190 = shalt.err (!%p8187_p13)
}
  0x96   :  { %63 = dma.hbm_to_vmem [thread:$0]  %s9442_s20, 32, %s61_s30, [#allocation6]  }
  0x97   :  { %s9443_s26 = sld [smem:[#allocation32_spill]] }
  0x9d   :  { %s8191_s0 = scalar_lea.hbm %s9443_s26, 24576 }
  0x9e   :  { %p8192_p0 = scmp.ne.s32.totalorder %s9443_s26, %s8191_s0  ;;  %p8195_p1 = scmp.lt.u32.totalorder %s8191_s0, %s9443_s26 }
  0xa0   :  { %p8197_p2 = pnand %p8195_p1, %p8192_p0 }
  0xa2   :  { %8200 = shalt.err (!%p8197_p2)
}
  0xa3   :  { %s8201_s23 = scalar_lea.vmem %s8527_s6, 24576  ;;  %p8206_p4 = scmp.lt.s32.totalorder %s8527_s6, %s8527_s6 }
  0xa4   :  { %p8202_p3 = scmp.ne.s32.totalorder %s8527_s6, %s8201_s23  ;;  %p8207_p5 = scmp.lt.s32.totalorder %s8201_s23, %s8201_s23 }
  0xa6   :  { %p8208_p6 = por %p8207_p5, %p8206_p4 }
  0xa8   :  { %p8209_p7 = pnand %p8208_p6, %p8202_p3 }
  0xaa   :  { %8212 = shalt.err (!%p8209_p7)
}
  0xab   :  { %s8327_s30 = smov 384   ;;  %s8328_s20 = smov 24  }
  0xac   :  { %85 = dma.hbm_to_vmem [thread:$0]  %s9443_s26, 24576, %s8527_s6, [#allocation9], %s8327_s30, %s8327_s30, %s8328_s20  }
  0xad   :  { %s8329_s29 = smov [#allocation13]   ;;  %s8330_s28 = smov [#allocation16]  }
  0xae   :  { %s111_s27 = sshll.u32 %s8329_s29, 4  ;;  %s143_s12 = sshll.u32 %s8330_s28, 4  ;;  %s112_s27 = int_to_ptr.vmem [resolvable:$true] %s111_s27  ;;  %s8558_s12 = int_to_ptr.vmem [resolvable:$true] %s143_s12 }
  0xaf   :  { %s8213_s24 = scalar_lea.hbm %s9414_s10, 16384 }
  0xb0   :  { %p8214_p8 = scmp.ne.s32.totalorder %s9414_s10, %s8213_s24  ;;  %p8217_p9 = scmp.lt.u32.totalorder %s8213_s24, %s9414_s10 }
  0xb2   :  { %p8219_p10 = pnand %p8217_p9, %p8214_p8 }
  0xb4   :  { %8222 = shalt.err (!%p8219_p10)
}
  0xb5   :  { %s8223_s6 = scalar_lea.vmem %s112_s27, 16384  ;;  %p8228_p12 = scmp.lt.s32.totalorder %s112_s27, %s112_s27 }
  0xb6   :  { %p8224_p11 = scmp.ne.s32.totalorder %s112_s27, %s8223_s6  ;;  %p8229_p13 = scmp.lt.s32.totalorder %s8223_s6, %s8223_s6 }
  0xb8   :  { %p8230_p0 = por %p8229_p13, %p8228_p12 }
  0xba   :  { %p8231_p1 = pnand %p8230_p0, %p8224_p11 }
  0xbc   :  { %8234 = shalt.err (!%p8231_p1)
}
  0xbd   :  { %117 = dma.hbm_to_vmem [thread:$0]  %s9414_s10, 16384, %s112_s27, [#allocation12], %s8323_s18, %s8323_s18, %s8324_s1  }
  0xbe   :  { %s8235_s2 = scalar_lea.hbm %s9420_s16, 4096 }
  0xbf   :  { %p8236_p2 = scmp.ne.s32.totalorder %s9420_s16, %s8235_s2  ;;  %p8239_p3 = scmp.lt.u32.totalorder %s8235_s2, %s9420_s16 }
  0xc1   :  { %p8241_p4 = pnand %p8239_p3, %p8236_p2 }
  0xc3   :  { %8244 = shalt.err (!%p8241_p4)
}
  0xc4   :  { %s8245_s22 = scalar_lea.vmem %s8558_s12, 4096  ;;  %p8250_p6 = scmp.lt.s32.totalorder %s8558_s12, %s8558_s12 }
  0xc5   :  { %p8246_p5 = scmp.ne.s32.totalorder %s8558_s12, %s8245_s22  ;;  %p8251_p7 = scmp.lt.s32.totalorder %s8245_s22, %s8245_s22 }
  0xc7   :  { %p8252_p8 = por %p8251_p7, %p8250_p6 }
  0xc9   :  { %p8253_p9 = pnand %p8252_p8, %p8246_p5 }
  0xcb   :  { %8256 = shalt.err (!%p8253_p9)
}
  0xcc   :  { %s9444_s10 = smov 8   ;;  %s9445_s18 = smov 128  }
  0xcd   :  { %149 = dma.hbm_to_vmem [thread:$0]  %s9420_s16, 4096, %s8558_s12, [#allocation15], %s9445_s18, %s9445_s18, %s9444_s10  }
  0xce   :  { %s8331_s24 = smov [#allocation19]   ;;  %s8257_s6 = scalar_lea.hbm %s9423_s19, 2048 }
  0xcf   :  { %s169_s3 = sshll.u32 %s8331_s24, 4  ;;  %p8258_p10 = scmp.ne.s32.totalorder %s9423_s19, %s8257_s6  ;;  %s170_s3 = int_to_ptr.vmem [resolvable:$true] %s169_s3 }
  0xd0   :  { %p8261_p11 = scmp.lt.u32.totalorder %s8257_s6, %s9423_s19 }
  0xd2   :  { %p8263_p12 = pnand %p8261_p11, %p8258_p10 }
  0xd4   :  { %8266 = shalt.err (!%p8263_p12)
}
  0xd5   :  { %s8267_s2 = scalar_lea.vmem %s170_s3, 2048  ;;  %p8272_p0 = scmp.lt.s32.totalorder %s170_s3, %s170_s3 }
  0xd6   :  { %p8268_p13 = scmp.ne.s32.totalorder %s170_s3, %s8267_s2  ;;  %p8273_p1 = scmp.lt.s32.totalorder %s8267_s2, %s8267_s2 }
  0xd8   :  { %p8274_p2 = por %p8273_p1, %p8272_p0 }
  0xda   :  { %p8275_p3 = pnand %p8274_p2, %p8268_p13 }
  0xdc   :  { %8278 = shalt.err (!%p8275_p3)
}
  0xdd   :  { %s8332_s16 = smov 64   ;;  %s8333_s12 = smov 4  }
  0xde   :  { %175 = dma.hbm_to_vmem [thread:$0]  %s9423_s19, 2048, %s170_s3, [#allocation18], %s8332_s16, %s8332_s16, %s8333_s12  }
  0xdf   :  { %8301 = dma.done.wait [#allocation3], 512  }
  0xe0   :  { %8302 = vsyncadd [#allocation3], 4294966784 }
  0xe1   :  { %8303 = dma.done.wait [#allocation6], 64  }
  0xe2   :  { %8304 = vsyncadd [#allocation6], 4294967232 }
  0xe3   :  { %8305 = dma.done.wait [#allocation9], 24608  }
  0xe4   :  { %8306 = vsyncadd [#allocation9], 4294942688 }
  0xe5   :  { %8307 = dma.done.wait [#allocation12], 24576  }
  0xe6   :  { %8308 = vsyncadd [#allocation12], 4294942720 }
  0xe7   :  { %8309 = dma.done.wait [#allocation15], 20480  }
  0xe8   :  { %8310 = vsyncadd [#allocation15], 4294946816 }
  0xe9   :  { %8311 = dma.done.wait [#allocation18], 6144  }
  0xea   :  { %8312 = vsyncadd [#allocation18], 4294961152  ;;  %v8607_v0 = vld [vmem:[#allocation2] sm:$0xff]  ;;  %v8609_v1 = vld [vmem:[#allocation2 + $0x8] sm:$0xff]  ;;  %vm8335_vm0 = vmmov 0   ;;  %vm1168_vm1 = vcmask 1043456  }
  0xeb   :  { %v8611_v2 = vld [vmem:[#allocation2 + $0x10] sm:$0xff]  ;;  %v216_v3 = vadd.f32 %v8609_v1, %v8607_v0  ;;  %v8615_v4 = vld [vmem:[#allocation2 + $0x18] sm:$0xff]  ;;  %v7073_v6 = vld [vmem:[#allocation10 + $0x4] ss:$24 sps:$4 sm:$0xff]   ;;  %vm1138_vm2 = vcmask 64512   ;;  %vm5501_vm3 = vcmask 1040384  }
  0xec   :  { %v219_v5 = vadd.f32 %v8615_v4, %v8611_v2  ;;  %v7075_v7 = vld [vmem:[#allocation10] ss:$24 sps:$4 sm:$0xff]   ;;  %v7076_v8 = vld [vmem:[#allocation10 + $0xc] ss:$24 sps:$4 sm:$0xff]   ;;  %913 = vmatprep.subr.bf16.mxu0 %v7073_v6  ;;  %v7082_v11 = vld [vmem:[#allocation10 + $0x3c] ss:$24 sps:$4 sm:$0xff]  }
  0xed   :  { %217 = vadd.xlane.f32.xlu0 %v216_v3  ;;  %v7078_v9 = vld [vmem:[#allocation10 + $0x8] ss:$24 sps:$4 sm:$0xff]   ;;  %v7079_v10 = vld [vmem:[#allocation10 + $0x34] ss:$24 sps:$4 sm:$0xff]   ;;  %956 = vmatprep.subr.bf16.mxu1 %v7076_v8  ;;  %v7084_v13 = vld [vmem:[#allocation10 + $0x38] ss:$24 sps:$4 sm:$0xff]  }
  0xee   :  { %914 = vmatpush1.bf16.msra.mxu0 %v7075_v7  ;;  %957 = vmatpush1.bf16.msra.mxu1 %v7078_v9  ;;  %v7081_v12 = vld [vmem:[#allocation10 + $0x30] ss:$24 sps:$4 sm:$0xff]   ;;  %v7085_v14 = vld [vmem:[#allocation10 + $0x64] ss:$24 sps:$4 sm:$0xff]   ;;  %v7087_v16 = vld [vmem:[#allocation10 + $0x60] ss:$24 sps:$4 sm:$0xff]  }
  0xef   :  { %915 = vmatprep.subr.bf16.mxu0 %v7079_v10  ;;  %958 = vmatprep.subr.bf16.mxu1 %v7082_v11  ;;  %v7088_v15 = vld [vmem:[#allocation10 + $0x6c] ss:$24 sps:$4 sm:$0xff]   ;;  %v7090_v17 = vld [vmem:[#allocation10 + $0x68] ss:$24 sps:$4 sm:$0xff]   ;;  %v7094_v19 = vld [vmem:[#allocation10 + $0x9c] ss:$24 sps:$4 sm:$0xff]  }
  0xf0   :  { %v7091_v18 = vld [vmem:[#allocation10 + $0x94] ss:$24 sps:$4 sm:$0xff]   ;;  %v7093_v20 = vld [vmem:[#allocation10 + $0x90] ss:$24 sps:$4 sm:$0xff]   ;;  %v7097_v22 = vld [vmem:[#allocation10 + $0xc4] ss:$24 sps:$4 sm:$0xff]  }
  0xf1   :  { %220 = vadd.xlane.f32.xlu0 %v219_v5  ;;  %v7096_v21 = vld [vmem:[#allocation10 + $0x98] ss:$24 sps:$4 sm:$0xff]   ;;  %v7100_v23 = vld [vmem:[#allocation10 + $0xcc] ss:$24 sps:$4 sm:$0xff]   ;;  %v7102_v25 = vld [vmem:[#allocation10 + $0xc8] ss:$24 sps:$4 sm:$0xff]  }
  0xf2   :  { %916 = vmatpush1.bf16.msra.mxu0 %v7081_v12  ;;  %959 = vmatpush1.bf16.msra.mxu1 %v7084_v13  ;;  %v7099_v24 = vld [vmem:[#allocation10 + $0xc0] ss:$24 sps:$4 sm:$0xff]   ;;  %v7103_v26 = vld [vmem:[#allocation10 + $0xf4] ss:$24 sps:$4 sm:$0xff]   ;;  %v7105_v28 = vld [vmem:[#allocation10 + $0xf0] ss:$24 sps:$4 sm:$0xff]  }
  0xf3   :  { %917 = vmatprep.subr.bf16.mxu0 %v7085_v14  ;;  %960 = vmatprep.subr.bf16.mxu1 %v7088_v15  ;;  %v7106_v27 = vld [vmem:[#allocation10 + $0xfc] ss:$24 sps:$4 sm:$0xff]   ;;  %v7108_v29 = vld [vmem:[#allocation10 + $0xf8] ss:$24 sps:$4 sm:$0xff]   ;;  %v7112_v31 = vld [vmem:[#allocation10 + $0x12c] ss:$24 sps:$4 sm:$0xff]  }
  0xf4   :  { %v7109_v30 = vld [vmem:[#allocation10 + $0x124] ss:$24 sps:$4 sm:$0xff]   ;;  %v7111_v32 = vld [vmem:[#allocation10 + $0x120] ss:$24 sps:$4 sm:$0xff]   ;;  %v7115_v34 = vld [vmem:[#allocation10 + $0x154] ss:$24 sps:$4 sm:$0xff]  }
  0xf5   :  { %v7114_v33 = vld [vmem:[#allocation10 + $0x128] ss:$24 sps:$4 sm:$0xff]   ;;  %v7118_v35 = vld [vmem:[#allocation10 + $0x15c] ss:$24 sps:$4 sm:$0xff]   ;;  %v7120_v37 = vld [vmem:[#allocation10 + $0x158] ss:$24 sps:$4 sm:$0xff]  }
  0xf6   :  { %918 = vmatpush1.bf16.msra.mxu0 %v7087_v16  ;;  %961 = vmatpush1.bf16.msra.mxu1 %v7090_v17  ;;  %v7117_v36 = vld [vmem:[#allocation10 + $0x150] ss:$24 sps:$4 sm:$0xff]   ;;  %v7121_v38 = vld [vmem:[#allocation10 + $0x184] ss:$24 sps:$4 sm:$0xff]   ;;  %v7123_v40 = vld [vmem:[#allocation10 + $0x180] ss:$24 sps:$4 sm:$0xff]  }
  0xf7   :  { %919 = vmatprep.subr.bf16.mxu0 %v7091_v18  ;;  %962 = vmatprep.subr.bf16.mxu1 %v7094_v19  ;;  %v7124_v39 = vld [vmem:[#allocation10 + $0x18c] ss:$24 sps:$4 sm:$0xff]   ;;  %v7126_v41 = vld [vmem:[#allocation10 + $0x188] ss:$24 sps:$4 sm:$0xff]   ;;  %v7130_v58 = vld [vmem:[#allocation10 + $0x1bc] ss:$24 sps:$4 sm:$0xff]  }
  0xf8   :  { %v7127_v42 = vld [vmem:[#allocation10 + $0x1b4] ss:$24 sps:$4 sm:$0xff]   ;;  %v7129_v57 = vld [vmem:[#allocation10 + $0x1b0] ss:$24 sps:$4 sm:$0xff]   ;;  %v7133_v60 = vld [vmem:[#allocation10 + $0x1e4] ss:$24 sps:$4 sm:$0xff]  }
  0xf9   :  { %v7132_v59 = vld [vmem:[#allocation10 + $0x1b8] ss:$24 sps:$4 sm:$0xff]   ;;  %v7136_v62 = vld [vmem:[#allocation10 + $0x1ec] ss:$24 sps:$4 sm:$0xff]   ;;  %v7138_v63 = vld [vmem:[#allocation10 + $0x1e8] ss:$24 sps:$4 sm:$0xff]  }
  0xfa   :  { %920 = vmatpush1.bf16.msra.mxu0 %v7093_v20  ;;  %963 = vmatpush1.bf16.msra.mxu1 %v7096_v21  ;;  %v7135_v61 = vld [vmem:[#allocation10 + $0x1e0] ss:$24 sps:$4 sm:$0xff]   ;;  %v7148_v6 = vld [vmem:[#allocation10 + $0x24c] ss:$24 sps:$4 sm:$0xff]   ;;  %v7154_v9 = vld [vmem:[#allocation10 + $0x27c] ss:$24 sps:$4 sm:$0xff]  }
  0xfb   :  { %921 = vmatprep.subr.bf16.mxu0 %v7097_v22  ;;  %964 = vmatprep.subr.bf16.mxu1 %v7100_v23  ;;  %v7144_v3 = vld [vmem:[#allocation10 + $0x218] ss:$24 sps:$4 sm:$0xff]   ;;  %v7150_v7 = vld [vmem:[#allocation10 + $0x248] ss:$24 sps:$4 sm:$0xff]   ;;  %v7151_v8 = vld [vmem:[#allocation10 + $0x274] ss:$24 sps:$4 sm:$0xff]  }
  0xfc   :  { %v7147_v5 = vld [vmem:[#allocation10 + $0x240] ss:$24 sps:$4 sm:$0xff]   ;;  %v7153_v10 = vld [vmem:[#allocation10 + $0x270] ss:$24 sps:$4 sm:$0xff]   ;;  %v7157_v12 = vld [vmem:[#allocation10 + $0x2a4] ss:$24 sps:$4 sm:$0xff]  }
  0xfd   :  { %v7156_v11 = vld [vmem:[#allocation10 + $0x278] ss:$24 sps:$4 sm:$0xff]   ;;  %v7160_v13 = vld [vmem:[#allocation10 + $0x2ac] ss:$24 sps:$4 sm:$0xff]   ;;  %v7162_v15 = vld [vmem:[#allocation10 + $0x2a8] ss:$24 sps:$4 sm:$0xff]  }
  0xfe   :  { %922 = vmatpush1.bf16.msra.mxu0 %v7099_v24  ;;  %965 = vmatpush1.bf16.msra.mxu1 %v7102_v25  ;;  %v7159_v14 = vld [vmem:[#allocation10 + $0x2a0] ss:$24 sps:$4 sm:$0xff]   ;;  %v7163_v16 = vld [vmem:[#allocation10 + $0x2d4] ss:$24 sps:$4 sm:$0xff]   ;;  %v7165_v18 = vld [vmem:[#allocation10 + $0x2d0] ss:$24 sps:$4 sm:$0xff]   ;;  %v250_v25 = vlaneseq }
  0xff   :  { %923 = vmatprep.subr.bf16.mxu0 %v7103_v26  ;;  %966 = vmatprep.subr.bf16.mxu1 %v7106_v27  ;;  %v7166_v17 = vld [vmem:[#allocation10 + $0x2dc] ss:$24 sps:$4 sm:$0xff]   ;;  %v7168_v19 = vld [vmem:[#allocation10 + $0x2d8] ss:$24 sps:$4 sm:$0xff]  }
 0x100   :  { %v7171_v20 = vld [vmem:[#allocation10 + $0x14] ss:$24 sps:$4 sm:$0xff]  }
 0x102   :  { %924 = vmatpush1.bf16.msra.mxu0 %v7105_v28  ;;  %967 = vmatpush1.bf16.msra.mxu1 %v7108_v29  ;;  %v8639_v28 = vshrl.u32 %v250_v25, 7 }
 0x103   :  { %925 = vmatprep.subr.bf16.mxu0 %v7109_v30  ;;  %968 = vmatprep.subr.bf16.mxu1 %v7112_v31  ;;  %v214_v31 = vld [vmem:[#allocation7] sm:$0x3] }
 0x104   :  { %v8642_v29 = vsub.s32 1, %v8639_v28  ;;  %v8645_v30 = vsub.s32 0, %v8639_v28 }
 0x106   :  { %926 = vmatpush1.bf16.msra.mxu0 %v7111_v32  ;;  %969 = vmatpush1.bf16.msra.mxu1 %v7114_v33  ;;  %v215_v33 = vld [vmem:[#allocation8] sm:$0x3] }
 0x107   :  { %927 = vmatprep.subr.bf16.mxu0 %v7115_v34  ;;  %970 = vmatprep.subr.bf16.mxu1 %v7118_v35  ;;  %v257_v35 = vrot.slane %v214_v31, %v8642_v29 }
 0x10a   :  { %928 = vmatpush1.bf16.msra.mxu0 %v7117_v36  ;;  %971 = vmatpush1.bf16.msra.mxu1 %v7120_v37  ;;  %v253_v37 = vrot.slane %v214_v31, %v8645_v30 }
 0x10b   :  { %929 = vmatprep.subr.bf16.mxu0 %v7121_v38  ;;  %972 = vmatprep.subr.bf16.mxu1 %v7124_v39  ;;  %v272_v39 = vrot.slane %v215_v33, %v8642_v29 }
 0x10e   :  { %930 = vmatpush1.bf16.msra.mxu0 %v7123_v40  ;;  %973 = vmatpush1.bf16.msra.mxu1 %v7126_v41  ;;  %v268_v40 = vrot.slane %v215_v33, %v8645_v30 }
 0x10f   :  { %931 = vmatprep.subr.bf16.mxu0 %v7127_v42  ;;  %974 = vmatprep.subr.bf16.mxu1 %v7130_v58  ;;  %v7180_v58 = vld [vmem:[#allocation10 + $0xa4] ss:$24 sps:$4 sm:$0xff]  }
 0x112   :  { %932 = vmatpush1.bf16.msra.mxu0 %v7129_v57  ;;  %975 = vmatpush1.bf16.msra.mxu1 %v7132_v59  ;;  %v7175_v57 = vld [vmem:[#allocation10 + $0x70] ss:$24 sps:$4 sm:$0xff]   ;;  %v7178_v59 = vld [vmem:[#allocation10 + $0xa0] ss:$24 sps:$4 sm:$0xff]  }
 0x113   :  { %933 = vmatprep.subr.bf16.mxu0 %v7133_v60  ;;  %976 = vmatprep.subr.bf16.mxu1 %v7136_v62  ;;  %v7183_v60 = vld [vmem:[#allocation10 + $0xd4] ss:$24 sps:$4 sm:$0xff]   ;;  %v7186_v62 = vld [vmem:[#allocation10 + $0x104] ss:$24 sps:$4 sm:$0xff]  }
 0x116   :  { %934 = vmatpush1.bf16.msra.mxu0 %v7135_v61  ;;  %977 = vmatpush1.bf16.msra.mxu1 %v7138_v63  ;;  %v7181_v61 = vld [vmem:[#allocation10 + $0xd0] ss:$24 sps:$4 sm:$0xff]   ;;  %v7184_v63 = vld [vmem:[#allocation10 + $0x100] ss:$24 sps:$4 sm:$0xff]  }
 0x17a   :  { %v218_v43 = vpop.xlane.xlu0 %217 }
 0x17b   :  { %v223_v44 = vmul.f32 0.00390625, %v218_v43 }
 0x17d   :  { %v8620_v45 = vsub.f32 %v8607_v0, %v223_v44  ;;  %v8623_v46 = vsub.f32 %v8609_v1, %v223_v44  ;;  %v7139_v0 = vld [vmem:[#allocation10 + $0x214] ss:$24 sps:$4 sm:$0xff]   ;;  %v7141_v1 = vld [vmem:[#allocation10 + $0x210] ss:$24 sps:$4 sm:$0xff]  }
 0x17e   :  { %v221_v47 = vpop.xlane.xlu0 %220  ;;  %935 = vmatprep.subr.bf16.mxu0 %v7139_v0  ;;  %v7189_v0 = vld [vmem:[#allocation10 + $0x134] ss:$24 sps:$4 sm:$0xff]  }
 0x17f   :  { %v224_v48 = vmul.f32 0.00390625, %v221_v47  ;;  %v229_v49 = vmul.f32 %v8620_v45, %v8620_v45  ;;  %v230_v50 = vmul.f32 %v8623_v46, %v8623_v46  ;;  %936 = vmatpush1.bf16.msra.mxu0 %v7141_v1  ;;  %v7187_v1 = vld [vmem:[#allocation10 + $0x130] ss:$24 sps:$4 sm:$0xff]  }
 0x181   :  { %v8630_v51 = vsub.f32 %v8611_v2, %v224_v48  ;;  %v8633_v52 = vsub.f32 %v8615_v4, %v224_v48  ;;  %v233_v53 = vadd.f32 %v230_v50, %v229_v49  ;;  %v7142_v2 = vld [vmem:[#allocation10 + $0x21c] ss:$24 sps:$4 sm:$0xff]  }
 0x182   :  { %978 = vmatprep.subr.bf16.mxu1 %v7142_v2  ;;  %v7145_v4 = vld [vmem:[#allocation10 + $0x244] ss:$24 sps:$4 sm:$0xff]  }
 0x183   :  { %234 = vadd.xlane.f32.xlu1 %v233_v53  ;;  %v231_v54 = vmul.f32 %v8630_v51, %v8630_v51  ;;  %v232_v55 = vmul.f32 %v8633_v52, %v8633_v52  ;;  %979 = vmatpush1.bf16.msra.mxu1 %v7144_v3  ;;  %v7192_v2 = vld [vmem:[#allocation10 + $0x164] ss:$24 sps:$4 sm:$0xff]   ;;  %v7190_v3 = vld [vmem:[#allocation10 + $0x160] ss:$24 sps:$4 sm:$0xff]  }
 0x184   :  { %937 = vmatprep.subr.bf16.mxu0 %v7145_v4  ;;  %980 = vmatprep.subr.bf16.mxu1 %v7148_v6  ;;  %v7195_v4 = vld [vmem:[#allocation10 + $0x194] ss:$24 sps:$4 sm:$0xff]   ;;  %v7198_v6 = vld [vmem:[#allocation10 + $0x1c4] ss:$24 sps:$4 sm:$0xff]  }
 0x185   :  { %v236_v56 = vadd.f32 %v232_v55, %v231_v54  ;;  %938 = vmatpush1.bf16.msra.mxu0 %v7147_v5  ;;  %v7169_v54 = vld [vmem:[#allocation10 + $0x10] ss:$24 sps:$4 sm:$0xff]   ;;  %v7172_v55 = vld [vmem:[#allocation10 + $0x40] ss:$24 sps:$4 sm:$0xff]  }
 0x186   :  { %939 = vmatprep.subr.bf16.mxu0 %v7151_v8  ;;  %v7193_v5 = vld [vmem:[#allocation10 + $0x190] ss:$24 sps:$4 sm:$0xff]   ;;  %v7201_v8 = vld [vmem:[#allocation10 + $0x1f4] ss:$24 sps:$4 sm:$0xff]  }
 0x187   :  { %237 = vadd.xlane.f32.xlu1 %v236_v56  ;;  %981 = vmatpush1.bf16.msra.mxu1 %v7150_v7  ;;  %v7177_v56 = vld [vmem:[#allocation10 + $0x74] ss:$24 sps:$4 sm:$0xff]   ;;  %v7196_v7 = vld [vmem:[#allocation10 + $0x1c0] ss:$24 sps:$4 sm:$0xff]  }
 0x188   :  { %982 = vmatprep.subr.bf16.mxu1 %v7154_v9  ;;  %v7199_v9 = vld [vmem:[#allocation10 + $0x1f0] ss:$24 sps:$4 sm:$0xff]  }
 0x189   :  { %940 = vmatpush1.bf16.msra.mxu0 %v7153_v10  ;;  %v7204_v10 = vld [vmem:[#allocation10 + $0x224] ss:$24 sps:$4 sm:$0xff]  }
 0x18a   :  { %941 = vmatprep.subr.bf16.mxu0 %v7157_v12  ;;  %v7207_v12 = vld [vmem:[#allocation10 + $0x254] ss:$24 sps:$4 sm:$0xff]  }
 0x18b   :  { %983 = vmatpush1.bf16.msra.mxu1 %v7156_v11  ;;  %v7202_v11 = vld [vmem:[#allocation10 + $0x220] ss:$24 sps:$4 sm:$0xff]  }
 0x18c   :  { %984 = vmatprep.subr.bf16.mxu1 %v7160_v13  ;;  %v7205_v13 = vld [vmem:[#allocation10 + $0x250] ss:$24 sps:$4 sm:$0xff]  }
 0x18d   :  { %942 = vmatpush1.bf16.msra.mxu0 %v7159_v14  ;;  %v7210_v14 = vld [vmem:[#allocation10 + $0x284] ss:$24 sps:$4 sm:$0xff]  }
 0x18e   :  { %943 = vmatprep.subr.bf16.mxu0 %v7163_v16  ;;  %v7213_v16 = vld [vmem:[#allocation10 + $0x2b4] ss:$24 sps:$4 sm:$0xff]  }
 0x18f   :  { %985 = vmatpush1.bf16.msra.mxu1 %v7162_v15  ;;  %v7208_v15 = vld [vmem:[#allocation10 + $0x280] ss:$24 sps:$4 sm:$0xff]  }
 0x190   :  { %986 = vmatprep.subr.bf16.mxu1 %v7166_v17  ;;  %v7211_v17 = vld [vmem:[#allocation10 + $0x2b0] ss:$24 sps:$4 sm:$0xff]  }
 0x191   :  { %944 = vmatpush1.bf16.msra.mxu0 %v7165_v18  ;;  %v7216_v18 = vld [vmem:[#allocation10 + $0x2e4] ss:$24 sps:$4 sm:$0xff]  }
 0x192   :  { %999 = vmatprep.subr.bf16.mxu0 %v7171_v20  ;;  %v8334_v20 = vmov 0.0  }
 0x193   :  { %987 = vmatpush1.bf16.msra.mxu1 %v7168_v19  ;;  %v7214_v19 = vld [vmem:[#allocation10 + $0x2e0] ss:$24 sps:$4 sm:$0xff]  }
 0x194   :  { %6938 = vmatprep.subr.bf16.mxu1 %v8334_v20 }
 0x210   :  { %v235_v21 = vpop.xlane.xlu1 %234 }
 0x211   :  { %v239_v22 = vmul.f32 0.00390625, %v235_v21  ;;  %v8676_v21 = vsub.s32 2, %v8639_v28 }
 0x213   :  { %v241_v23 = vadd.f32 1e-12, %v239_v22  ;;  %v8681_v22 = vld [vmem:[%s9409_s5] sm:$0x3f] }
 0x214   :  { %v238_v24 = vpop.xlane.xlu1 %237 }
 0x215   :  { %7953 = vrsqrt.f32 %v241_v23  ;;  %v240_v26 = vmul.f32 0.00390625, %v238_v24  ;;  %v414_v23 = vrot.slane %v8681_v22, %v8676_v21  ;;  %v406_v24 = vrot.slane %v8681_v22, %v8645_v30 }
 0x217   :  { %v242_v27 = vadd.f32 1e-12, %v240_v26 }
 0x219   :  { %7955 = vrsqrt.f32 %v242_v27 }
 0x21f   :  { %v7954_v32 = vpop.eup %7953 }
 0x220   :  { %v246_v34 = vmul.f32 %v7954_v32, %v8623_v46  ;;  %v245_v36 = vmul.f32 %v7954_v32, %v8620_v45 }
 0x222   :  { %v261_v42 = vmul.f32 %v257_v35, %v246_v34  ;;  %v260_v44 = vmul.f32 %v253_v37, %v245_v36 }
 0x223   :  { %v7956_v38 = vpop.eup %7955 }
 0x224   :  { %v248_v41 = vmul.f32 %v7956_v38, %v8633_v52  ;;  %v247_v43 = vmul.f32 %v7956_v38, %v8630_v51  ;;  %v8655_v46 = vadd.f32 %v272_v39, %v261_v42  ;;  %v8659_v45 = vadd.f32 %v268_v40, %v260_v44  ;;  %v7174_v51 = vld [vmem:[#allocation10 + $0x44] ss:$24 sps:$4 sm:$0xff]  }
 0x226   :  { %v263_v47 = vmul.f32 %v257_v35, %v248_v41  ;;  %v262_v48 = vmul.f32 %v253_v37, %v247_v43 }
 0x228   :  { %v8657_v49 = vadd.f32 %v272_v39, %v263_v47  ;;  %v8661_v50 = vadd.f32 %v268_v40, %v262_v48  ;;  %v421_v48 = vsub.s32 4, %v8639_v28 }
 0x22a   :  { %v304_v53 = vpack.c.bf16 %v8657_v49, %v8655_v46  ;;  %v8667_v52 = vpack.c.bf16 %v8661_v50, %v8659_v45 }
 0x22c   :  { %945 = vmatprep.mubr.bf16.mxu0 %v304_v53  ;;  %988 = vmatprep.mubr.bf16.mxu1 %v304_v53 }
 0x22d   :  { %946 = vmatmul.mubr.bf16.vlgmr.msra.gmra.mrb[0].mxu0 %v8667_v52  ;;  %989 = vmatmul.mubr.bf16.vlgmr.msra.gmra.mrb[0].mxu1 %v8667_v52 }
 0x22e   :  { %1000 = vmatpush1.bf16.msra.mxu0 %v7169_v54  ;;  %1031 = vmatprep.mubr.bf16.mxu0 %v304_v53  ;;  %v422_v53 = vrot.slane %v8681_v22, %v421_v48  ;;  %v425_v54 = vsub.s32 5, %v8639_v28 }
 0x22f   :  { %1001 = vmatprep.subr.bf16.mxu0 %v7174_v51  ;;  %6940 = vmatprep.mubr.msk.bf16.mxu1 %vm8335_vm0, %v8334_v20 }
 0x232   :  { %1002 = vmatpush1.bf16.msra.mxu0 %v7172_v55 }
 0x233   :  { %1003 = vmatprep.subr.bf16.mxu0 %v7177_v56  ;;  %v8711_v56 = vrot.slane %v8681_v22, %v425_v54 }
 0x236   :  { %1004 = vmatpush1.bf16.msra.mxu0 %v7175_v57 }
 0x237   :  { %1005 = vmatprep.subr.bf16.mxu0 %v7180_v58 }
 0x23a   :  { %1006 = vmatpush1.bf16.msra.mxu0 %v7178_v59 }
 0x23b   :  { %1007 = vmatprep.subr.bf16.mxu0 %v7183_v60 }
 0x23e   :  { %1008 = vmatpush1.bf16.msra.mxu0 %v7181_v61 }
 0x23f   :  { %1009 = vmatprep.subr.bf16.mxu0 %v7186_v62 }
 0x242   :  { %1010 = vmatpush1.bf16.msra.mxu0 %v7184_v63  ;;  %v8336_v63 = vmov 1966171168  }
 0x243   :  { %1011 = vmatprep.subr.bf16.mxu0 %v7189_v0  ;;  %v290_v0 = vunpack.c.l.s4 %v8336_v63 }
 0x246   :  { %1012 = vmatpush1.bf16.msra.mxu0 %v7187_v1  ;;  %v291_v1 = vunpack.c.0.s8 %v290_v0 }
 0x247   :  { %1013 = vmatprep.subr.bf16.mxu0 %v7192_v2 }
 0x248   :  { %v294_v2 = vsub.s32 %v291_v1, %v8639_v28 }
 0x24a   :  { %1014 = vmatpush1.bf16.msra.mxu0 %v7190_v3  ;;  %v6275_v3 = vld.sshfl [vmem:[#allocation5] sm:$0x11 pattern:$0x75316420] }
 0x24b   :  { %1015 = vmatprep.subr.bf16.mxu0 %v7195_v4  ;;  %v295_v4 = vrot.slane %v6275_v3, %v294_v2 }
 0x24e   :  { %1016 = vmatpush1.bf16.msra.mxu0 %v7193_v5  ;;  %v8720_v5 = vrot.slane %v295_v4, %v8645_v30 }
 0x24f   :  { %1017 = vmatprep.subr.bf16.mxu0 %v7198_v6  ;;  %v288_v6 = vcombine.high %v6275_v3, %v6275_v3 }
 0x252   :  { %1018 = vmatpush1.bf16.msra.mxu0 %v7196_v7 }
 0x253   :  { %1019 = vmatprep.subr.bf16.mxu0 %v7201_v8 }
 0x256   :  { %1020 = vmatpush1.bf16.msra.mxu0 %v7199_v9 }
 0x257   :  { %1021 = vmatprep.subr.bf16.mxu0 %v7204_v10  ;;  %v302_v10 = vrot.slane %v288_v6, %v294_v2 }
 0x25a   :  { %1022 = vmatpush1.bf16.msra.mxu0 %v7202_v11 }
 0x25b   :  { %1023 = vmatprep.subr.bf16.mxu0 %v7207_v12 }
 0x25e   :  { %1024 = vmatpush1.bf16.msra.mxu0 %v7205_v13 }
 0x25f   :  { %1025 = vmatprep.subr.bf16.mxu0 %v7210_v14  ;;  %v8725_v14 = vrot.slane %v302_v10, %v8645_v30 }
 0x262   :  { %1026 = vmatpush1.bf16.msra.mxu0 %v7208_v15 }
 0x263   :  { %1027 = vmatprep.subr.bf16.mxu0 %v7213_v16 }
 0x266   :  { %1028 = vmatpush1.bf16.msra.mxu0 %v7211_v17 }
 0x267   :  { %1029 = vmatprep.subr.bf16.mxu0 %v7216_v18 }
 0x26a   :  { %1030 = vmatpush1.bf16.msra.mxu0 %v7214_v19 }
 0x26d   :  { %1032 = vmatmul.mubr.bf16.vlgmr.msra.gmra.mrb[4].mxu0 %v8667_v52 }
 0x300   :  { %v947_v25 = vpop.f32.mrb[0].mxu0  ;;  %v990_v26 = vpop.f32.mrb[0].mxu1 }
 0x301   :  { %v991_v27 = vadd.f32 %v990_v26, %v414_v23  ;;  %v8687_v31 = vpop.f32.mrb[1].mxu0  ;;  %v8689_v32 = vpop.f32.mrb[1].mxu1  ;;  %v948_v33 = vadd.f32 %v947_v25, %v406_v24 }
 0x302   :  { %v951_v34 = vpop.f32.mrb[2].mxu0  ;;  %v994_v35 = vpop.f32.mrb[2].mxu1 }
 0x303   :  { %v1046_v36 = vpack.c.bf16 %v991_v27, %v991_v27  ;;  %v8691_v37 = vpop.f32.mrb[3].mxu0  ;;  %v8693_v38 = vpop.f32.mrb[3].mxu1  ;;  %v1042_v39 = vmul.f32 0.088388346, %v948_v33  ;;  %v995_v40 = vadd.f32 %v994_v35, %v414_v23  ;;  %v952_v42 = vadd.f32 %v951_v34, %v406_v24 }
 0x305   :  { %6939 = vmatpush3.bf16.xpose.msra.mxu1 %v1046_v36  ;;  %v1044_v41 = vpack.c.bf16 %v1042_v39, %v1042_v39  ;;  %v1047_v43 = vpack.c.bf16 %v995_v40, %v995_v40  ;;  %v1043_v44 = vmul.f32 0.088388346, %v952_v42 }
 0x306   :  { %6944 = vmatprep.subr.bf16.mxu1 %v8334_v20 }
 0x307   :  { %v1045_v47 = vpack.c.bf16 %v1043_v44, %v1043_v44  ;;  %v8732_v44 = vsub.s32 3, %v8639_v28 }
 0x30c   :  { %6941 = vmatmul.mubr.bf16.vlgmr.msra.gmra.mrb[4].mxu1 %v1044_v41 }
 0x30d   :  { %6945 = vmatpush3.bf16.xpose.msra.mxu1 %v1047_v43  ;;  %6946 = vmatprep.mubr.msk.bf16.mxu1 %vm8335_vm0, %v8334_v20 }
 0x30e   :  { %6950 = vmatprep.subr.bf16.mxu1 %v8334_v20 }
 0x314   :  { %6947 = vmatmul.mubr.bf16.vlgmr.msra.gmra.mrb[8].mxu1 %v1045_v47 }
 0x315   :  { %6952 = vmatprep.mubr.msk.bf16.mxu1 %vm8335_vm0, %v8334_v20 }
 0x340   :  { %v1033_v52 = vpop.f32.mrb[4].mxu0 }
 0x341   :  { %v1034_v51 = vadd.f32 %v1033_v52, %v422_v53  ;;  %v8706_v55 = vpop.f32.mrb[5].mxu0 }
 0x342   :  { %v1037_v57 = vpop.f32.mrb[6].mxu0  ;;  %v1036_v6 = vadd.f32 %v8706_v55, %v8711_v56 }
 0x343   :  { %v1163_v58 = vpack.c.bf16 %v1034_v51, %v1034_v51  ;;  %v1038_v59 = vadd.f32 %v1037_v57, %v422_v53  ;;  %v1039_v60 = vpop.f32.mrb[7].mxu0  ;;  %v418_v51 = vrot.slane %v8681_v22, %v8732_v44 }
 0x344   :  { %v8714_v61 = vadd.f32 %v1039_v60, %v8711_v56  ;;  %v410_v60 = vrot.slane %v8681_v22, %v8642_v29 }
 0x345   :  { %v1170_v62 = vsel %vm1168_vm1, %v1163_v58, 0  ;;  %v1164_v47 = vpack.c.bf16 %v1038_v59, %v1038_v59  ;;  %v993_v59 = vadd.f32 %v8689_v32, %v418_v51  ;;  %v997_v3 = vadd.f32 %v8693_v38, %v418_v51 }
 0x346   :  { %6951 = vmatpush3.bf16.msra.mxu1 %v1170_v62  ;;  %v950_v0 = vadd.f32 %v8687_v31, %v410_v60  ;;  %v954_v22 = vadd.f32 %v8691_v37, %v410_v60  ;;  %v7222_v60 = vld [vmem:[#allocation11 + $0x14] ss:$8 sps:$4 sm:$0xff]  }
 0x347   :  { %6956 = vmatprep.subr.bf16.mxu1 %v8334_v20  ;;  %v1216_v57 = vsel %vm1168_vm1, %v1164_v47, 0  ;;  %v1262_v1 = vpack.c.bf16 %v993_v59, %v993_v59  ;;  %v1263_v32 = vpack.c.bf16 %v997_v3, %v997_v3  ;;  %v7220_v59 = vld [vmem:[#allocation11 + $0x10] ss:$8 sps:$4 sm:$0xff]   ;;  %v7229_v3 = vld [vmem:[#allocation11 + $0x40] ss:$8 sps:$4 sm:$0xff]  }
 0x348   :  { %v1258_v2 = vmul.f32 0.088388346, %v950_v0  ;;  %v1259_v31 = vmul.f32 0.088388346, %v954_v22  ;;  %v7228_v0 = vld [vmem:[#allocation11 + $0x34] ss:$8 sps:$4 sm:$0xff]  }
 0x349   :  { %v7232_v22 = vld [vmem:[#allocation11 + $0x50] ss:$8 sps:$4 sm:$0xff]  }
 0x34a   :  { %v1260_v4 = vpack.c.bf16 %v1258_v2, %v1258_v2  ;;  %v7231_v2 = vld [vmem:[#allocation11 + $0x44] ss:$8 sps:$4 sm:$0xff]  }
 0x3df   :  { %v1092_v7 = vpop.f32.mrb[4].mxu1 }
 0x3e0   :  { %v1093_v8 = vadd.f32 %v1092_v7, %v8720_v5  ;;  %v6942_v9 = vpop.f32.mrb[5].mxu1  ;;  %v1368_v7 = vpack.c.bf16 %v1036_v6, %v1036_v6  ;;  %v7235_v6 = vld [vmem:[#allocation11 + $0x60] ss:$8 sps:$4 sm:$0xff]  }
 0x3e1   :  { %v1095_v11 = vpop.f32.mrb[6].mxu1 }
 0x3e2   :  { %v6943_v12 = vpop.f32.mrb[7].mxu1  ;;  %v1139_v13 = vsel %vm1138_vm2, %v1093_v8, -inf  ;;  %v1374_v9 = vsel %vm1168_vm1, %v1368_v7, 0  ;;  %v7238_v7 = vld [vmem:[#allocation11 + $0x70] ss:$8 sps:$4 sm:$0xff]  }
 0x3e3   :  { %1140 = vmax.xlane.f32.xlu0 %v1139_v13 }
 0x3e7   :  { %v1132_v15 = vpop.f32.mrb[8].mxu1 }
 0x3e8   :  { %v1133_v16 = vadd.f32 %v1132_v15, %v8725_v14  ;;  %v6948_v17 = vpop.f32.mrb[9].mxu1 }
 0x3e9   :  { %v1135_v18 = vpop.f32.mrb[10].mxu1 }
 0x3ea   :  { %v6949_v19 = vpop.f32.mrb[11].mxu1  ;;  %v1142_v23 = vsel %vm1138_vm2, %v1133_v16, -inf }
 0x3eb   :  { %1143 = vmax.xlane.f32.xlu1 %v1142_v23 }
 0x470   :  { %v1141_v24 = vpop.xlane.xlu0 %1140 }
 0x471   :  { %v1145_v25 = vsub.f32 %v1093_v8, %v1141_v24  ;;  %v1261_v8 = vpack.c.bf16 %v1259_v31, %v1259_v31  ;;  %v7240_v31 = vld [vmem:[#allocation11 + $0x74] ss:$8 sps:$4 sm:$0xff]  }
 0x473   :  { %v1147_v26 = vmul.f32 1.442695, %v1145_v25 }
 0x475   :  { %7957 = vpow2.f32 %v1147_v26 }
 0x478   :  { %v1144_v27 = vpop.xlane.xlu1 %1143 }
 0x479   :  { %v1146_v33 = vsub.f32 %v1133_v16, %v1144_v27 }
 0x47b   :  { %v1149_v34 = vmul.f32 1.442695, %v1146_v33 }
 0x47d   :  { %7959 = vpow2.f32 %v1149_v34 }
 0x47f   :  { %v7958_v35 = vpop.eup %7957 }
 0x480   :  { %v1151_v36 = vsel %vm1138_vm2, %v7958_v35, 0.0 }
 0x481   :  { %1152 = vadd.xlane.f32.xlu0 %v1151_v36 }
 0x487   :  { %v7960_v39 = vpop.eup %7959 }
 0x488   :  { %v1154_v40 = vsel %vm1138_vm2, %v7960_v39, 0.0 }
 0x489   :  { %1155 = vadd.xlane.f32.xlu1 %v1154_v40 }
 0x50e   :  { %v1153_v41 = vpop.xlane.xlu0 %1152 }
 0x50f   :  { %7961 = vrcp.f32 %v1153_v41 }
 0x516   :  { %v1156_v42 = vpop.xlane.xlu1 %1155 }
 0x517   :  { %7963 = vrcp.f32 %v1156_v42 }
 0x519   :  { %v7962_v43 = vpop.eup %7961 }
 0x51a   :  { %v1158_v53 = vmul.f32 %v7962_v43, %v7958_v35 }
 0x51c   :  { %v1161_v52 = vpack.c.bf16 %v1158_v53, %v1158_v53 }
 0x51e   :  { %6953 = vmatmul.mubr.msk.bf16.vlgmr.msra.gmra.mrb[12].mxu1 %vm1138_vm2, %v1161_v52 }
 0x51f   :  { %6957 = vmatpush3.bf16.msra.mxu1 %v1216_v57  ;;  %6958 = vmatprep.mubr.msk.bf16.mxu1 %vm8335_vm0, %v8334_v20  ;;  %v7217_v57 = vld [vmem:[#allocation11] ss:$8 sps:$4 sm:$0xff]  }
 0x520   :  { %6962 = vmatprep.subr.bf16.mxu1 %v8334_v20 }
 0x521   :  { %v7964_v58 = vpop.eup %7963 }
 0x522   :  { %v1160_v62 = vmul.f32 %v7964_v58, %v7960_v39  ;;  %v7219_v58 = vld [vmem:[#allocation11 + $0x4] ss:$8 sps:$4 sm:$0xff]  }
 0x523   :  { %1668 = vmatprep.subr.bf16.mxu0 %v7219_v58 }
 0x524   :  { %v1162_v63 = vpack.c.bf16 %v1160_v62, %v1160_v62  ;;  %1669 = vmatpush1.bf16.msra.mxu0 %v7217_v57  ;;  %v7225_v62 = vld [vmem:[#allocation11 + $0x24] ss:$8 sps:$4 sm:$0xff]  }
 0x525   :  { %1670 = vmatprep.subr.bf16.mxu0 %v7222_v60 }
 0x526   :  { %6959 = vmatmul.mubr.msk.bf16.vlgmr.msra.gmra.mrb[16].mxu1 %vm1138_vm2, %v1162_v63  ;;  %v7223_v63 = vld [vmem:[#allocation11 + $0x20] ss:$8 sps:$4 sm:$0xff]  }
 0x527   :  { %6964 = vmatprep.mubr.msk.bf16.mxu1 %vm8335_vm0, %v8334_v20 }
 0x528   :  { %6963 = vmatpush3.bf16.xpose.msra.mxu1 %v1262_v1  ;;  %1671 = vmatpush1.bf16.msra.mxu0 %v7220_v59  ;;  %v7226_v1 = vld [vmem:[#allocation11 + $0x30] ss:$8 sps:$4 sm:$0xff]  }
 0x529   :  { %6968 = vmatprep.subr.bf16.mxu1 %v8334_v20  ;;  %1672 = vmatprep.subr.bf16.mxu0 %v7225_v62  ;;  %v1496_v62 = vld [vmem:[%s9411_s7] sm:$0x3] }
 0x52c   :  { %1673 = vmatpush1.bf16.msra.mxu0 %v7223_v63  ;;  %v1501_v63 = vrot.slane %v1496_v62, %v8645_v30 }
 0x52d   :  { %1674 = vmatprep.subr.bf16.mxu0 %v7228_v0  ;;  %v1505_v0 = vrot.slane %v1496_v62, %v8642_v29  ;;  %v7324_v62 = vld [vmem:[#allocation13 + $0x12c] ss:$16 sps:$4 sm:$0xff]  }
 0x52f   :  { %6965 = vmatmul.mubr.bf16.vlgmr.msra.gmra.mrb[20].mxu1 %v1260_v4  ;;  %v7234_v4 = vld [vmem:[#allocation11 + $0x54] ss:$8 sps:$4 sm:$0xff]  }
 0x530   :  { %6969 = vmatpush3.bf16.xpose.msra.mxu1 %v1263_v32  ;;  %6970 = vmatprep.mubr.msk.bf16.mxu1 %vm8335_vm0, %v8334_v20  ;;  %v7237_v32 = vld [vmem:[#allocation11 + $0x64] ss:$8 sps:$4 sm:$0xff]  }
 0x531   :  { %6974 = vmatprep.subr.bf16.mxu1 %v8334_v20  ;;  %1675 = vmatpush1.bf16.msra.mxu0 %v7226_v1 }
 0x532   :  { %1676 = vmatprep.subr.bf16.mxu0 %v7231_v2 }
 0x535   :  { %1677 = vmatpush1.bf16.msra.mxu0 %v7229_v3 }
 0x536   :  { %1678 = vmatprep.subr.bf16.mxu0 %v7234_v4 }
 0x537   :  { %6971 = vmatmul.mubr.bf16.vlgmr.msra.gmra.mrb[24].mxu1 %v1261_v8  ;;  %v7243_v8 = vld [vmem:[#allocation11 + $0x84] ss:$8 sps:$4 sm:$0xff]  }
 0x538   :  { %6975 = vmatpush3.bf16.msra.mxu1 %v1374_v9  ;;  %6976 = vmatprep.mubr.msk.bf16.mxu1 %vm8335_vm0, %v8334_v20  ;;  %v7241_v9 = vld [vmem:[#allocation11 + $0x80] ss:$8 sps:$4 sm:$0xff]  }
 0x539   :  { %6980 = vmatprep.subr.bf16.mxu1 %v8334_v20  ;;  %1679 = vmatpush1.bf16.msra.mxu0 %v7232_v22 }
 0x53a   :  { %1680 = vmatprep.subr.bf16.mxu0 %v7237_v32 }
 0x53d   :  { %1681 = vmatpush1.bf16.msra.mxu0 %v7235_v6 }
 0x53e   :  { %1682 = vmatprep.subr.bf16.mxu0 %v7240_v31 }
 0x541   :  { %1683 = vmatpush1.bf16.msra.mxu0 %v7238_v7 }
 0x542   :  { %1684 = vmatprep.subr.bf16.mxu0 %v7243_v8 }
 0x545   :  { %1685 = vmatpush1.bf16.msra.mxu0 %v7241_v9  ;;  %v7265_v9 = vld [vmem:[#allocation13] ss:$16 sps:$4 sm:$0xff]  }
 0x5f1   :  { %v8760_v37 = vpop.f32.mrb[12].mxu1 }
 0x5f2   :  { %v6954_v38 = vpop.f32.mrb[13].mxu1 }
 0x5f3   :  { %v1209_v55 = vpop.f32.mrb[14].mxu1  ;;  %v7246_v38 = vld [vmem:[#allocation11 + $0x94] ss:$8 sps:$4 sm:$0xff]  }
 0x5f4   :  { %v6955_v56 = vpop.f32.mrb[15].mxu1  ;;  %v7244_v55 = vld [vmem:[#allocation11 + $0x90] ss:$8 sps:$4 sm:$0xff]   ;;  %1686 = vmatprep.subr.bf16.mxu0 %v7246_v38  ;;  %v7267_v38 = vld [vmem:[#allocation13 + $0x4] ss:$16 sps:$4 sm:$0xff]  }
 0x5f5   :  { %v7249_v56 = vld [vmem:[#allocation11 + $0xa4] ss:$8 sps:$4 sm:$0xff]   ;;  %1687 = vmatpush1.bf16.msra.mxu0 %v7244_v55  ;;  %v7268_v55 = vld [vmem:[#allocation13 + $0x8] ss:$16 sps:$4 sm:$0xff]  }
 0x5f6   :  { %1688 = vmatprep.subr.bf16.mxu0 %v7249_v56  ;;  %v7273_v56 = vld [vmem:[#allocation13 + $0x24] ss:$16 sps:$4 sm:$0xff]  }
 0x5f9   :  { %v8762_v10 = vpop.f32.mrb[16].mxu1 }
 0x5fa   :  { %v1462_v11 = vpack.c.bf16 %v8762_v10, %v8760_v37  ;;  %v6960_v12 = vpop.f32.mrb[17].mxu1 }
 0x5fb   :  { %v1255_v13 = vpop.f32.mrb[18].mxu1  ;;  %v7247_v12 = vld [vmem:[#allocation11 + $0xa0] ss:$8 sps:$4 sm:$0xff]  }
 0x5fc   :  { %v6961_v15 = vpop.f32.mrb[19].mxu1  ;;  %v7252_v13 = vld [vmem:[#allocation11 + $0xb4] ss:$8 sps:$4 sm:$0xff]   ;;  %1689 = vmatpush1.bf16.msra.mxu0 %v7247_v12 }
 0x5fd   :  { %v7250_v15 = vld [vmem:[#allocation11 + $0xb0] ss:$8 sps:$4 sm:$0xff]   ;;  %1690 = vmatprep.subr.bf16.mxu0 %v7252_v13  ;;  %v7276_v12 = vld [vmem:[#allocation13 + $0x2c] ss:$16 sps:$4 sm:$0xff]   ;;  %v7279_v13 = vld [vmem:[#allocation13 + $0x44] ss:$16 sps:$4 sm:$0xff]  }
 0x600   :  { %1691 = vmatpush1.bf16.msra.mxu0 %v7250_v15  ;;  %v7282_v15 = vld [vmem:[#allocation13 + $0x4c] ss:$16 sps:$4 sm:$0xff]  }
 0x602   :  { %v1298_v16 = vpop.f32.mrb[20].mxu1 }
 0x603   :  { %v1299_v17 = vadd.f32 %v1298_v16, %v8720_v5  ;;  %v6966_v18 = vpop.f32.mrb[21].mxu1  ;;  %v7255_v16 = vld [vmem:[#allocation11 + $0xc4] ss:$8 sps:$4 sm:$0xff]  }
 0x604   :  { %v1301_v19 = vpop.f32.mrb[22].mxu1  ;;  %1692 = vmatprep.subr.bf16.mxu0 %v7255_v16  ;;  %v7277_v16 = vld [vmem:[#allocation13 + $0x40] ss:$16 sps:$4 sm:$0xff]  }
 0x605   :  { %v6967_v23 = vpop.f32.mrb[23].mxu1  ;;  %v1344_v24 = vsel %vm1138_vm2, %v1299_v17, -inf }
 0x606   :  { %1345 = vmax.xlane.f32.xlu0 %v1344_v24  ;;  %v1369_v24 = vpack.c.bf16 %v8714_v61, %v8714_v61  ;;  %v7259_v61 = vld [vmem:[#allocation11 + $0xe0] ss:$8 sps:$4 sm:$0xff]  }
 0x60a   :  { %v1338_v25 = vpop.f32.mrb[24].mxu1 }
 0x60b   :  { %v1339_v26 = vadd.f32 %v1338_v25, %v8725_v14  ;;  %v6972_v27 = vpop.f32.mrb[25].mxu1 }
 0x60c   :  { %v1341_v33 = vpop.f32.mrb[26].mxu1  ;;  %v1420_v27 = vsel %vm1168_vm1, %v1369_v24, 0  ;;  %v7286_v24 = vld [vmem:[#allocation13 + $0x68] ss:$16 sps:$4 sm:$0xff]  }
 0x60d   :  { %v6973_v34 = vpop.f32.mrb[27].mxu1  ;;  %v1347_v35 = vsel %vm1138_vm2, %v1339_v26, -inf }
 0x60e   :  { %1348 = vmax.xlane.f32.xlu1 %v1347_v35 }
 0x693   :  { %v1346_v36 = vpop.xlane.xlu0 %1345 }
 0x694   :  { %v1350_v39 = vsub.f32 %v1299_v17, %v1346_v36  ;;  %v7253_v17 = vld [vmem:[#allocation11 + $0xc0] ss:$8 sps:$4 sm:$0xff]   ;;  %v7258_v36 = vld [vmem:[#allocation11 + $0xd4] ss:$8 sps:$4 sm:$0xff]  }
 0x695   :  { %1693 = vmatpush1.bf16.msra.mxu0 %v7253_v17  ;;  %v7280_v17 = vld [vmem:[#allocation13 + $0x48] ss:$16 sps:$4 sm:$0xff]  }
 0x696   :  { %v1352_v40 = vmul.f32 1.442695, %v1350_v39  ;;  %v7256_v39 = vld [vmem:[#allocation11 + $0xd0] ss:$8 sps:$4 sm:$0xff]   ;;  %1694 = vmatprep.subr.bf16.mxu0 %v7258_v36 }
 0x697   :  { %v7295_v36 = vld [vmem:[#allocation13 + $0xa0] ss:$16 sps:$4 sm:$0xff]  }
 0x698   :  { %7965 = vpow2.f32 %v1352_v40  ;;  %v7261_v40 = vld [vmem:[#allocation11 + $0xe4] ss:$8 sps:$4 sm:$0xff]  }
 0x699   :  { %1695 = vmatpush1.bf16.msra.mxu0 %v7256_v39  ;;  %v7298_v39 = vld [vmem:[#allocation13 + $0xa8] ss:$16 sps:$4 sm:$0xff]  }
 0x69a   :  { %1696 = vmatprep.subr.bf16.mxu0 %v7261_v40  ;;  %v7306_v40 = vld [vmem:[#allocation13 + $0xcc] ss:$16 sps:$4 sm:$0xff]  }
 0x69b   :  { %v1349_v41 = vpop.xlane.xlu1 %1348 }
 0x69c   :  { %v1351_v42 = vsub.f32 %v1339_v26, %v1349_v41  ;;  %v7264_v41 = vld [vmem:[#allocation11 + $0xf4] ss:$8 sps:$4 sm:$0xff]  }
 0x69d   :  { %1697 = vmatpush1.bf16.msra.mxu0 %v7259_v61  ;;  %v7303_v61 = vld [vmem:[#allocation13 + $0xc4] ss:$16 sps:$4 sm:$0xff]  }
 0x69e   :  { %v1354_v43 = vmul.f32 1.442695, %v1351_v42  ;;  %v7262_v42 = vld [vmem:[#allocation11 + $0xf0] ss:$8 sps:$4 sm:$0xff]   ;;  %1698 = vmatprep.subr.bf16.mxu0 %v7264_v41 }
 0x69f   :  { %v7301_v41 = vld [vmem:[#allocation13 + $0xc0] ss:$16 sps:$4 sm:$0xff]  }
 0x6a0   :  { %7967 = vpow2.f32 %v1354_v43 }
 0x6a1   :  { %1699 = vmatpush1.bf16.msra.mxu0 %v7262_v42  ;;  %v7304_v42 = vld [vmem:[#allocation13 + $0xc8] ss:$16 sps:$4 sm:$0xff]  }
 0x6a2   :  { %v8770_v47 = vpop.eup %7965 }
 0x6a3   :  { %v1356_v53 = vsel %vm1138_vm2, %v8770_v47, 0.0 }
 0x6a4   :  { %1357 = vadd.xlane.f32.xlu0 %v1356_v53 }
 0x6aa   :  { %v8774_v52 = vpop.eup %7967 }
 0x6ab   :  { %v1359_v51 = vsel %vm1138_vm2, %v8774_v52, 0.0 }
 0x6ac   :  { %1360 = vadd.xlane.f32.xlu1 %v1359_v51 }
 0x731   :  { %v1358_v18 = vpop.xlane.xlu0 %1357 }
 0x732   :  { %7969 = vrcp.f32 %v1358_v18  ;;  %v7285_v18 = vld [vmem:[#allocation13 + $0x64] ss:$16 sps:$4 sm:$0xff]  }
 0x739   :  { %v1361_v19 = vpop.xlane.xlu1 %1360 }
 0x73a   :  { %7971 = vrcp.f32 %v1361_v19  ;;  %v7288_v19 = vld [vmem:[#allocation13 + $0x6c] ss:$16 sps:$4 sm:$0xff]  }
 0x73c   :  { %v7970_v23 = vpop.eup %7969 }
 0x73d   :  { %v1363_v25 = vmul.f32 %v7970_v23, %v8770_v47  ;;  %v7283_v23 = vld [vmem:[#allocation13 + $0x60] ss:$16 sps:$4 sm:$0xff]  }
 0x73f   :  { %v1366_v26 = vpack.c.bf16 %v1363_v25, %v1363_v25  ;;  %v7291_v25 = vld [vmem:[#allocation13 + $0x84] ss:$16 sps:$4 sm:$0xff]  }
 0x741   :  { %6977 = vmatmul.mubr.msk.bf16.vlgmr.msra.gmra.mrb[28].mxu1 %vm1138_vm2, %v1366_v26  ;;  %v7294_v26 = vld [vmem:[#allocation13 + $0x8c] ss:$16 sps:$4 sm:$0xff]  }
 0x742   :  { %6981 = vmatpush3.bf16.msra.mxu1 %v1420_v27  ;;  %6982 = vmatprep.mubr.msk.bf16.mxu1 %vm8335_vm0, %v8334_v20  ;;  %v7289_v27 = vld [vmem:[#allocation13 + $0x80] ss:$16 sps:$4 sm:$0xff]  }
 0x743   :  { %2187 = vmatprep.subr.bf16.mxu1 %v7267_v38 }
 0x744   :  { %v7972_v33 = vpop.eup %7971 }
 0x745   :  { %v1365_v34 = vmul.f32 %v7972_v33, %v8774_v52  ;;  %v7292_v33 = vld [vmem:[#allocation13 + $0x88] ss:$16 sps:$4 sm:$0xff]  }
 0x747   :  { %v1367_v35 = vpack.c.bf16 %v1365_v34, %v1365_v34  ;;  %v7297_v34 = vld [vmem:[#allocation13 + $0xa4] ss:$16 sps:$4 sm:$0xff]  }
 0x749   :  { %6983 = vmatmul.mubr.msk.bf16.vlgmr.msra.gmra.mrb[32].mxu1 %vm1138_vm2, %v1367_v35  ;;  %v7300_v35 = vld [vmem:[#allocation13 + $0xac] ss:$16 sps:$4 sm:$0xff]  }
 0x74a   :  { %2188 = vmatpush1.bf16.msra.mxu1 %v7265_v9 }
 0x74b   :  { %2189 = vmatprep.subr.bf16.mxu1 %v7273_v56  ;;  %v7333_v56 = vld [vmem:[#allocation13 + $0x164] ss:$16 sps:$4 sm:$0xff]  }
 0x814   :  { %v1410_v43 = vpop.f32.mrb[28].mxu1 }
 0x815   :  { %v6978_v47 = vpop.f32.mrb[29].mxu1 }
 0x816   :  { %v1413_v53 = vpop.f32.mrb[30].mxu1  ;;  %v7312_v47 = vld [vmem:[#allocation13 + $0xec] ss:$16 sps:$4 sm:$0xff]  }
 0x817   :  { %v6979_v51 = vpop.f32.mrb[31].mxu1  ;;  %v7307_v53 = vld [vmem:[#allocation13 + $0xe0] ss:$16 sps:$4 sm:$0xff]  }
 0x818   :  { %v7310_v51 = vld [vmem:[#allocation13 + $0xe8] ss:$16 sps:$4 sm:$0xff]  }
 0x81c   :  { %v1456_v52 = vpop.f32.mrb[32].mxu1 }
 0x81d   :  { %v1463_v57 = vpack.c.bf16 %v1456_v52, %v1410_v43  ;;  %v6984_v58 = vpop.f32.mrb[33].mxu1  ;;  %v7309_v43 = vld [vmem:[#allocation13 + $0xe4] ss:$16 sps:$4 sm:$0xff]  }
 0x81e   :  { %v1459_v60 = vpop.f32.mrb[34].mxu1  ;;  %v7315_v52 = vld [vmem:[#allocation13 + $0x104] ss:$16 sps:$4 sm:$0xff]   ;;  %v7313_v58 = vld [vmem:[#allocation13 + $0x100] ss:$16 sps:$4 sm:$0xff]  }
 0x81f   :  { %v6985_v59 = vpop.f32.mrb[35].mxu1  ;;  %1700 = vmatprep.mubr.bf16.mxu0 %v1463_v57  ;;  %v7318_v57 = vld [vmem:[#allocation13 + $0x10c] ss:$16 sps:$4 sm:$0xff]   ;;  %v7316_v60 = vld [vmem:[#allocation13 + $0x108] ss:$16 sps:$4 sm:$0xff]  }
 0x820   :  { %1701 = vmatmul.mubr.bf16.vlgmr.msra.gmra.mrb[8].mxu0 %v1462_v11  ;;  %v7321_v59 = vld [vmem:[#allocation13 + $0x124] ss:$16 sps:$4 sm:$0xff]  }
 0x8f3   :  { %v1702_v1 = vpop.f32.mrb[8].mxu0 }
 0x8f4   :  { %v1703_v2 = vadd.f32 %v1702_v1, %v1501_v63  ;;  %v1704_v3 = vpop.f32.mrb[9].mxu0 }
 0x8f5   :  { %v1705_v4 = vadd.f32 %v1704_v3, %v1505_v0  ;;  %v1706_v22 = vpop.f32.mrb[10].mxu0 }
 0x8f6   :  { %v8796_v32 = vadd.f32 %v1703_v2, %v8659_v45  ;;  %v1707_v6 = vadd.f32 %v1706_v22, %v1501_v63  ;;  %v1708_v31 = vpop.f32.mrb[11].mxu0  ;;  %v7319_v63 = vld [vmem:[#allocation13 + $0x120] ss:$16 sps:$4 sm:$0xff]  }
 0x8f7   :  { %v8799_v37 = vadd.f32 %v1705_v4, %v8655_v46  ;;  %v1709_v10 = vadd.f32 %v1708_v31, %v1505_v0  ;;  %v7270_v46 = vld [vmem:[#allocation13 + $0xc] ss:$16 sps:$4 sm:$0xff]   ;;  %v7322_v0 = vld [vmem:[#allocation13 + $0x128] ss:$16 sps:$4 sm:$0xff]  }
 0x8f8   :  { %v8802_v11 = vadd.f32 %v1707_v6, %v8661_v50  ;;  %2230 = vmatprep.subr.bf16.mxu0 %v7270_v46  ;;  %v7271_v50 = vld [vmem:[#allocation13 + $0x20] ss:$16 sps:$4 sm:$0xff]   ;;  %v7328_v46 = vld [vmem:[#allocation13 + $0x148] ss:$16 sps:$4 sm:$0xff]  }
 0x8f9   :  { %v8805_v7 = vadd.f32 %v1709_v10, %v8657_v49  ;;  %v1717_v8 = vadd.f32 %v8799_v37, %v8796_v32  ;;  %2231 = vmatpush1.bf16.msra.mxu0 %v7268_v55  ;;  %v7274_v49 = vld [vmem:[#allocation13 + $0x28] ss:$16 sps:$4 sm:$0xff]   ;;  %2190 = vmatpush1.bf16.msra.mxu1 %v7271_v50  ;;  %v7330_v55 = vld [vmem:[#allocation13 + $0x14c] ss:$16 sps:$4 sm:$0xff]   ;;  %v7331_v50 = vld [vmem:[#allocation13 + $0x160] ss:$16 sps:$4 sm:$0xff]  }
 0x8fa   :  { %2232 = vmatprep.subr.bf16.mxu0 %v7276_v12  ;;  %2191 = vmatprep.subr.bf16.mxu1 %v7279_v13  ;;  %v7336_v12 = vld [vmem:[#allocation13 + $0x16c] ss:$16 sps:$4 sm:$0xff]   ;;  %v7339_v13 = vld [vmem:[#allocation13 + $0x184] ss:$16 sps:$4 sm:$0xff]  }
 0x8fb   :  { %1718 = vadd.xlane.f32.xlu0 %v1717_v8  ;;  %v1720_v45 = vadd.f32 %v8805_v7, %v8802_v11 }
 0x8fd   :  { %1721 = vadd.xlane.f32.xlu1 %v1720_v45  ;;  %2233 = vmatpush1.bf16.msra.mxu0 %v7274_v49  ;;  %v7334_v49 = vld [vmem:[#allocation13 + $0x168] ss:$16 sps:$4 sm:$0xff]  }
 0x8fe   :  { %2234 = vmatprep.subr.bf16.mxu0 %v7282_v15  ;;  %2192 = vmatpush1.bf16.msra.mxu1 %v7277_v16  ;;  %v7342_v15 = vld [vmem:[#allocation13 + $0x18c] ss:$16 sps:$4 sm:$0xff]   ;;  %v7337_v16 = vld [vmem:[#allocation13 + $0x180] ss:$16 sps:$4 sm:$0xff]  }
 0x8ff   :  { %2193 = vmatprep.subr.bf16.mxu1 %v7285_v18  ;;  %v7345_v18 = vld [vmem:[#allocation13 + $0x1a4] ss:$16 sps:$4 sm:$0xff]  }
 0x901   :  { %2235 = vmatpush1.bf16.msra.mxu0 %v7280_v17  ;;  %v7340_v17 = vld [vmem:[#allocation13 + $0x188] ss:$16 sps:$4 sm:$0xff]  }
 0x902   :  { %2236 = vmatprep.subr.bf16.mxu0 %v7288_v19  ;;  %2194 = vmatpush1.bf16.msra.mxu1 %v7283_v23  ;;  %v7348_v19 = vld [vmem:[#allocation13 + $0x1ac] ss:$16 sps:$4 sm:$0xff]   ;;  %v7343_v23 = vld [vmem:[#allocation13 + $0x1a0] ss:$16 sps:$4 sm:$0xff]  }
 0x903   :  { %2195 = vmatprep.subr.bf16.mxu1 %v7291_v25  ;;  %v7349_v25 = vld [vmem:[#allocation13 + $0x1c0] ss:$16 sps:$4 sm:$0xff]  }
 0x905   :  { %2237 = vmatpush1.bf16.msra.mxu0 %v7286_v24  ;;  %v7346_v24 = vld [vmem:[#allocation13 + $0x1a8] ss:$16 sps:$4 sm:$0xff]  }
 0x906   :  { %2238 = vmatprep.subr.bf16.mxu0 %v7294_v26  ;;  %2196 = vmatpush1.bf16.msra.mxu1 %v7289_v27  ;;  %v7351_v26 = vld [vmem:[#allocation13 + $0x1c4] ss:$16 sps:$4 sm:$0xff]   ;;  %v7352_v27 = vld [vmem:[#allocation13 + $0x1c8] ss:$16 sps:$4 sm:$0xff]  }
 0x907   :  { %2197 = vmatprep.subr.bf16.mxu1 %v7297_v34  ;;  %v7357_v34 = vld [vmem:[#allocation13 + $0x1e4] ss:$16 sps:$4 sm:$0xff]  }
 0x909   :  { %2239 = vmatpush1.bf16.msra.mxu0 %v7292_v33  ;;  %v7354_v33 = vld [vmem:[#allocation13 + $0x1cc] ss:$16 sps:$4 sm:$0xff]  }
 0x90a   :  { %2240 = vmatprep.subr.bf16.mxu0 %v7300_v35  ;;  %2198 = vmatpush1.bf16.msra.mxu1 %v7295_v36  ;;  %v7360_v35 = vld [vmem:[#allocation13 + $0x1ec] ss:$16 sps:$4 sm:$0xff]   ;;  %v7355_v36 = vld [vmem:[#allocation13 + $0x1e0] ss:$16 sps:$4 sm:$0xff]  }
 0x90b   :  { %2199 = vmatprep.subr.bf16.mxu1 %v7303_v61  ;;  %v7363_v61 = vld [vmem:[#allocation14 + $0x4] ss:$8 sps:$4 sm:$0xff]  }
 0x90d   :  { %2241 = vmatpush1.bf16.msra.mxu0 %v7298_v39  ;;  %v7358_v39 = vld [vmem:[#allocation13 + $0x1e8] ss:$16 sps:$4 sm:$0xff]  }
 0x90e   :  { %2242 = vmatprep.subr.bf16.mxu0 %v7306_v40  ;;  %2200 = vmatpush1.bf16.msra.mxu1 %v7301_v41 }
 0x90f   :  { %2201 = vmatprep.subr.bf16.mxu1 %v7309_v43 }
 0x911   :  { %2243 = vmatpush1.bf16.msra.mxu0 %v7304_v42 }
 0x912   :  { %2244 = vmatprep.subr.bf16.mxu0 %v7312_v47  ;;  %2202 = vmatpush1.bf16.msra.mxu1 %v7307_v53 }
 0x913   :  { %2203 = vmatprep.subr.bf16.mxu1 %v7315_v52  ;;  %v1716_v52 = vld [vmem:[%s9413_s9] sm:$0x3] }
 0x915   :  { %2245 = vmatpush1.bf16.msra.mxu0 %v7310_v51  ;;  %v1715_v51 = vld [vmem:[%s9412_s8] sm:$0x3] }
 0x916   :  { %2246 = vmatprep.subr.bf16.mxu0 %v7318_v57  ;;  %2204 = vmatpush1.bf16.msra.mxu1 %v7313_v58  ;;  %v1753_v57 = vrot.slane %v1715_v51, %v8645_v30  ;;  %v1757_v58 = vrot.slane %v1715_v51, %v8642_v29  ;;  %v1845_v51 = vld [vmem:[%s9415_s11] sm:$0xf] }
 0x917   :  { %2205 = vmatprep.subr.bf16.mxu1 %v7321_v59 }
 0x919   :  { %2247 = vmatpush1.bf16.msra.mxu0 %v7316_v60 }
 0x91a   :  { %2248 = vmatprep.subr.bf16.mxu0 %v7324_v62  ;;  %2206 = vmatpush1.bf16.msra.mxu1 %v7319_v63 }
 0x91d   :  { %2249 = vmatpush1.bf16.msra.mxu0 %v7322_v0  ;;  %v1768_v0 = vrot.slane %v1716_v52, %v8645_v30 }
 0x91e   :  { %2250 = vmatprep.subr.bf16.mxu0 %v7330_v55  ;;  %v7364_v55 = vld [vmem:[#allocation14 + $0x10] ss:$8 sps:$4 sm:$0xff]  }
 0x921   :  { %2251 = vmatpush1.bf16.msra.mxu0 %v7328_v46  ;;  %v7367_v46 = vld [vmem:[#allocation14 + $0x20] ss:$8 sps:$4 sm:$0xff]  }
 0x922   :  { %2252 = vmatprep.subr.bf16.mxu0 %v7336_v12  ;;  %v7370_v12 = vld [vmem:[#allocation14 + $0x30] ss:$8 sps:$4 sm:$0xff]  }
 0x925   :  { %2253 = vmatpush1.bf16.msra.mxu0 %v7334_v49  ;;  %v7373_v49 = vld [vmem:[#allocation14 + $0x40] ss:$8 sps:$4 sm:$0xff]  }
 0x926   :  { %2254 = vmatprep.subr.bf16.mxu0 %v7342_v15  ;;  %v7376_v15 = vld [vmem:[#allocation14 + $0x50] ss:$8 sps:$4 sm:$0xff]  }
 0x929   :  { %2255 = vmatpush1.bf16.msra.mxu0 %v7340_v17  ;;  %v7379_v17 = vld [vmem:[#allocation14 + $0x60] ss:$8 sps:$4 sm:$0xff]  }
 0x92a   :  { %2256 = vmatprep.subr.bf16.mxu0 %v7348_v19  ;;  %v7382_v19 = vld [vmem:[#allocation14 + $0x70] ss:$8 sps:$4 sm:$0xff]  }
 0x92d   :  { %2257 = vmatpush1.bf16.msra.mxu0 %v7346_v24  ;;  %v7385_v24 = vld [vmem:[#allocation14 + $0x80] ss:$8 sps:$4 sm:$0xff]  }
 0x92e   :  { %2258 = vmatprep.subr.bf16.mxu0 %v7354_v33  ;;  %v7391_v33 = vld [vmem:[#allocation14 + $0xa0] ss:$8 sps:$4 sm:$0xff]  }
 0x931   :  { %2259 = vmatpush1.bf16.msra.mxu0 %v7352_v27  ;;  %v7393_v27 = vld [vmem:[#allocation14 + $0xa4] ss:$8 sps:$4 sm:$0xff]  }
 0x932   :  { %2260 = vmatprep.subr.bf16.mxu0 %v7360_v35  ;;  %v7394_v35 = vld [vmem:[#allocation14 + $0xb0] ss:$8 sps:$4 sm:$0xff]  }
 0x935   :  { %2261 = vmatpush1.bf16.msra.mxu0 %v7358_v39  ;;  %v7399_v39 = vld [vmem:[#allocation14 + $0xc4] ss:$8 sps:$4 sm:$0xff]  }
 0x988   :  { %v1719_v1 = vpop.xlane.xlu0 %1718 }
 0x989   :  { %v1723_v2 = vmul.f32 0.00390625, %v1719_v1  ;;  %v1772_v1 = vrot.slane %v1716_v52, %v8642_v29  ;;  %v1850_v52 = vrot.slane %v1845_v51, %v8645_v30 }
 0x98a   :  { %v1722_v3 = vpop.xlane.xlu1 %1721 }
 0x98b   :  { %v8812_v4 = vsub.f32 %v8796_v32, %v1723_v2  ;;  %v8815_v22 = vsub.f32 %v8799_v37, %v1723_v2  ;;  %v1724_v6 = vmul.f32 0.00390625, %v1722_v3 }
 0x98d   :  { %v8818_v31 = vsub.f32 %v8802_v11, %v1724_v6  ;;  %v8821_v10 = vsub.f32 %v8805_v7, %v1724_v6  ;;  %v1729_v8 = vmul.f32 %v8812_v4, %v8812_v4  ;;  %v1730_v45 = vmul.f32 %v8815_v22, %v8815_v22  ;;  %v7327_v11 = vld [vmem:[#allocation13 + $0x144] ss:$16 sps:$4 sm:$0xff]   ;;  %v7325_v7 = vld [vmem:[#allocation13 + $0x140] ss:$16 sps:$4 sm:$0xff]  }
 0x98e   :  { %2207 = vmatprep.subr.bf16.mxu1 %v7327_v11  ;;  %v7361_v11 = vld [vmem:[#allocation14] ss:$8 sps:$4 sm:$0xff]  }
 0x98f   :  { %v1733_v9 = vadd.f32 %v1730_v45, %v1729_v8  ;;  %v1731_v32 = vmul.f32 %v8818_v31, %v8818_v31  ;;  %v1732_v37 = vmul.f32 %v8821_v10, %v8821_v10  ;;  %2208 = vmatpush1.bf16.msra.mxu1 %v7325_v7  ;;  %v7369_v7 = vld [vmem:[#allocation14 + $0x24] ss:$8 sps:$4 sm:$0xff]  }
 0x990   :  { %2209 = vmatprep.subr.bf16.mxu1 %v7333_v56  ;;  %v7372_v56 = vld [vmem:[#allocation14 + $0x34] ss:$8 sps:$4 sm:$0xff]  }
 0x991   :  { %1734 = vadd.xlane.f32.xlu0 %v1733_v9  ;;  %v1736_v38 = vadd.f32 %v1732_v37, %v1731_v32 }
 0x993   :  { %1737 = vadd.xlane.f32.xlu1 %v1736_v38  ;;  %2210 = vmatpush1.bf16.msra.mxu1 %v7331_v50  ;;  %v7375_v50 = vld [vmem:[#allocation14 + $0x44] ss:$8 sps:$4 sm:$0xff]  }
 0x994   :  { %2211 = vmatprep.subr.bf16.mxu1 %v7339_v13  ;;  %v7378_v13 = vld [vmem:[#allocation14 + $0x54] ss:$8 sps:$4 sm:$0xff]  }
 0x997   :  { %2212 = vmatpush1.bf16.msra.mxu1 %v7337_v16  ;;  %v7381_v16 = vld [vmem:[#allocation14 + $0x64] ss:$8 sps:$4 sm:$0xff]  }
 0x998   :  { %2213 = vmatprep.subr.bf16.mxu1 %v7345_v18  ;;  %v7384_v18 = vld [vmem:[#allocation14 + $0x74] ss:$8 sps:$4 sm:$0xff]  }
 0x99b   :  { %2214 = vmatpush1.bf16.msra.mxu1 %v7343_v23  ;;  %v7387_v23 = vld [vmem:[#allocation14 + $0x84] ss:$8 sps:$4 sm:$0xff]  }
 0x99c   :  { %2215 = vmatprep.subr.bf16.mxu1 %v7351_v26  ;;  %v7388_v26 = vld [vmem:[#allocation14 + $0x90] ss:$8 sps:$4 sm:$0xff]  }
 0x99f   :  { %2216 = vmatpush1.bf16.msra.mxu1 %v7349_v25  ;;  %v7390_v25 = vld [vmem:[#allocation14 + $0x94] ss:$8 sps:$4 sm:$0xff]  }
 0x9a0   :  { %2217 = vmatprep.subr.bf16.mxu1 %v7357_v34  ;;  %v7396_v34 = vld [vmem:[#allocation14 + $0xb4] ss:$8 sps:$4 sm:$0xff]  }
 0x9a3   :  { %2218 = vmatpush1.bf16.msra.mxu1 %v7355_v36  ;;  %v7397_v36 = vld [vmem:[#allocation14 + $0xc0] ss:$8 sps:$4 sm:$0xff]  }
 0x9a4   :  { %2745 = vmatprep.subr.bf16.mxu1 %v7363_v61  ;;  %v7402_v61 = vld [vmem:[#allocation14 + $0xd4] ss:$8 sps:$4 sm:$0xff]  }
 0xa1e   :  { %v1735_v40 = vpop.xlane.xlu0 %1734 }
 0xa1f   :  { %v1739_v41 = vmul.f32 0.00390625, %v1735_v40  ;;  %v7400_v40 = vld [vmem:[#allocation14 + $0xd0] ss:$8 sps:$4 sm:$0xff]  }
 0xa20   :  { %v1738_v42 = vpop.xlane.xlu1 %1737 }
 0xa21   :  { %v1741_v43 = vadd.f32 1e-12, %v1739_v41  ;;  %v1740_v47 = vmul.f32 0.00390625, %v1738_v42  ;;  %v7405_v41 = vld [vmem:[#allocation14 + $0xe4] ss:$8 sps:$4 sm:$0xff]  }
 0xa22   :  { %v7403_v42 = vld [vmem:[#allocation14 + $0xe0] ss:$8 sps:$4 sm:$0xff]  }
 0xa23   :  { %7973 = vrsqrt.f32 %v1741_v43  ;;  %v1742_v53 = vadd.f32 1e-12, %v1740_v47  ;;  %v7408_v43 = vld [vmem:[#allocation14 + $0xf4] ss:$8 sps:$4 sm:$0xff]   ;;  %v7406_v47 = vld [vmem:[#allocation14 + $0xf0] ss:$8 sps:$4 sm:$0xff]  }
 0xa25   :  { %7975 = vrsqrt.f32 %v1742_v53  ;;  %v7411_v53 = vld [vmem:[#allocation14 + $0x104] ss:$8 sps:$4 sm:$0xff]  }
 0xa2d   :  { %v7974_v60 = vpop.eup %7973 }
 0xa2e   :  { %v1745_v59 = vmul.f32 %v7974_v60, %v8812_v4  ;;  %v1746_v62 = vmul.f32 %v7974_v60, %v8815_v22  ;;  %v1862_v60 = vrot.slane %v1845_v51, %v8732_v44 }
 0xa2f   :  { %v7976_v63 = vpop.eup %7975 }
 0xa30   :  { %v1747_v2 = vmul.f32 %v7976_v63, %v8818_v31  ;;  %v1748_v3 = vmul.f32 %v7976_v63, %v8821_v10  ;;  %v1761_v6 = vmul.f32 %v1757_v58, %v1746_v62  ;;  %v1760_v8 = vmul.f32 %v1753_v57, %v1745_v59  ;;  %v7366_v10 = vld [vmem:[#allocation14 + $0x14] ss:$8 sps:$4 sm:$0xff]  }
 0xa32   :  { %v1763_v45 = vmul.f32 %v1757_v58, %v1748_v3  ;;  %v1762_v9 = vmul.f32 %v1753_v57, %v1747_v2  ;;  %v8845_v32 = vadd.f32 %v1772_v1, %v1761_v6  ;;  %v8849_v4 = vadd.f32 %v1768_v0, %v1760_v8 }
 0xa33   :  { %v1858_v57 = vrot.slane %v1845_v51, %v8676_v21  ;;  %v1854_v58 = vrot.slane %v1845_v51, %v8642_v29 }
 0xa34   :  { %v8847_v37 = vadd.f32 %v1772_v1, %v1763_v45  ;;  %v8851_v22 = vadd.f32 %v1768_v0, %v1762_v9 }
 0xa36   :  { %v1780_v38 = vpack.c.bf16 %v8847_v37, %v8845_v32  ;;  %v1779_v31 = vpack.c.bf16 %v8851_v22, %v8849_v4 }
 0xa38   :  { %2219 = vmatprep.mubr.bf16.mxu1 %v1780_v38  ;;  %2262 = vmatprep.mubr.bf16.mxu0 %v1780_v38 }
 0xa39   :  { %2220 = vmatmul.mubr.bf16.vlgmr.msra.gmra.mrb[36].mxu1 %v1779_v31  ;;  %2263 = vmatmul.mubr.bf16.vlgmr.msra.gmra.mrb[12].mxu0 %v1779_v31 }
 0xa3a   :  { %2746 = vmatpush1.bf16.msra.mxu1 %v7361_v11 }
 0xa3b   :  { %2747 = vmatprep.subr.bf16.mxu1 %v7366_v10 }
 0xa3e   :  { %2748 = vmatpush1.bf16.msra.mxu1 %v7364_v55 }
 0xa3f   :  { %2749 = vmatprep.subr.bf16.mxu1 %v7369_v7 }
 0xa42   :  { %2750 = vmatpush1.bf16.msra.mxu1 %v7367_v46 }
 0xa43   :  { %2751 = vmatprep.subr.bf16.mxu1 %v7372_v56 }
 0xa46   :  { %2752 = vmatpush1.bf16.msra.mxu1 %v7370_v12 }
 0xa47   :  { %2753 = vmatprep.subr.bf16.mxu1 %v7375_v50 }
 0xa4a   :  { %2754 = vmatpush1.bf16.msra.mxu1 %v7373_v49 }
 0xa4b   :  { %2755 = vmatprep.subr.bf16.mxu1 %v7378_v13 }
 0xa4e   :  { %2756 = vmatpush1.bf16.msra.mxu1 %v7376_v15 }
 0xa4f   :  { %2757 = vmatprep.subr.bf16.mxu1 %v7381_v16 }
 0xa52   :  { %2758 = vmatpush1.bf16.msra.mxu1 %v7379_v17 }
 0xa53   :  { %2759 = vmatprep.subr.bf16.mxu1 %v7384_v18 }
 0xa56   :  { %2760 = vmatpush1.bf16.msra.mxu1 %v7382_v19 }
 0xa57   :  { %2761 = vmatprep.subr.bf16.mxu1 %v7387_v23 }
 0xa5a   :  { %2762 = vmatpush1.bf16.msra.mxu1 %v7385_v24 }
 0xa5b   :  { %2763 = vmatprep.subr.bf16.mxu1 %v7390_v25 }
 0xa5e   :  { %2764 = vmatpush1.bf16.msra.mxu1 %v7388_v26 }
 0xa5f   :  { %2765 = vmatprep.subr.bf16.mxu1 %v7393_v27 }
 0xa62   :  { %2766 = vmatpush1.bf16.msra.mxu1 %v7391_v33 }
 0xa63   :  { %2767 = vmatprep.subr.bf16.mxu1 %v7396_v34 }
 0xa66   :  { %2768 = vmatpush1.bf16.msra.mxu1 %v7394_v35 }
 0xa67   :  { %2769 = vmatprep.subr.bf16.mxu1 %v7399_v39 }
 0xa6a   :  { %2770 = vmatpush1.bf16.msra.mxu1 %v7397_v36 }
 0xa6b   :  { %2771 = vmatprep.subr.bf16.mxu1 %v7402_v61 }
 0xa6e   :  { %2772 = vmatpush1.bf16.msra.mxu1 %v7400_v40 }
 0xa6f   :  { %2773 = vmatprep.subr.bf16.mxu1 %v7405_v41 }
 0xa72   :  { %2774 = vmatpush1.bf16.msra.mxu1 %v7403_v42 }
 0xa73   :  { %2775 = vmatprep.subr.bf16.mxu1 %v7408_v43 }
 0xa76   :  { %2776 = vmatpush1.bf16.msra.mxu1 %v7406_v47 }
 0xa77   :  { %2788 = vmatprep.subr.bf16.mxu1 %v7411_v53 }
 0xb0c   :  { %v2221_v59 = vpop.f32.mrb[36].mxu1  ;;  %v2264_v62 = vpop.f32.mrb[12].mxu0 }
 0xb0d   :  { %v8864_v63 = vadd.f32 %v2221_v59, %v1850_v52  ;;  %v8866_v0 = vadd.f32 %v2264_v62, %v1858_v57  ;;  %v2223_v1 = vpop.f32.mrb[37].mxu1  ;;  %v2266_v2 = vpop.f32.mrb[13].mxu0 }
 0xb0e   :  { %v8868_v3 = vadd.f32 %v2223_v1, %v1854_v58  ;;  %v8870_v6 = vadd.f32 %v2266_v2, %v1862_v60  ;;  %v2225_v8 = vpop.f32.mrb[38].mxu1  ;;  %v2268_v45 = vpop.f32.mrb[14].mxu0 }
 0xb0f   :  { %v2281_v9 = vmul.f32 0.044715, %v8864_v63  ;;  %v2283_v38 = vmul.f32 0.044715, %v8866_v0  ;;  %v2226_v31 = vadd.f32 %v2225_v8, %v1850_v52  ;;  %v2269_v11 = vadd.f32 %v2268_v45, %v1858_v57  ;;  %v2227_v10 = vpop.f32.mrb[39].mxu1  ;;  %v2270_v55 = vpop.f32.mrb[15].mxu0 }
 0xb10   :  { %v2282_v7 = vmul.f32 0.044715, %v8868_v3  ;;  %v2284_v46 = vmul.f32 0.044715, %v8870_v6  ;;  %v8876_v56 = vadd.f32 %v2227_v10, %v1854_v58  ;;  %v8878_v12 = vadd.f32 %v2270_v55, %v1862_v60 }
 0xb11   :  { %v2289_v50 = vmul.f32 %v2281_v9, %v8864_v63  ;;  %v2291_v49 = vmul.f32 %v2283_v38, %v8866_v0  ;;  %v2285_v13 = vmul.f32 0.044715, %v2226_v31  ;;  %v2287_v15 = vmul.f32 0.044715, %v2269_v11 }
 0xb12   :  { %v2290_v16 = vmul.f32 %v2282_v7, %v8868_v3  ;;  %v2292_v17 = vmul.f32 %v2284_v46, %v8870_v6  ;;  %v2286_v18 = vmul.f32 0.044715, %v8876_v56  ;;  %v2288_v19 = vmul.f32 0.044715, %v8878_v12 }
 0xb13   :  { %v2297_v23 = vmul.f32 %v2289_v50, %v8864_v63  ;;  %v2299_v24 = vmul.f32 %v2291_v49, %v8866_v0  ;;  %v2293_v25 = vmul.f32 %v2285_v13, %v2226_v31  ;;  %v2295_v26 = vmul.f32 %v2287_v15, %v2269_v11 }
 0xb14   :  { %v2298_v27 = vmul.f32 %v2290_v16, %v8868_v3  ;;  %v2294_v33 = vmul.f32 %v2286_v18, %v8876_v56  ;;  %v2296_v34 = vmul.f32 %v2288_v19, %v8878_v12  ;;  %v2300_v40 = vmul.f32 %v2292_v17, %v8870_v6 }
 0xb15   :  { %v2305_v35 = vadd.f32 %v2297_v23, %v8864_v63  ;;  %v2307_v36 = vadd.f32 %v2299_v24, %v8866_v0  ;;  %v2301_v39 = vmul.f32 %v2293_v25, %v2226_v31  ;;  %v2303_v61 = vmul.f32 %v2295_v26, %v2269_v11 }
 0xb16   :  { %v2302_v41 = vmul.f32 %v2294_v33, %v8876_v56  ;;  %v2304_v42 = vmul.f32 %v2296_v34, %v8878_v12  ;;  %v2306_v52 = vadd.f32 %v2298_v27, %v8868_v3  ;;  %v2308_v1 = vadd.f32 %v2300_v40, %v8870_v6 }
 0xb17   :  { %v2313_v43 = vmul.f32 0.7978846, %v2305_v35  ;;  %v2315_v47 = vmul.f32 0.7978846, %v2307_v36  ;;  %v2309_v53 = vadd.f32 %v2301_v39, %v2226_v31  ;;  %v2311_v51 = vadd.f32 %v2303_v61, %v2269_v11 }
 0xb18   :  { %v2310_v57 = vadd.f32 %v2302_v41, %v8876_v56  ;;  %v2314_v59 = vmul.f32 0.7978846, %v2306_v52  ;;  %v2312_v2 = vadd.f32 %v2304_v42, %v8878_v12  ;;  %v2316_v8 = vmul.f32 0.7978846, %v2308_v1  ;;  %v7415_v52 = vld [vmem:[#allocation14 + $0x120] ss:$8 sps:$4 sm:$0xff]  }
 0xb19   :  { %7977 = vtanh.f32 %v2313_v43  ;;  %v2317_v58 = vmul.f32 0.7978846, %v2309_v53  ;;  %v2319_v60 = vmul.f32 0.7978846, %v2311_v51  ;;  %v2273_v50 = vmul.f32 0.5, %v8864_v63 }
 0xb1a   :  { %7979 = vtanh.f32 %v2315_v47  ;;  %v2318_v62 = vmul.f32 0.7978846, %v2310_v57  ;;  %v2320_v45 = vmul.f32 0.7978846, %v2312_v2  ;;  %v2277_v49 = vmul.f32 0.5, %v2226_v31 }
 0xb1b   :  { %7981 = vtanh.f32 %v2317_v58  ;;  %v2275_v16 = vmul.f32 0.5, %v8866_v0  ;;  %v2279_v17 = vmul.f32 0.5, %v2269_v11  ;;  %v2274_v23 = vmul.f32 0.5, %v8868_v3  ;;  %v7414_v53 = vld [vmem:[#allocation14 + $0x114] ss:$8 sps:$4 sm:$0xff]  }
 0xb1c   :  { %7983 = vtanh.f32 %v2319_v60  ;;  %v2278_v33 = vmul.f32 0.5, %v8876_v56  ;;  %v2276_v0 = vmul.f32 0.5, %v8870_v6  ;;  %v2280_v11 = vmul.f32 0.5, %v8878_v12  ;;  %v7409_v56 = vld [vmem:[#allocation14 + $0x100] ss:$8 sps:$4 sm:$0xff]  }
 0xb1d   :  { %7985 = vtanh.f32 %v2314_v59  ;;  %v7412_v6 = vld [vmem:[#allocation14 + $0x110] ss:$8 sps:$4 sm:$0xff]   ;;  %v7417_v12 = vld [vmem:[#allocation14 + $0x124] ss:$8 sps:$4 sm:$0xff]   ;;  %v7420_v57 = vld [vmem:[#allocation14 + $0x134] ss:$8 sps:$4 sm:$0xff]  }
 0xb1e   :  { %7987 = vtanh.f32 %v2318_v62  ;;  %v7418_v58 = vld [vmem:[#allocation14 + $0x130] ss:$8 sps:$4 sm:$0xff]   ;;  %v7423_v60 = vld [vmem:[#allocation14 + $0x144] ss:$8 sps:$4 sm:$0xff]   ;;  %v7421_v59 = vld [vmem:[#allocation14 + $0x140] ss:$8 sps:$4 sm:$0xff]  }
 0xb1f   :  { %7989 = vtanh.f32 %v2316_v8  ;;  %v7426_v62 = vld [vmem:[#allocation14 + $0x154] ss:$8 sps:$4 sm:$0xff]   ;;  %v7424_v1 = vld [vmem:[#allocation14 + $0x150] ss:$8 sps:$4 sm:$0xff]   ;;  %v7429_v2 = vld [vmem:[#allocation14 + $0x164] ss:$8 sps:$4 sm:$0xff]  }
 0xb20   :  { %7991 = vtanh.f32 %v2320_v45  ;;  %v7427_v8 = vld [vmem:[#allocation14 + $0x160] ss:$8 sps:$4 sm:$0xff]   ;;  %v7432_v45 = vld [vmem:[#allocation14 + $0x174] ss:$8 sps:$4 sm:$0xff]  }
 0xb23   :  { %v7978_v9 = vpop.eup %7977 }
 0xb24   :  { %v7980_v38 = vpop.eup %7979  ;;  %v2329_v10 = vadd.f32 1.0, %v7978_v9  ;;  %v7430_v9 = vld [vmem:[#allocation14 + $0x170] ss:$8 sps:$4 sm:$0xff]  }
 0xb25   :  { %v7982_v55 = vpop.eup %7981  ;;  %v2331_v7 = vadd.f32 1.0, %v7980_v38  ;;  %v7435_v38 = vld [vmem:[#allocation14 + $0x184] ss:$8 sps:$4 sm:$0xff]  }
 0xb26   :  { %v7984_v46 = vpop.eup %7983  ;;  %v2333_v13 = vadd.f32 1.0, %v7982_v55  ;;  %v2337_v25 = vmul.f32 %v2329_v10, %v2273_v50  ;;  %v7433_v10 = vld [vmem:[#allocation14 + $0x180] ss:$8 sps:$4 sm:$0xff]   ;;  %v7438_v55 = vld [vmem:[#allocation14 + $0x194] ss:$8 sps:$4 sm:$0xff]  }
 0xb27   :  { %v7986_v15 = vpop.eup %7985  ;;  %v2335_v18 = vadd.f32 1.0, %v7984_v46  ;;  %v8904_v35 = vmul.f32 %v2331_v7, %v2275_v16  ;;  %v7436_v7 = vld [vmem:[#allocation14 + $0x190] ss:$8 sps:$4 sm:$0xff]   ;;  %v7441_v46 = vld [vmem:[#allocation14 + $0x1a4] ss:$8 sps:$4 sm:$0xff]  }
 0xb28   :  { %v7988_v19 = vpop.eup %7987  ;;  %v2330_v24 = vadd.f32 1.0, %v7986_v15  ;;  %v2341_v26 = vmul.f32 %v2333_v13, %v2277_v49  ;;  %v7439_v50 = vld [vmem:[#allocation14 + $0x1a0] ss:$8 sps:$4 sm:$0xff]   ;;  %v7444_v49 = vld [vmem:[#allocation14 + $0x1b4] ss:$8 sps:$4 sm:$0xff]  }
 0xb29   :  { %v7990_v27 = vpop.eup %7989  ;;  %v2334_v34 = vadd.f32 1.0, %v7988_v19  ;;  %v8906_v63 = vmul.f32 %v2335_v18, %v2279_v17  ;;  %v7442_v13 = vld [vmem:[#allocation14 + $0x1b0] ss:$8 sps:$4 sm:$0xff]   ;;  %v7447_v15 = vld [vmem:[#allocation14 + $0x1c4] ss:$8 sps:$4 sm:$0xff]  }
 0xb2a   :  { %v7992_v31 = vpop.eup %7991  ;;  %v2345_v36 = vpack.c.bf16 %v2341_v26, %v2337_v25  ;;  %v2332_v39 = vadd.f32 1.0, %v7990_v27  ;;  %v2338_v61 = vmul.f32 %v2330_v24, %v2274_v23  ;;  %v7445_v16 = vld [vmem:[#allocation14 + $0x1c0] ss:$8 sps:$4 sm:$0xff]   ;;  %v7450_v17 = vld [vmem:[#allocation14 + $0x1d4] ss:$8 sps:$4 sm:$0xff]  }
 0xb2b   :  { %v2342_v3 = vmul.f32 %v2334_v34, %v2278_v33  ;;  %v2336_v40 = vadd.f32 1.0, %v7992_v31  ;;  %v2347_v41 = vpack.c.bf16 %v8906_v63, %v8904_v35  ;;  %v7448_v18 = vld [vmem:[#allocation14 + $0x1d0] ss:$8 sps:$4 sm:$0xff]   ;;  %v7453_v19 = vld [vmem:[#allocation14 + $0x1e4] ss:$8 sps:$4 sm:$0xff]  }
 0xb2c   :  { %v2340_v43 = vmul.f32 %v2332_v39, %v2276_v0  ;;  %v7451_v23 = vld [vmem:[#allocation14 + $0x1e0] ss:$8 sps:$4 sm:$0xff]   ;;  %v7456_v24 = vld [vmem:[#allocation14 + $0x1f4] ss:$8 sps:$4 sm:$0xff]   ;;  %v7454_v25 = vld [vmem:[#allocation14 + $0x1f0] ss:$8 sps:$4 sm:$0xff]  }
 0xb2d   :  { %v2346_v42 = vpack.c.bf16 %v2342_v3, %v2338_v61  ;;  %v2344_v47 = vmul.f32 %v2336_v40, %v2280_v11  ;;  %v2413_v26 = vld [vmem:[%s9417_s13] sm:$0x3] }
 0xb2e   :  { %v2418_v27 = vrot.slane %v2413_v26, %v8645_v30  ;;  %v2422_v33 = vrot.slane %v2413_v26, %v8642_v29  ;;  %v7516_v26 = vld [vmem:[#allocation10 + $0x4c4] ss:$24 sps:$4 sm:$0xff]  }
 0xb2f   :  { %2777 = vmatprep.mubr.bf16.mxu1 %v2346_v42  ;;  %v2348_v51 = vpack.c.bf16 %v2344_v47, %v2340_v43  ;;  %v7459_v43 = vld [vmem:[#allocation10 + $0x304] ss:$24 sps:$4 sm:$0xff]   ;;  %v7460_v47 = vld [vmem:[#allocation10 + $0x310] ss:$24 sps:$4 sm:$0xff]  }
 0xb30   :  { %2778 = vmatmul.mubr.bf16.vlgmr.msra.gmra.mrb[40].mxu1 %v2345_v36  ;;  %3511 = vmatprep.subr.bf16.mxu0 %v7459_v43 }
 0xb31   :  { %2789 = vmatpush1.bf16.msra.mxu1 %v7409_v56  ;;  %2820 = vmatprep.mubr.bf16.mxu1 %v2348_v51  ;;  %v7457_v56 = vld [vmem:[#allocation10 + $0x300] ss:$24 sps:$4 sm:$0xff]   ;;  %v7468_v51 = vld [vmem:[#allocation10 + $0x344] ss:$24 sps:$4 sm:$0xff]  }
 0xb32   :  { %2790 = vmatprep.subr.bf16.mxu1 %v7414_v53  ;;  %v7465_v53 = vld [vmem:[#allocation10 + $0x334] ss:$24 sps:$4 sm:$0xff]   ;;  %3512 = vmatpush1.bf16.msra.mxu0 %v7457_v56 }
 0xb33   :  { %3513 = vmatprep.subr.bf16.mxu0 %v7465_v53  ;;  %v7525_v53 = vld [vmem:[#allocation10 + $0x514] ss:$24 sps:$4 sm:$0xff]  }
 0xb35   :  { %2791 = vmatpush1.bf16.msra.mxu1 %v7412_v6  ;;  %v7471_v6 = vld [vmem:[#allocation10 + $0x364] ss:$24 sps:$4 sm:$0xff]  }
 0xb36   :  { %2792 = vmatprep.subr.bf16.mxu1 %v7417_v12  ;;  %v7474_v12 = vld [vmem:[#allocation10 + $0x374] ss:$24 sps:$4 sm:$0xff]  }
 0xb39   :  { %2793 = vmatpush1.bf16.msra.mxu1 %v7415_v52  ;;  %v7469_v52 = vld [vmem:[#allocation10 + $0x360] ss:$24 sps:$4 sm:$0xff]  }
 0xb3a   :  { %2794 = vmatprep.subr.bf16.mxu1 %v7420_v57  ;;  %v7472_v57 = vld [vmem:[#allocation10 + $0x370] ss:$24 sps:$4 sm:$0xff]  }
 0xb3d   :  { %2795 = vmatpush1.bf16.msra.mxu1 %v7418_v58  ;;  %v7477_v58 = vld [vmem:[#allocation10 + $0x394] ss:$24 sps:$4 sm:$0xff]  }
 0xb3e   :  { %2796 = vmatprep.subr.bf16.mxu1 %v7423_v60  ;;  %v7480_v60 = vld [vmem:[#allocation10 + $0x3a4] ss:$24 sps:$4 sm:$0xff]  }
 0xb41   :  { %2797 = vmatpush1.bf16.msra.mxu1 %v7421_v59  ;;  %v7475_v59 = vld [vmem:[#allocation10 + $0x390] ss:$24 sps:$4 sm:$0xff]  }
 0xb42   :  { %2798 = vmatprep.subr.bf16.mxu1 %v7426_v62  ;;  %v7478_v62 = vld [vmem:[#allocation10 + $0x3a0] ss:$24 sps:$4 sm:$0xff]  }
 0xb45   :  { %2799 = vmatpush1.bf16.msra.mxu1 %v7424_v1  ;;  %v7483_v1 = vld [vmem:[#allocation10 + $0x3c4] ss:$24 sps:$4 sm:$0xff]  }
 0xb46   :  { %2800 = vmatprep.subr.bf16.mxu1 %v7429_v2  ;;  %v7486_v2 = vld [vmem:[#allocation10 + $0x3d4] ss:$24 sps:$4 sm:$0xff]  }
 0xb49   :  { %2801 = vmatpush1.bf16.msra.mxu1 %v7427_v8  ;;  %v7481_v8 = vld [vmem:[#allocation10 + $0x3c0] ss:$24 sps:$4 sm:$0xff]  }
 0xb4a   :  { %2802 = vmatprep.subr.bf16.mxu1 %v7432_v45  ;;  %v7484_v45 = vld [vmem:[#allocation10 + $0x3d0] ss:$24 sps:$4 sm:$0xff]  }
 0xb4d   :  { %2803 = vmatpush1.bf16.msra.mxu1 %v7430_v9  ;;  %v7489_v9 = vld [vmem:[#allocation10 + $0x3f4] ss:$24 sps:$4 sm:$0xff]  }
 0xb4e   :  { %2804 = vmatprep.subr.bf16.mxu1 %v7435_v38  ;;  %v7492_v38 = vld [vmem:[#allocation10 + $0x404] ss:$24 sps:$4 sm:$0xff]  }
 0xb51   :  { %2805 = vmatpush1.bf16.msra.mxu1 %v7433_v10  ;;  %v7487_v10 = vld [vmem:[#allocation10 + $0x3f0] ss:$24 sps:$4 sm:$0xff]  }
 0xb52   :  { %2806 = vmatprep.subr.bf16.mxu1 %v7438_v55  ;;  %v7490_v55 = vld [vmem:[#allocation10 + $0x400] ss:$24 sps:$4 sm:$0xff]  }
 0xb55   :  { %2807 = vmatpush1.bf16.msra.mxu1 %v7436_v7  ;;  %v7495_v7 = vld [vmem:[#allocation10 + $0x424] ss:$24 sps:$4 sm:$0xff]  }
 0xb56   :  { %2808 = vmatprep.subr.bf16.mxu1 %v7441_v46  ;;  %v7498_v46 = vld [vmem:[#allocation10 + $0x434] ss:$24 sps:$4 sm:$0xff]  }
 0xb59   :  { %2809 = vmatpush1.bf16.msra.mxu1 %v7439_v50  ;;  %v7493_v50 = vld [vmem:[#allocation10 + $0x420] ss:$24 sps:$4 sm:$0xff]  }
 0xb5a   :  { %2810 = vmatprep.subr.bf16.mxu1 %v7444_v49  ;;  %v7496_v49 = vld [vmem:[#allocation10 + $0x430] ss:$24 sps:$4 sm:$0xff]  }
 0xb5d   :  { %2811 = vmatpush1.bf16.msra.mxu1 %v7442_v13  ;;  %v7501_v13 = vld [vmem:[#allocation10 + $0x454] ss:$24 sps:$4 sm:$0xff]  }
 0xb5e   :  { %2812 = vmatprep.subr.bf16.mxu1 %v7447_v15  ;;  %v7504_v15 = vld [vmem:[#allocation10 + $0x464] ss:$24 sps:$4 sm:$0xff]  }
 0xb61   :  { %2813 = vmatpush1.bf16.msra.mxu1 %v7445_v16  ;;  %v7499_v16 = vld [vmem:[#allocation10 + $0x450] ss:$24 sps:$4 sm:$0xff]  }
 0xb62   :  { %2814 = vmatprep.subr.bf16.mxu1 %v7450_v17  ;;  %v7502_v17 = vld [vmem:[#allocation10 + $0x460] ss:$24 sps:$4 sm:$0xff]  }
 0xb65   :  { %2815 = vmatpush1.bf16.msra.mxu1 %v7448_v18  ;;  %v7507_v18 = vld [vmem:[#allocation10 + $0x484] ss:$24 sps:$4 sm:$0xff]  }
 0xb66   :  { %2816 = vmatprep.subr.bf16.mxu1 %v7453_v19  ;;  %v7510_v19 = vld [vmem:[#allocation10 + $0x494] ss:$24 sps:$4 sm:$0xff]  }
 0xb69   :  { %2817 = vmatpush1.bf16.msra.mxu1 %v7451_v23  ;;  %v7505_v23 = vld [vmem:[#allocation10 + $0x480] ss:$24 sps:$4 sm:$0xff]  }
 0xb6a   :  { %2818 = vmatprep.subr.bf16.mxu1 %v7456_v24  ;;  %v7508_v24 = vld [vmem:[#allocation10 + $0x490] ss:$24 sps:$4 sm:$0xff]  }
 0xb6d   :  { %2819 = vmatpush1.bf16.msra.mxu1 %v7454_v25  ;;  %v7513_v25 = vld [vmem:[#allocation10 + $0x4b4] ss:$24 sps:$4 sm:$0xff]  }
 0xb70   :  { %2821 = vmatmul.mubr.bf16.vlgmr.msra.gmra.mrb[40].mxu1 %v2347_v41 }
 0xc43   :  { %v2822_v34 = vpop.f32.mrb[40].mxu1 }
 0xc44   :  { %v7034_v31 = vadd.f32 %v2822_v34, %v2418_v27  ;;  %v2824_v36 = vpop.f32.mrb[41].mxu1 }
 0xc45   :  { %v7035_v0 = vadd.f32 %v2824_v36, %v2422_v33  ;;  %v2826_v11 = vpop.f32.mrb[42].mxu1 }
 0xc46   :  { %v8921_v39 = vadd.f32 %v7034_v31, %v8849_v4  ;;  %v7036_v61 = vadd.f32 %v2826_v11, %v2418_v27  ;;  %v2828_v3 = vpop.f32.mrb[43].mxu1  ;;  %v7511_v27 = vld [vmem:[#allocation10 + $0x4b0] ss:$24 sps:$4 sm:$0xff]  }
 0xc47   :  { %v8924_v35 = vadd.f32 %v7035_v0, %v8845_v32  ;;  %v7037_v63 = vadd.f32 %v2828_v3, %v2422_v33  ;;  %v7462_v32 = vld [vmem:[#allocation10 + $0x314] ss:$24 sps:$4 sm:$0xff]   ;;  %v7514_v33 = vld [vmem:[#allocation10 + $0x4c0] ss:$24 sps:$4 sm:$0xff]  }
 0xc48   :  { %v8927_v40 = vadd.f32 %v7036_v61, %v8851_v22  ;;  %3597 = vmatprep.subr.bf16.mxu1 %v7462_v32  ;;  %v7463_v22 = vld [vmem:[#allocation10 + $0x330] ss:$24 sps:$4 sm:$0xff]  }
 0xc49   :  { %v8930_v41 = vadd.f32 %v7037_v63, %v8847_v37  ;;  %v2837_v42 = vadd.f32 %v8924_v35, %v8921_v39  ;;  %3598 = vmatpush1.bf16.msra.mxu1 %v7460_v47  ;;  %v7466_v37 = vld [vmem:[#allocation10 + $0x340] ss:$24 sps:$4 sm:$0xff]   ;;  %3514 = vmatpush1.bf16.msra.mxu0 %v7463_v22  ;;  %v7520_v32 = vld [vmem:[#allocation10 + $0x4f0] ss:$24 sps:$4 sm:$0xff]   ;;  %v7528_v22 = vld [vmem:[#allocation10 + $0x524] ss:$24 sps:$4 sm:$0xff]  }
 0xc4a   :  { %3599 = vmatprep.subr.bf16.mxu1 %v7468_v51  ;;  %3515 = vmatprep.subr.bf16.mxu0 %v7471_v6  ;;  %v7517_v47 = vld [vmem:[#allocation10 + $0x4e0] ss:$24 sps:$4 sm:$0xff]   ;;  %v7523_v51 = vld [vmem:[#allocation10 + $0x510] ss:$24 sps:$4 sm:$0xff]   ;;  %v7531_v6 = vld [vmem:[#allocation10 + $0x544] ss:$24 sps:$4 sm:$0xff]  }
 0xc4b   :  { %2838 = vadd.xlane.f32.xlu0 %v2837_v42  ;;  %v2840_v4 = vadd.f32 %v8930_v41, %v8927_v40 }
 0xc4d   :  { %2841 = vadd.xlane.f32.xlu1 %v2840_v4  ;;  %3600 = vmatpush1.bf16.msra.mxu1 %v7466_v37  ;;  %v7526_v37 = vld [vmem:[#allocation10 + $0x520] ss:$24 sps:$4 sm:$0xff]  }
 0xc4e   :  { %3601 = vmatprep.subr.bf16.mxu1 %v7474_v12  ;;  %3516 = vmatpush1.bf16.msra.mxu0 %v7469_v52  ;;  %v7529_v12 = vld [vmem:[#allocation10 + $0x540] ss:$24 sps:$4 sm:$0xff]   ;;  %v7532_v52 = vld [vmem:[#allocation10 + $0x550] ss:$24 sps:$4 sm:$0xff]  }
 0xc4f   :  { %3517 = vmatprep.subr.bf16.mxu0 %v7477_v58  ;;  %v7537_v58 = vld [vmem:[#allocation10 + $0x574] ss:$24 sps:$4 sm:$0xff]  }
 0xc51   :  { %3602 = vmatpush1.bf16.msra.mxu1 %v7472_v57  ;;  %v7534_v57 = vld [vmem:[#allocation10 + $0x554] ss:$24 sps:$4 sm:$0xff]  }
 0xc52   :  { %3603 = vmatprep.subr.bf16.mxu1 %v7480_v60  ;;  %3518 = vmatpush1.bf16.msra.mxu0 %v7475_v59  ;;  %v7535_v60 = vld [vmem:[#allocation10 + $0x570] ss:$24 sps:$4 sm:$0xff]   ;;  %v7540_v59 = vld [vmem:[#allocation10 + $0x584] ss:$24 sps:$4 sm:$0xff]  }
 0xc53   :  { %3519 = vmatprep.subr.bf16.mxu0 %v7483_v1  ;;  %v7543_v1 = vld [vmem:[#allocation10 + $0x5a4] ss:$24 sps:$4 sm:$0xff]  }
 0xc55   :  { %3604 = vmatpush1.bf16.msra.mxu1 %v7478_v62  ;;  %v7538_v62 = vld [vmem:[#allocation10 + $0x580] ss:$24 sps:$4 sm:$0xff]  }
 0xc56   :  { %3605 = vmatprep.subr.bf16.mxu1 %v7486_v2  ;;  %3520 = vmatpush1.bf16.msra.mxu0 %v7481_v8  ;;  %v7546_v2 = vld [vmem:[#allocation10 + $0x5b4] ss:$24 sps:$4 sm:$0xff]   ;;  %v7541_v8 = vld [vmem:[#allocation10 + $0x5a0] ss:$24 sps:$4 sm:$0xff]  }
 0xc57   :  { %3521 = vmatprep.subr.bf16.mxu0 %v7489_v9  ;;  %v7549_v9 = vld [vmem:[#allocation10 + $0x5d4] ss:$24 sps:$4 sm:$0xff]  }
 0xc59   :  { %3606 = vmatpush1.bf16.msra.mxu1 %v7484_v45  ;;  %v7544_v45 = vld [vmem:[#allocation10 + $0x5b0] ss:$24 sps:$4 sm:$0xff]  }
 0xc5a   :  { %3607 = vmatprep.subr.bf16.mxu1 %v7492_v38  ;;  %3522 = vmatpush1.bf16.msra.mxu0 %v7487_v10  ;;  %v7552_v38 = vld [vmem:[#allocation10 + $0x5e4] ss:$24 sps:$4 sm:$0xff]   ;;  %v7547_v10 = vld [vmem:[#allocation10 + $0x5d0] ss:$24 sps:$4 sm:$0xff]  }
 0xc5b   :  { %3523 = vmatprep.subr.bf16.mxu0 %v7495_v7  ;;  %v7555_v7 = vld [vmem:[#allocation10 + $0x30c] ss:$24 sps:$4 sm:$0xff]  }
 0xc5d   :  { %3608 = vmatpush1.bf16.msra.mxu1 %v7490_v55  ;;  %v7550_v55 = vld [vmem:[#allocation10 + $0x5e0] ss:$24 sps:$4 sm:$0xff]  }
 0xc5e   :  { %3609 = vmatprep.subr.bf16.mxu1 %v7498_v46  ;;  %3524 = vmatpush1.bf16.msra.mxu0 %v7493_v50 }
 0xc5f   :  { %3525 = vmatprep.subr.bf16.mxu0 %v7501_v13 }
 0xc61   :  { %3610 = vmatpush1.bf16.msra.mxu1 %v7496_v49 }
 0xc62   :  { %3611 = vmatprep.subr.bf16.mxu1 %v7504_v15  ;;  %3526 = vmatpush1.bf16.msra.mxu0 %v7499_v16 }
 0xc63   :  { %3527 = vmatprep.subr.bf16.mxu0 %v7507_v18  ;;  %v2836_v18 = vld [vmem:[%s9419_s15] sm:$0x3] }
 0xc65   :  { %3612 = vmatpush1.bf16.msra.mxu1 %v7502_v17  ;;  %v2835_v17 = vld [vmem:[%s9418_s14] sm:$0x3] }
 0xc66   :  { %3613 = vmatprep.subr.bf16.mxu1 %v7510_v19  ;;  %3528 = vmatpush1.bf16.msra.mxu0 %v7505_v23  ;;  %v2873_v19 = vrot.slane %v2835_v17, %v8645_v30  ;;  %v2877_v23 = vrot.slane %v2835_v17, %v8642_v29 }
 0xc67   :  { %3529 = vmatprep.subr.bf16.mxu0 %v7513_v25 }
 0xc69   :  { %3614 = vmatpush1.bf16.msra.mxu1 %v7508_v24 }
 0xc6a   :  { %3615 = vmatprep.subr.bf16.mxu1 %v7516_v26  ;;  %3530 = vmatpush1.bf16.msra.mxu0 %v7511_v27 }
 0xc6d   :  { %3616 = vmatpush1.bf16.msra.mxu1 %v7514_v33  ;;  %v2888_v33 = vrot.slane %v2836_v18, %v8645_v30 }
 0xcd8   :  { %v2839_v34 = vpop.xlane.xlu0 %2838 }
 0xcd9   :  { %v2843_v31 = vmul.f32 0.00390625, %v2839_v34  ;;  %v2892_v34 = vrot.slane %v2836_v18, %v8642_v29 }
 0xcda   :  { %v2842_v36 = vpop.xlane.xlu1 %2841 }
 0xcdb   :  { %v8937_v0 = vsub.f32 %v8921_v39, %v2843_v31  ;;  %v8940_v11 = vsub.f32 %v8924_v35, %v2843_v31  ;;  %v2844_v61 = vmul.f32 0.00390625, %v2842_v36 }
 0xcdd   :  { %v8943_v3 = vsub.f32 %v8927_v40, %v2844_v61  ;;  %v8946_v63 = vsub.f32 %v8930_v41, %v2844_v61  ;;  %v2849_v42 = vmul.f32 %v8937_v0, %v8937_v0  ;;  %v2850_v4 = vmul.f32 %v8940_v11, %v8940_v11  ;;  %v7519_v40 = vld [vmem:[#allocation10 + $0x4e4] ss:$24 sps:$4 sm:$0xff]   ;;  %v7522_v41 = vld [vmem:[#allocation10 + $0x4f4] ss:$24 sps:$4 sm:$0xff]  }
 0xcde   :  { %3531 = vmatprep.subr.bf16.mxu0 %v7519_v40  ;;  %3617 = vmatprep.subr.bf16.mxu1 %v7522_v41  ;;  %v7553_v40 = vld [vmem:[#allocation10 + $0x308] ss:$24 sps:$4 sm:$0xff]   ;;  %v7561_v41 = vld [vmem:[#allocation10 + $0x36c] ss:$24 sps:$4 sm:$0xff]  }
 0xcdf   :  { %v2853_v56 = vadd.f32 %v2850_v4, %v2849_v42  ;;  %v2851_v39 = vmul.f32 %v8943_v3, %v8943_v3  ;;  %v2852_v35 = vmul.f32 %v8946_v63, %v8946_v63  ;;  %3532 = vmatpush1.bf16.msra.mxu0 %v7517_v47  ;;  %3618 = vmatpush1.bf16.msra.mxu1 %v7520_v32  ;;  %v7556_v47 = vld [vmem:[#allocation10 + $0x338] ss:$24 sps:$4 sm:$0xff]   ;;  %v7559_v32 = vld [vmem:[#allocation10 + $0x368] ss:$24 sps:$4 sm:$0xff]  }
 0xce0   :  { %3533 = vmatprep.subr.bf16.mxu0 %v7525_v53  ;;  %3619 = vmatprep.subr.bf16.mxu1 %v7528_v22  ;;  %v7564_v53 = vld [vmem:[#allocation10 + $0x39c] ss:$24 sps:$4 sm:$0xff]   ;;  %v7567_v22 = vld [vmem:[#allocation10 + $0x3cc] ss:$24 sps:$4 sm:$0xff]  }
 0xce1   :  { %2854 = vadd.xlane.f32.xlu0 %v2853_v56  ;;  %v2856_v43 = vadd.f32 %v2852_v35, %v2851_v39 }
 0xce3   :  { %2857 = vadd.xlane.f32.xlu1 %v2856_v43  ;;  %3534 = vmatpush1.bf16.msra.mxu0 %v7523_v51  ;;  %v7562_v51 = vld [vmem:[#allocation10 + $0x398] ss:$24 sps:$4 sm:$0xff]  }
 0xce4   :  { %3620 = vmatpush1.bf16.msra.mxu1 %v7526_v37  ;;  %3535 = vmatprep.subr.bf16.mxu0 %v7531_v6  ;;  %v7565_v37 = vld [vmem:[#allocation10 + $0x3c8] ss:$24 sps:$4 sm:$0xff]   ;;  %v7570_v6 = vld [vmem:[#allocation10 + $0x3fc] ss:$24 sps:$4 sm:$0xff]  }
 0xce5   :  { %3621 = vmatprep.subr.bf16.mxu1 %v7534_v57  ;;  %v7571_v57 = vld [vmem:[#allocation10 + $0x428] ss:$24 sps:$4 sm:$0xff]  }
 0xce7   :  { %3536 = vmatpush1.bf16.msra.mxu0 %v7529_v12  ;;  %v7568_v12 = vld [vmem:[#allocation10 + $0x3f8] ss:$24 sps:$4 sm:$0xff]  }
 0xce8   :  { %3622 = vmatpush1.bf16.msra.mxu1 %v7532_v52  ;;  %3537 = vmatprep.subr.bf16.mxu0 %v7537_v58  ;;  %v7573_v52 = vld [vmem:[#allocation10 + $0x42c] ss:$24 sps:$4 sm:$0xff]   ;;  %v7576_v58 = vld [vmem:[#allocation10 + $0x45c] ss:$24 sps:$4 sm:$0xff]  }
 0xce9   :  { %3623 = vmatprep.subr.bf16.mxu1 %v7540_v59  ;;  %v7579_v59 = vld [vmem:[#allocation10 + $0x48c] ss:$24 sps:$4 sm:$0xff]  }
 0xceb   :  { %3538 = vmatpush1.bf16.msra.mxu0 %v7535_v60  ;;  %v7574_v60 = vld [vmem:[#allocation10 + $0x458] ss:$24 sps:$4 sm:$0xff]  }
 0xcec   :  { %3624 = vmatpush1.bf16.msra.mxu1 %v7538_v62  ;;  %3539 = vmatprep.subr.bf16.mxu0 %v7543_v1  ;;  %v7577_v62 = vld [vmem:[#allocation10 + $0x488] ss:$24 sps:$4 sm:$0xff]   ;;  %v7582_v1 = vld [vmem:[#allocation10 + $0x4bc] ss:$24 sps:$4 sm:$0xff]  }
 0xced   :  { %3625 = vmatprep.subr.bf16.mxu1 %v7546_v2  ;;  %v7580_v2 = vld [vmem:[#allocation10 + $0x4b8] ss:$24 sps:$4 sm:$0xff]  }
 0xcef   :  { %3540 = vmatpush1.bf16.msra.mxu0 %v7541_v8  ;;  %v7585_v8 = vld [vmem:[#allocation10 + $0x4ec] ss:$24 sps:$4 sm:$0xff]  }
 0xcf0   :  { %3626 = vmatpush1.bf16.msra.mxu1 %v7544_v45  ;;  %3541 = vmatprep.subr.bf16.mxu0 %v7549_v9  ;;  %v7583_v45 = vld [vmem:[#allocation10 + $0x4e8] ss:$24 sps:$4 sm:$0xff]   ;;  %v7588_v9 = vld [vmem:[#allocation10 + $0x51c] ss:$24 sps:$4 sm:$0xff]  }
 0xcf1   :  { %3627 = vmatprep.subr.bf16.mxu1 %v7552_v38  ;;  %v7586_v38 = vld [vmem:[#allocation10 + $0x518] ss:$24 sps:$4 sm:$0xff]  }
 0xcf3   :  { %3542 = vmatpush1.bf16.msra.mxu0 %v7547_v10  ;;  %v7591_v10 = vld [vmem:[#allocation10 + $0x54c] ss:$24 sps:$4 sm:$0xff]  }
 0xcf4   :  { %3628 = vmatpush1.bf16.msra.mxu1 %v7550_v55  ;;  %3554 = vmatprep.subr.bf16.mxu0 %v7555_v7  ;;  %v7589_v55 = vld [vmem:[#allocation10 + $0x548] ss:$24 sps:$4 sm:$0xff]   ;;  %v7594_v7 = vld [vmem:[#allocation10 + $0x57c] ss:$24 sps:$4 sm:$0xff]  }
 0xcf5   :  { %6986 = vmatprep.subr.bf16.mxu1 %v8334_v20 }
 0xd6e   :  { %v2855_v46 = vpop.xlane.xlu0 %2854 }
 0xd6f   :  { %v2859_v50 = vmul.f32 0.00390625, %v2855_v46  ;;  %v7592_v46 = vld [vmem:[#allocation10 + $0x578] ss:$24 sps:$4 sm:$0xff]  }
 0xd70   :  { %v2858_v49 = vpop.xlane.xlu1 %2857 }
 0xd71   :  { %v2861_v13 = vadd.f32 1e-12, %v2859_v50  ;;  %v2860_v15 = vmul.f32 0.00390625, %v2858_v49  ;;  %v7597_v50 = vld [vmem:[#allocation10 + $0x5ac] ss:$24 sps:$4 sm:$0xff]  }
 0xd72   :  { %v7595_v49 = vld [vmem:[#allocation10 + $0x5a8] ss:$24 sps:$4 sm:$0xff]  }
 0xd73   :  { %7993 = vrsqrt.f32 %v2861_v13  ;;  %v2862_v16 = vadd.f32 1e-12, %v2860_v15  ;;  %v7600_v13 = vld [vmem:[#allocation10 + $0x5dc] ss:$24 sps:$4 sm:$0xff]   ;;  %v7598_v15 = vld [vmem:[#allocation10 + $0x5d8] ss:$24 sps:$4 sm:$0xff]  }
 0xd75   :  { %7995 = vrsqrt.f32 %v2862_v16  ;;  %v6536_v16 = vld [vmem:[%s9409_s5 + $0x6] sm:$0x3f] }
 0xd7d   :  { %v7994_v24 = vpop.eup %7993 }
 0xd7e   :  { %v2865_v25 = vmul.f32 %v7994_v24, %v8937_v0  ;;  %v2866_v26 = vmul.f32 %v7994_v24, %v8940_v11 }
 0xd7f   :  { %v7996_v27 = vpop.eup %7995 }
 0xd80   :  { %v2867_v31 = vmul.f32 %v7996_v27, %v8943_v3  ;;  %v2868_v36 = vmul.f32 %v7996_v27, %v8946_v63  ;;  %v2881_v61 = vmul.f32 %v2877_v23, %v2866_v26  ;;  %v2880_v42 = vmul.f32 %v2873_v19, %v2865_v25  ;;  %v7558_v63 = vld [vmem:[#allocation10 + $0x33c] ss:$24 sps:$4 sm:$0xff]  }
 0xd81   :  { %v3008_v25 = vrot.slane %v6536_v16, %v8642_v29  ;;  %v3024_v26 = vrot.slane %v6536_v16, %v425_v54 }
 0xd82   :  { %v2883_v4 = vmul.f32 %v2877_v23, %v2868_v36  ;;  %v2882_v56 = vmul.f32 %v2873_v19, %v2867_v31  ;;  %v8971_v39 = vadd.f32 %v2892_v34, %v2881_v61  ;;  %v8975_v0 = vadd.f32 %v2888_v33, %v2880_v42 }
 0xd83   :  { %v3020_v19 = vrot.slane %v6536_v16, %v421_v48  ;;  %v3004_v48 = vrot.slane %v6536_v16, %v8645_v30 }
 0xd84   :  { %v8973_v35 = vadd.f32 %v2892_v34, %v2883_v4  ;;  %v8977_v11 = vadd.f32 %v2888_v33, %v2882_v56  ;;  %v3012_v4 = vrot.slane %v6536_v16, %v8676_v21  ;;  %v3016_v56 = vrot.slane %v6536_v16, %v8732_v44 }
 0xd86   :  { %v2900_v43 = vpack.c.bf16 %v8973_v35, %v8971_v39  ;;  %v8983_v3 = vpack.c.bf16 %v8977_v11, %v8975_v0 }
 0xd88   :  { %3543 = vmatprep.mubr.bf16.mxu0 %v2900_v43  ;;  %3629 = vmatprep.mubr.bf16.mxu1 %v2900_v43 }
 0xd89   :  { %3544 = vmatmul.mubr.bf16.vlgmr.msra.gmra.mrb[16].mxu0 %v8983_v3  ;;  %3630 = vmatmul.mubr.bf16.vlgmr.msra.gmra.mrb[44].mxu1 %v8983_v3 }
 0xd8a   :  { %3555 = vmatpush1.bf16.msra.mxu0 %v7553_v40  ;;  %3586 = vmatprep.mubr.bf16.mxu0 %v2900_v43 }
 0xd8b   :  { %3556 = vmatprep.subr.bf16.mxu0 %v7558_v63  ;;  %6988 = vmatprep.mubr.msk.bf16.mxu1 %vm8335_vm0, %v8334_v20 }
 0xd8e   :  { %3557 = vmatpush1.bf16.msra.mxu0 %v7556_v47 }
 0xd8f   :  { %3558 = vmatprep.subr.bf16.mxu0 %v7561_v41 }
 0xd92   :  { %3559 = vmatpush1.bf16.msra.mxu0 %v7559_v32 }
 0xd93   :  { %3560 = vmatprep.subr.bf16.mxu0 %v7564_v53 }
 0xd96   :  { %3561 = vmatpush1.bf16.msra.mxu0 %v7562_v51 }
 0xd97   :  { %3562 = vmatprep.subr.bf16.mxu0 %v7567_v22 }
 0xd9a   :  { %3563 = vmatpush1.bf16.msra.mxu0 %v7565_v37 }
 0xd9b   :  { %3564 = vmatprep.subr.bf16.mxu0 %v7570_v6 }
 0xd9e   :  { %3565 = vmatpush1.bf16.msra.mxu0 %v7568_v12 }
 0xd9f   :  { %3566 = vmatprep.subr.bf16.mxu0 %v7573_v52 }
 0xda2   :  { %3567 = vmatpush1.bf16.msra.mxu0 %v7571_v57 }
 0xda3   :  { %3568 = vmatprep.subr.bf16.mxu0 %v7576_v58 }
 0xda6   :  { %3569 = vmatpush1.bf16.msra.mxu0 %v7574_v60 }
 0xda7   :  { %3570 = vmatprep.subr.bf16.mxu0 %v7579_v59 }
 0xdaa   :  { %3571 = vmatpush1.bf16.msra.mxu0 %v7577_v62 }
 0xdab   :  { %3572 = vmatprep.subr.bf16.mxu0 %v7582_v1 }
 0xdae   :  { %3573 = vmatpush1.bf16.msra.mxu0 %v7580_v2 }
 0xdaf   :  { %3574 = vmatprep.subr.bf16.mxu0 %v7585_v8 }
 0xdb2   :  { %3575 = vmatpush1.bf16.msra.mxu0 %v7583_v45 }
 0xdb3   :  { %3576 = vmatprep.subr.bf16.mxu0 %v7588_v9 }
 0xdb6   :  { %3577 = vmatpush1.bf16.msra.mxu0 %v7586_v38 }
 0xdb7   :  { %3578 = vmatprep.subr.bf16.mxu0 %v7591_v10 }
 0xdba   :  { %3579 = vmatpush1.bf16.msra.mxu0 %v7589_v55 }
 0xdbb   :  { %3580 = vmatprep.subr.bf16.mxu0 %v7594_v7 }
 0xdbe   :  { %3581 = vmatpush1.bf16.msra.mxu0 %v7592_v46 }
 0xdbf   :  { %3582 = vmatprep.subr.bf16.mxu0 %v7597_v50 }
 0xdc2   :  { %3583 = vmatpush1.bf16.msra.mxu0 %v7595_v49 }
 0xdc3   :  { %3584 = vmatprep.subr.bf16.mxu0 %v7600_v13 }
 0xdc6   :  { %3585 = vmatpush1.bf16.msra.mxu0 %v7598_v15 }
 0xdc7   :  { %7010 = vmatprep.subr.bf16.mxu0 %v8334_v20 }
 0xdc9   :  { %3587 = vmatmul.mubr.bf16.vlgmr.msra.gmra.mrb[20].mxu0 %v8983_v3 }
 0xdca   :  { %7012 = vmatprep.mubr.msk.bf16.mxu0 %vm8335_vm0, %v8334_v20 }
 0xe5c   :  { %v3545_v17 = vpop.f32.mrb[16].mxu0  ;;  %v3631_v18 = vpop.f32.mrb[44].mxu1 }
 0xe5d   :  { %v3547_v23 = vpop.f32.mrb[17].mxu0  ;;  %v3633_v24 = vpop.f32.mrb[45].mxu1  ;;  %v3546_v54 = vadd.f32 %v3545_v17, %v3004_v48  ;;  %v3632_v62 = vadd.f32 %v3631_v18, %v3020_v19 }
 0xe5e   :  { %v3549_v27 = vpop.f32.mrb[18].mxu0  ;;  %v3635_v33 = vpop.f32.mrb[46].mxu1  ;;  %v3548_v47 = vadd.f32 %v3547_v23, %v3008_v25  ;;  %v3634_v22 = vadd.f32 %v3633_v24, %v3024_v26 }
 0xe5f   :  { %v9001_v34 = vadd.f32 %v3635_v33, %v3020_v19  ;;  %v3551_v31 = vpop.f32.mrb[19].mxu0  ;;  %v3637_v36 = vpop.f32.mrb[47].mxu1  ;;  %v3640_v37 = vmul.f32 0.088388346, %v3546_v54  ;;  %v3550_v58 = vadd.f32 %v3549_v27, %v3004_v48  ;;  %v3750_v8 = vpack.c.bf16 %v3632_v62, %v3632_v62 }
 0xe60   :  { %v9003_v61 = vadd.f32 %v3551_v31, %v3008_v25  ;;  %v9005_v42 = vadd.f32 %v3637_v36, %v3024_v26  ;;  %v3844_v6 = vmul.f32 0.088388346, %v3548_v47  ;;  %v3954_v52 = vpack.c.bf16 %v3634_v22, %v3634_v22 }
 0xe61   :  { %v3642_v57 = vpack.c.bf16 %v3640_v37, %v3640_v37  ;;  %v3641_v2 = vmul.f32 0.088388346, %v3550_v58  ;;  %v3756_v9 = vsel %vm1168_vm1, %v3750_v8, 0 }
 0xe62   :  { %v3846_v60 = vpack.c.bf16 %v3844_v6, %v3844_v6  ;;  %v3960_v1 = vsel %vm1168_vm1, %v3954_v52, 0  ;;  %v3955_v62 = vpack.c.bf16 %v9005_v42, %v9005_v42 }
 0xe63   :  { %v3643_v45 = vpack.c.bf16 %v3641_v2, %v3641_v2 }
 0xe64   :  { %v4006_v2 = vsel %vm1168_vm1, %v3955_v62, 0  ;;  %v7637_v62 = vld [vmem:[#allocation11 + $0x1c0] ss:$8 sps:$4 sm:$0xff]  }
 0xe9c   :  { %v3588_v43 = vpop.f32.mrb[20].mxu0 }
 0xe9d   :  { %v3589_v40 = vadd.f32 %v3588_v43, %v3012_v4  ;;  %v3590_v28 = vpop.f32.mrb[21].mxu0 }
 0xe9e   :  { %v3591_v3 = vadd.f32 %v3590_v28, %v3016_v56  ;;  %v3592_v63 = vpop.f32.mrb[22].mxu0 }
 0xe9f   :  { %v3644_v41 = vpack.c.bf16 %v3589_v40, %v3589_v40  ;;  %v3594_v32 = vpop.f32.mrb[23].mxu0  ;;  %v3593_v12 = vadd.f32 %v3592_v63, %v3012_v4 }
 0xea0   :  { %v3848_v53 = vpack.c.bf16 %v3591_v3, %v3591_v3  ;;  %v9010_v51 = vadd.f32 %v3594_v32, %v3016_v56 }
 0xea1   :  { %6987 = vmatpush3.bf16.xpose.msra.mxu1 %v3644_v41  ;;  %v3645_v59 = vpack.c.bf16 %v3593_v12, %v3593_v12 }
 0xea2   :  { %7011 = vmatpush3.bf16.xpose.msra.mxu0 %v3848_v53  ;;  %6992 = vmatprep.subr.bf16.mxu1 %v8334_v20 }
 0xea3   :  { %7022 = vmatprep.subr.bf16.mxu0 %v8334_v20 }
 0xea8   :  { %6989 = vmatmul.mubr.bf16.vlgmr.msra.gmra.mrb[48].mxu1 %v3642_v57 }
 0xea9   :  { %6993 = vmatpush3.bf16.xpose.msra.mxu1 %v3645_v59  ;;  %7013 = vmatmul.mubr.bf16.vlgmr.msra.gmra.mrb[24].mxu0 %v3846_v60  ;;  %v3845_v59 = vmul.f32 0.088388346, %v9003_v61 }
 0xeaa   :  { %7023 = vmatpush3.bf16.msra.mxu0 %v3960_v1  ;;  %6994 = vmatprep.mubr.msk.bf16.mxu1 %vm8335_vm0, %v8334_v20 }
 0xeab   :  { %6998 = vmatprep.subr.bf16.mxu1 %v8334_v20  ;;  %7024 = vmatprep.mubr.msk.bf16.mxu0 %vm8335_vm0, %v8334_v20  ;;  %v3847_v1 = vpack.c.bf16 %v3845_v59, %v3845_v59  ;;  %v7639_v59 = vld [vmem:[#allocation11 + $0x1c4] ss:$8 sps:$4 sm:$0xff]  }
 0xeb0   :  { %6995 = vmatmul.mubr.bf16.vlgmr.msra.gmra.mrb[52].mxu1 %v3643_v45 }
 0xeb1   :  { %6999 = vmatpush3.bf16.msra.mxu1 %v3756_v9  ;;  %7000 = vmatprep.mubr.msk.bf16.mxu1 %vm8335_vm0, %v8334_v20 }
 0xeb2   :  { %7004 = vmatprep.subr.bf16.mxu1 %v8334_v20 }
 0xf7b   :  { %v3680_v38 = vpop.f32.mrb[48].mxu1 }
 0xf7c   :  { %v3681_v10 = vadd.f32 %v3680_v38, %v8720_v5  ;;  %v6990_v55 = vpop.f32.mrb[49].mxu1  ;;  %v3884_v7 = vpop.f32.mrb[24].mxu0 }
 0xf7d   :  { %v3683_v46 = vpop.f32.mrb[50].mxu1  ;;  %v7014_v50 = vpop.f32.mrb[25].mxu0  ;;  %v3885_v56 = vadd.f32 %v3884_v7, %v8720_v5  ;;  %v3751_v5 = vpack.c.bf16 %v9001_v34, %v9001_v34  ;;  %v3849_v34 = vpack.c.bf16 %v9010_v51, %v9010_v51 }
 0xf7e   :  { %v6991_v49 = vpop.f32.mrb[51].mxu1  ;;  %v3887_v13 = vpop.f32.mrb[26].mxu0  ;;  %v3726_v15 = vsel %vm1138_vm2, %v3681_v10, -inf }
 0xf7f   :  { %v7015_v16 = vpop.f32.mrb[27].mxu0  ;;  %3727 = vmax.xlane.f32.xlu0 %v3726_v15  ;;  %v3930_v40 = vsel %vm1138_vm2, %v3885_v56, -inf  ;;  %v3802_v6 = vsel %vm1168_vm1, %v3751_v5, 0  ;;  %v7624_v5 = vld [vmem:[#allocation11 + $0x174] ss:$8 sps:$4 sm:$0xff]  }
 0xf83   :  { %v3720_v17 = vpop.f32.mrb[52].mxu1 }
 0xf84   :  { %v3721_v18 = vadd.f32 %v3720_v17, %v8725_v14  ;;  %v6996_v19 = vpop.f32.mrb[53].mxu1 }
 0xf85   :  { %v3723_v23 = vpop.f32.mrb[54].mxu1 }
 0xf86   :  { %v6997_v24 = vpop.f32.mrb[55].mxu1  ;;  %v3729_v25 = vsel %vm1138_vm2, %v3721_v18, -inf }
 0xf87   :  { %3730 = vmax.xlane.f32.xlu1 %v3729_v25 }
0x100c   :  { %v3728_v26 = vpop.xlane.xlu0 %3727 }
0x100d   :  { %v3732_v27 = vsub.f32 %v3681_v10, %v3728_v26 }
0x100f   :  { %v3734_v33 = vmul.f32 1.442695, %v3732_v27 }
0x1011   :  { %7997 = vpow2.f32 %v3734_v33 }
0x1014   :  { %v3731_v31 = vpop.xlane.xlu1 %3730 }
0x1015   :  { %v3733_v36 = vsub.f32 %v3721_v18, %v3731_v31 }
0x1017   :  { %v3736_v4 = vmul.f32 1.442695, %v3733_v36  ;;  %v7601_v36 = vld [vmem:[#allocation11 + $0x100] ss:$8 sps:$4 sm:$0xff]  }
0x1019   :  { %7999 = vpow2.f32 %v3736_v4  ;;  %v7603_v4 = vld [vmem:[#allocation11 + $0x104] ss:$8 sps:$4 sm:$0xff]  }
0x101a   :  { %4256 = vmatprep.subr.bf16.mxu0 %v7603_v4  ;;  %v7649_v4 = vld [vmem:[#allocation13 + $0x200] ss:$16 sps:$4 sm:$0xff]  }
0x101b   :  { %v7998_v48 = vpop.eup %7997 }
0x101c   :  { %v3738_v43 = vsel %vm1138_vm2, %v7998_v48, 0.0 }
0x101d   :  { %3739 = vadd.xlane.f32.xlu0 %v3738_v43  ;;  %v7609_v43 = vld [vmem:[#allocation11 + $0x124] ss:$8 sps:$4 sm:$0xff]  }
0x1021   :  { %3931 = vmax.xlane.f32.xlu0 %v3930_v40  ;;  %v7607_v40 = vld [vmem:[#allocation11 + $0x120] ss:$8 sps:$4 sm:$0xff]  }
0x1023   :  { %v8000_v28 = vpop.eup %7999 }
0x1024   :  { %v3741_v54 = vsel %vm1138_vm2, %v8000_v28, 0.0 }
0x1025   :  { %3742 = vadd.xlane.f32.xlu1 %v3741_v54  ;;  %v7610_v54 = vld [vmem:[#allocation11 + $0x130] ss:$8 sps:$4 sm:$0xff]  }
0x10aa   :  { %v3740_v3 = vpop.xlane.xlu0 %3739 }
0x10ab   :  { %8001 = vrcp.f32 %v3740_v3  ;;  %v7615_v3 = vld [vmem:[#allocation11 + $0x144] ss:$8 sps:$4 sm:$0xff]  }
0x10ae   :  { %v3932_v63 = vpop.xlane.xlu0 %3931 }
0x10af   :  { %v3936_v47 = vsub.f32 %v3885_v56, %v3932_v63  ;;  %v7604_v56 = vld [vmem:[#allocation11 + $0x110] ss:$8 sps:$4 sm:$0xff]   ;;  %v7613_v63 = vld [vmem:[#allocation11 + $0x140] ss:$8 sps:$4 sm:$0xff]  }
0x10b1   :  { %v3938_v41 = vmul.f32 1.442695, %v3936_v47  ;;  %v7618_v47 = vld [vmem:[#allocation11 + $0x154] ss:$8 sps:$4 sm:$0xff]  }
0x10b2   :  { %v3743_v32 = vpop.xlane.xlu1 %3742 }
0x10b3   :  { %8003 = vpow2.f32 %v3938_v41  ;;  %v7616_v41 = vld [vmem:[#allocation11 + $0x150] ss:$8 sps:$4 sm:$0xff]  }
0x10b4   :  { %8005 = vrcp.f32 %v3743_v32  ;;  %v7621_v32 = vld [vmem:[#allocation11 + $0x164] ss:$8 sps:$4 sm:$0xff]  }
0x10b5   :  { %v8002_v53 = vpop.eup %8001 }
0x10b6   :  { %v3745_v22 = vmul.f32 %v8002_v53, %v7998_v48  ;;  %v7606_v48 = vld [vmem:[#allocation11 + $0x114] ss:$8 sps:$4 sm:$0xff]   ;;  %v7619_v53 = vld [vmem:[#allocation11 + $0x160] ss:$8 sps:$4 sm:$0xff]  }
0x10b8   :  { %v3748_v37 = vpack.c.bf16 %v3745_v22, %v3745_v22  ;;  %v7622_v22 = vld [vmem:[#allocation11 + $0x170] ss:$8 sps:$4 sm:$0xff]  }
0x10ba   :  { %7001 = vmatmul.mubr.msk.bf16.vlgmr.msra.gmra.mrb[56].mxu1 %vm1138_vm2, %v3748_v37  ;;  %v7627_v37 = vld [vmem:[#allocation11 + $0x184] ss:$8 sps:$4 sm:$0xff]  }
0x10bb   :  { %7005 = vmatpush3.bf16.msra.mxu1 %v3802_v6  ;;  %7006 = vmatprep.mubr.msk.bf16.mxu1 %vm8335_vm0, %v8334_v20  ;;  %v7625_v6 = vld [vmem:[#allocation11 + $0x180] ss:$8 sps:$4 sm:$0xff]  }
0x10bc   :  { %7016 = vmatprep.subr.bf16.mxu1 %v8334_v20 }
0x10bd   :  { %v8004_v12 = vpop.eup %8003 }
0x10be   :  { %v8006_v52 = vpop.eup %8005  ;;  %v3942_v57 = vsel %vm1138_vm2, %v8004_v12, 0.0 }
0x10bf   :  { %v3747_v58 = vmul.f32 %v8006_v52, %v8000_v28  ;;  %3943 = vadd.xlane.f32.xlu0 %v3942_v57  ;;  %v7612_v28 = vld [vmem:[#allocation11 + $0x134] ss:$8 sps:$4 sm:$0xff]   ;;  %v7628_v52 = vld [vmem:[#allocation11 + $0x190] ss:$8 sps:$4 sm:$0xff]   ;;  %v7633_v57 = vld [vmem:[#allocation11 + $0x1a4] ss:$8 sps:$4 sm:$0xff]  }
0x10c1   :  { %v3749_v60 = vpack.c.bf16 %v3747_v58, %v3747_v58  ;;  %v7631_v58 = vld [vmem:[#allocation11 + $0x1a0] ss:$8 sps:$4 sm:$0xff]  }
0x10c3   :  { %7007 = vmatmul.mubr.msk.bf16.vlgmr.msra.gmra.mrb[60].mxu1 %vm1138_vm2, %v3749_v60  ;;  %v7636_v60 = vld [vmem:[#allocation11 + $0x1b4] ss:$8 sps:$4 sm:$0xff]  }
0x10c4   :  { %7017 = vmatpush3.bf16.xpose.msra.mxu1 %v3849_v34  ;;  %7018 = vmatprep.mubr.msk.bf16.mxu1 %vm8335_vm0, %v8334_v20  ;;  %v7634_v34 = vld [vmem:[#allocation11 + $0x1b0] ss:$8 sps:$4 sm:$0xff]  }
0x10c5   :  { %7028 = vmatprep.subr.bf16.mxu1 %v8334_v20 }
0x10cb   :  { %7019 = vmatmul.mubr.bf16.vlgmr.msra.gmra.mrb[64].mxu1 %v3847_v1  ;;  %v7642_v1 = vld [vmem:[#allocation11 + $0x1d4] ss:$8 sps:$4 sm:$0xff]  }
0x10cc   :  { %7029 = vmatpush3.bf16.msra.mxu1 %v4006_v2  ;;  %7030 = vmatprep.mubr.msk.bf16.mxu1 %vm8335_vm0, %v8334_v20  ;;  %v7640_v2 = vld [vmem:[#allocation11 + $0x1d0] ss:$8 sps:$4 sm:$0xff]  }
0x114c   :  { %v3944_v51 = vpop.xlane.xlu0 %3943 }
0x114d   :  { %8007 = vrcp.f32 %v3944_v51  ;;  %v7645_v51 = vld [vmem:[#allocation11 + $0x1e4] ss:$8 sps:$4 sm:$0xff]  }
0x1157   :  { %v8008_v8 = vpop.eup %8007 }
0x1158   :  { %v3949_v45 = vmul.f32 %v8008_v8, %v8004_v12  ;;  %v7630_v12 = vld [vmem:[#allocation11 + $0x194] ss:$8 sps:$4 sm:$0xff]   ;;  %v7643_v8 = vld [vmem:[#allocation11 + $0x1e0] ss:$8 sps:$4 sm:$0xff]  }
0x115a   :  { %v3952_v9 = vpack.c.bf16 %v3949_v45, %v3949_v45 }
0x115c   :  { %7025 = vmatmul.mubr.msk.bf16.vlgmr.msra.gmra.mrb[28].mxu0 %vm1138_vm2, %v3952_v9 }
0x115d   :  { %4257 = vmatpush1.bf16.msra.mxu0 %v7601_v36 }
0x115e   :  { %4258 = vmatprep.subr.bf16.mxu0 %v7606_v48  ;;  %v7651_v48 = vld [vmem:[#allocation13 + $0x204] ss:$16 sps:$4 sm:$0xff]  }
0x115f   :  { %4779 = vmatprep.subr.bf16.mxu1 %v7651_v48  ;;  %v7718_v48 = vld [vmem:[#allocation13 + $0x368] ss:$16 sps:$4 sm:$0xff]  }
0x1161   :  { %4259 = vmatpush1.bf16.msra.mxu0 %v7604_v56  ;;  %v7652_v56 = vld [vmem:[#allocation13 + $0x208] ss:$16 sps:$4 sm:$0xff]  }
0x1162   :  { %4260 = vmatprep.subr.bf16.mxu0 %v7609_v43  ;;  %v7657_v43 = vld [vmem:[#allocation13 + $0x224] ss:$16 sps:$4 sm:$0xff]  }
0x1165   :  { %4261 = vmatpush1.bf16.msra.mxu0 %v7607_v40  ;;  %v7660_v40 = vld [vmem:[#allocation13 + $0x22c] ss:$16 sps:$4 sm:$0xff]  }
0x1166   :  { %4262 = vmatprep.subr.bf16.mxu0 %v7612_v28  ;;  %v7663_v28 = vld [vmem:[#allocation13 + $0x244] ss:$16 sps:$4 sm:$0xff]  }
0x1169   :  { %4263 = vmatpush1.bf16.msra.mxu0 %v7610_v54  ;;  %v7666_v54 = vld [vmem:[#allocation13 + $0x24c] ss:$16 sps:$4 sm:$0xff]  }
0x116a   :  { %4264 = vmatprep.subr.bf16.mxu0 %v7615_v3  ;;  %v7661_v3 = vld [vmem:[#allocation13 + $0x240] ss:$16 sps:$4 sm:$0xff]  }
0x116d   :  { %4265 = vmatpush1.bf16.msra.mxu0 %v7613_v63  ;;  %v7664_v63 = vld [vmem:[#allocation13 + $0x248] ss:$16 sps:$4 sm:$0xff]  }
0x116e   :  { %4266 = vmatprep.subr.bf16.mxu0 %v7618_v47  ;;  %v7669_v47 = vld [vmem:[#allocation13 + $0x264] ss:$16 sps:$4 sm:$0xff]  }
0x1171   :  { %4267 = vmatpush1.bf16.msra.mxu0 %v7616_v41  ;;  %v7672_v41 = vld [vmem:[#allocation13 + $0x26c] ss:$16 sps:$4 sm:$0xff]  }
0x1172   :  { %4268 = vmatprep.subr.bf16.mxu0 %v7621_v32  ;;  %v7667_v32 = vld [vmem:[#allocation13 + $0x260] ss:$16 sps:$4 sm:$0xff]  }
0x1175   :  { %4269 = vmatpush1.bf16.msra.mxu0 %v7619_v53  ;;  %v7670_v53 = vld [vmem:[#allocation13 + $0x268] ss:$16 sps:$4 sm:$0xff]  }
0x1176   :  { %4270 = vmatprep.subr.bf16.mxu0 %v7624_v5  ;;  %v7675_v5 = vld [vmem:[#allocation13 + $0x284] ss:$16 sps:$4 sm:$0xff]  }
0x1179   :  { %4271 = vmatpush1.bf16.msra.mxu0 %v7622_v22  ;;  %v7678_v22 = vld [vmem:[#allocation13 + $0x28c] ss:$16 sps:$4 sm:$0xff]  }
0x117a   :  { %4272 = vmatprep.subr.bf16.mxu0 %v7627_v37  ;;  %v7673_v37 = vld [vmem:[#allocation13 + $0x280] ss:$16 sps:$4 sm:$0xff]  }
0x117d   :  { %4273 = vmatpush1.bf16.msra.mxu0 %v7625_v6  ;;  %v7676_v6 = vld [vmem:[#allocation13 + $0x288] ss:$16 sps:$4 sm:$0xff]  }
0x117e   :  { %4274 = vmatprep.subr.bf16.mxu0 %v7630_v12  ;;  %v7681_v12 = vld [vmem:[#allocation13 + $0x2a4] ss:$16 sps:$4 sm:$0xff]  }
0x1181   :  { %4275 = vmatpush1.bf16.msra.mxu0 %v7628_v52  ;;  %v7684_v52 = vld [vmem:[#allocation13 + $0x2ac] ss:$16 sps:$4 sm:$0xff]  }
0x1182   :  { %4276 = vmatprep.subr.bf16.mxu0 %v7633_v57  ;;  %v7679_v57 = vld [vmem:[#allocation13 + $0x2a0] ss:$16 sps:$4 sm:$0xff]  }
0x1185   :  { %4277 = vmatpush1.bf16.msra.mxu0 %v7631_v58  ;;  %v7682_v58 = vld [vmem:[#allocation13 + $0x2a8] ss:$16 sps:$4 sm:$0xff]  }
0x1186   :  { %4278 = vmatprep.subr.bf16.mxu0 %v7636_v60  ;;  %v7687_v60 = vld [vmem:[#allocation13 + $0x2c4] ss:$16 sps:$4 sm:$0xff]  }
0x1189   :  { %4279 = vmatpush1.bf16.msra.mxu0 %v7634_v34  ;;  %v7690_v34 = vld [vmem:[#allocation13 + $0x2cc] ss:$16 sps:$4 sm:$0xff]  }
0x118a   :  { %4280 = vmatprep.subr.bf16.mxu0 %v7639_v59  ;;  %v7685_v59 = vld [vmem:[#allocation13 + $0x2c0] ss:$16 sps:$4 sm:$0xff]  }
0x118d   :  { %v9053_v61 = vpop.f32.mrb[56].mxu1  ;;  %4281 = vmatpush1.bf16.msra.mxu0 %v7637_v62  ;;  %v7688_v62 = vld [vmem:[#allocation13 + $0x2c8] ss:$16 sps:$4 sm:$0xff]  }
0x118e   :  { %v7002_v38 = vpop.f32.mrb[57].mxu1  ;;  %4282 = vmatprep.subr.bf16.mxu0 %v7642_v1  ;;  %v7693_v1 = vld [vmem:[#allocation13 + $0x2e4] ss:$16 sps:$4 sm:$0xff]  }
0x118f   :  { %v3795_v10 = vpop.f32.mrb[58].mxu1 }
0x1190   :  { %v7003_v42 = vpop.f32.mrb[59].mxu1 }
0x1191   :  { %4283 = vmatpush1.bf16.msra.mxu0 %v7640_v2  ;;  %v7646_v42 = vld [vmem:[#allocation11 + $0x1f0] ss:$8 sps:$4 sm:$0xff]   ;;  %v7696_v2 = vld [vmem:[#allocation13 + $0x2ec] ss:$16 sps:$4 sm:$0xff]  }
0x1192   :  { %4284 = vmatprep.subr.bf16.mxu0 %v7645_v51  ;;  %v7691_v51 = vld [vmem:[#allocation13 + $0x2e0] ss:$16 sps:$4 sm:$0xff]  }
0x1195   :  { %4285 = vmatpush1.bf16.msra.mxu0 %v7643_v8  ;;  %v7694_v8 = vld [vmem:[#allocation13 + $0x2e8] ss:$16 sps:$4 sm:$0xff]  }
0x1196   :  { %v9055_v55 = vpop.f32.mrb[60].mxu1 }
0x1197   :  { %v4048_v7 = vpack.c.bf16 %v9055_v55, %v9053_v61  ;;  %v7008_v46 = vpop.f32.mrb[61].mxu1 }
0x1198   :  { %v3841_v50 = vpop.f32.mrb[62].mxu1  ;;  %v7648_v46 = vld [vmem:[#allocation11 + $0x1f4] ss:$8 sps:$4 sm:$0xff]  }
0x1199   :  { %v7009_v20 = vpop.f32.mrb[63].mxu1  ;;  %4286 = vmatprep.subr.bf16.mxu0 %v7648_v46  ;;  %v7708_v46 = vld [vmem:[#allocation13 + $0x32c] ss:$16 sps:$4 sm:$0xff]  }
0x119a   :  { %4287 = vmatpush1.bf16.msra.mxu0 %v7646_v42  ;;  %v7705_v42 = vld [vmem:[#allocation13 + $0x324] ss:$16 sps:$4 sm:$0xff]  }
0x119e   :  { %v3924_v49 = vpop.f32.mrb[64].mxu1 }
0x119f   :  { %v3925_v13 = vadd.f32 %v3924_v49, %v8725_v14  ;;  %v7020_v15 = vpop.f32.mrb[65].mxu1 }
0x11a0   :  { %v3927_v16 = vpop.f32.mrb[66].mxu1 }
0x11a1   :  { %v7021_v17 = vpop.f32.mrb[67].mxu1  ;;  %v3933_v18 = vsel %vm1138_vm2, %v3925_v13, -inf  ;;  %v6637_v16 = vld [vmem:[%s9411_s7 + $0x2] sm:$0x3] }
0x11a2   :  { %3934 = vmax.xlane.f32.xlu1 %v3933_v18  ;;  %v4089_v17 = vrot.slane %v6637_v16, %v8645_v30  ;;  %v4093_v18 = vrot.slane %v6637_v16, %v8642_v29 }
0x122f   :  { %v3935_v19 = vpop.xlane.xlu1 %3934  ;;  %v9061_v23 = vpop.f32.mrb[28].mxu0 }
0x1230   :  { %v3937_v24 = vsub.f32 %v3925_v13, %v3935_v19  ;;  %v7026_v25 = vpop.f32.mrb[29].mxu0 }
0x1231   :  { %v3999_v26 = vpop.f32.mrb[30].mxu0 }
0x1232   :  { %v3940_v27 = vmul.f32 1.442695, %v3937_v24  ;;  %v7027_v33 = vpop.f32.mrb[31].mxu0 }
0x1234   :  { %8009 = vpow2.f32 %v3940_v27 }
0x123e   :  { %v9063_v31 = vpop.eup %8009 }
0x123f   :  { %v3945_v14 = vsel %vm1138_vm2, %v9063_v31, 0.0 }
0x1240   :  { %3946 = vadd.xlane.f32.xlu1 %v3945_v14 }
0x12cd   :  { %v3947_v45 = vpop.xlane.xlu1 %3946 }
0x12ce   :  { %8011 = vrcp.f32 %v3947_v45  ;;  %v7699_v45 = vld [vmem:[#allocation13 + $0x304] ss:$16 sps:$4 sm:$0xff]  }
0x12d8   :  { %v8012_v9 = vpop.eup %8011 }
0x12d9   :  { %v3951_v38 = vmul.f32 %v8012_v9, %v9063_v31  ;;  %v7702_v9 = vld [vmem:[#allocation13 + $0x30c] ss:$16 sps:$4 sm:$0xff]  }
0x12db   :  { %v3953_v10 = vpack.c.bf16 %v3951_v38, %v3951_v38  ;;  %v7697_v38 = vld [vmem:[#allocation13 + $0x300] ss:$16 sps:$4 sm:$0xff]  }
0x12dd   :  { %7031 = vmatmul.mubr.msk.bf16.vlgmr.msra.gmra.mrb[68].mxu1 %vm1138_vm2, %v3953_v10  ;;  %v7700_v10 = vld [vmem:[#allocation13 + $0x308] ss:$16 sps:$4 sm:$0xff]  }
0x12de   :  { %4780 = vmatpush1.bf16.msra.mxu1 %v7649_v4  ;;  %v7715_v4 = vld [vmem:[#allocation13 + $0x360] ss:$16 sps:$4 sm:$0xff]  }
0x12df   :  { %4781 = vmatprep.subr.bf16.mxu1 %v7657_v43  ;;  %v7721_v43 = vld [vmem:[#allocation13 + $0x380] ss:$16 sps:$4 sm:$0xff]  }
0x13b0   :  { %v4042_v50 = vpop.f32.mrb[68].mxu1 }
0x13b1   :  { %v4049_v20 = vpack.c.bf16 %v4042_v50, %v9061_v23  ;;  %v7032_v49 = vpop.f32.mrb[69].mxu1  ;;  %v7703_v50 = vld [vmem:[#allocation13 + $0x320] ss:$16 sps:$4 sm:$0xff]  }
0x13b2   :  { %v4045_v13 = vpop.f32.mrb[70].mxu1 }
0x13b3   :  { %v7033_v15 = vpop.f32.mrb[71].mxu1  ;;  %4288 = vmatprep.mubr.bf16.mxu0 %v4049_v20  ;;  %v7706_v20 = vld [vmem:[#allocation13 + $0x328] ss:$16 sps:$4 sm:$0xff]  }
0x13b4   :  { %4289 = vmatmul.mubr.bf16.vlgmr.msra.gmra.mrb[32].mxu0 %v4048_v7 }
0x1487   :  { %v4290_v19 = vpop.f32.mrb[32].mxu0 }
0x1488   :  { %v4291_v24 = vadd.f32 %v4290_v19, %v4089_v17  ;;  %v4292_v25 = vpop.f32.mrb[33].mxu0 }
0x1489   :  { %v4293_v23 = vadd.f32 %v4292_v25, %v4093_v18  ;;  %v4294_v26 = vpop.f32.mrb[34].mxu0 }
0x148a   :  { %v9079_v27 = vadd.f32 %v4291_v24, %v8975_v0  ;;  %v4295_v33 = vadd.f32 %v4294_v26, %v4089_v17  ;;  %v4296_v31 = vpop.f32.mrb[35].mxu0 }
0x148b   :  { %v9082_v61 = vadd.f32 %v4293_v23, %v8971_v39  ;;  %v4297_v55 = vadd.f32 %v4296_v31, %v4093_v18  ;;  %v7654_v39 = vld [vmem:[#allocation13 + $0x20c] ss:$16 sps:$4 sm:$0xff]  }
0x148c   :  { %v9085_v7 = vadd.f32 %v4295_v33, %v8977_v11  ;;  %4822 = vmatprep.subr.bf16.mxu0 %v7654_v39  ;;  %v7655_v11 = vld [vmem:[#allocation13 + $0x220] ss:$16 sps:$4 sm:$0xff]   ;;  %v7726_v39 = vld [vmem:[#allocation13 + $0x38c] ss:$16 sps:$4 sm:$0xff]  }
0x148d   :  { %v9088_v14 = vadd.f32 %v4297_v55, %v8973_v35  ;;  %v4307_v36 = vadd.f32 %v9082_v61, %v9079_v27  ;;  %4823 = vmatpush1.bf16.msra.mxu0 %v7652_v56  ;;  %v7658_v35 = vld [vmem:[#allocation13 + $0x228] ss:$16 sps:$4 sm:$0xff]   ;;  %4782 = vmatpush1.bf16.msra.mxu1 %v7655_v11  ;;  %v7714_v55 = vld [vmem:[#allocation13 + $0x34c] ss:$16 sps:$4 sm:$0xff]   ;;  %v7723_v56 = vld [vmem:[#allocation13 + $0x384] ss:$16 sps:$4 sm:$0xff]  }
0x148e   :  { %4824 = vmatprep.subr.bf16.mxu0 %v7660_v40  ;;  %4783 = vmatprep.subr.bf16.mxu1 %v7663_v28  ;;  %v7724_v40 = vld [vmem:[#allocation13 + $0x388] ss:$16 sps:$4 sm:$0xff]   ;;  %v7729_v11 = vld [vmem:[#allocation13 + $0x3a4] ss:$16 sps:$4 sm:$0xff]  }
0x148f   :  { %4308 = vadd.xlane.f32.xlu0 %v4307_v36  ;;  %v4310_v0 = vadd.f32 %v9088_v14, %v9085_v7  ;;  %v7717_v36 = vld [vmem:[#allocation13 + $0x364] ss:$16 sps:$4 sm:$0xff]   ;;  %v7730_v28 = vld [vmem:[#allocation13 + $0x3a8] ss:$16 sps:$4 sm:$0xff]  }
0x1491   :  { %4311 = vadd.xlane.f32.xlu1 %v4310_v0  ;;  %4825 = vmatpush1.bf16.msra.mxu0 %v7658_v35  ;;  %v7720_v0 = vld [vmem:[#allocation13 + $0x36c] ss:$16 sps:$4 sm:$0xff]   ;;  %v7727_v35 = vld [vmem:[#allocation13 + $0x3a0] ss:$16 sps:$4 sm:$0xff]  }
0x1492   :  { %4826 = vmatprep.subr.bf16.mxu0 %v7666_v54  ;;  %4784 = vmatpush1.bf16.msra.mxu1 %v7661_v3  ;;  %v7732_v54 = vld [vmem:[#allocation13 + $0x3ac] ss:$16 sps:$4 sm:$0xff]   ;;  %v7735_v3 = vld [vmem:[#allocation13 + $0x3c4] ss:$16 sps:$4 sm:$0xff]  }
0x1493   :  { %4785 = vmatprep.subr.bf16.mxu1 %v7669_v47  ;;  %v7733_v47 = vld [vmem:[#allocation13 + $0x3c0] ss:$16 sps:$4 sm:$0xff]  }
0x1495   :  { %4827 = vmatpush1.bf16.msra.mxu0 %v7664_v63  ;;  %v7738_v63 = vld [vmem:[#allocation13 + $0x3cc] ss:$16 sps:$4 sm:$0xff]  }
0x1496   :  { %4828 = vmatprep.subr.bf16.mxu0 %v7672_v41  ;;  %4786 = vmatpush1.bf16.msra.mxu1 %v7667_v32  ;;  %v7736_v41 = vld [vmem:[#allocation13 + $0x3c8] ss:$16 sps:$4 sm:$0xff]   ;;  %v7741_v32 = vld [vmem:[#allocation13 + $0x3e4] ss:$16 sps:$4 sm:$0xff]  }
0x1497   :  { %4787 = vmatprep.subr.bf16.mxu1 %v7675_v5  ;;  %v7739_v5 = vld [vmem:[#allocation13 + $0x3e0] ss:$16 sps:$4 sm:$0xff]  }
0x1499   :  { %4829 = vmatpush1.bf16.msra.mxu0 %v7670_v53  ;;  %v7744_v53 = vld [vmem:[#allocation13 + $0x3ec] ss:$16 sps:$4 sm:$0xff]  }
0x149a   :  { %4830 = vmatprep.subr.bf16.mxu0 %v7678_v22  ;;  %4788 = vmatpush1.bf16.msra.mxu1 %v7673_v37  ;;  %v7742_v22 = vld [vmem:[#allocation13 + $0x3e8] ss:$16 sps:$4 sm:$0xff]   ;;  %v7747_v37 = vld [vmem:[#allocation14 + $0x204] ss:$8 sps:$4 sm:$0xff]  }
0x149b   :  { %4789 = vmatprep.subr.bf16.mxu1 %v7681_v12 }
0x149d   :  { %4831 = vmatpush1.bf16.msra.mxu0 %v7676_v6 }
0x149e   :  { %4832 = vmatprep.subr.bf16.mxu0 %v7684_v52  ;;  %4790 = vmatpush1.bf16.msra.mxu1 %v7679_v57 }
0x149f   :  { %4791 = vmatprep.subr.bf16.mxu1 %v7687_v60 }
0x14a1   :  { %4833 = vmatpush1.bf16.msra.mxu0 %v7682_v58 }
0x14a2   :  { %4834 = vmatprep.subr.bf16.mxu0 %v7690_v34  ;;  %4792 = vmatpush1.bf16.msra.mxu1 %v7685_v59  ;;  %v6670_v34 = vld [vmem:[%s9412_s8 + $0x2] sm:$0x3] }
0x14a3   :  { %4793 = vmatprep.subr.bf16.mxu1 %v7693_v1  ;;  %v6671_v59 = vld [vmem:[%s9413_s9 + $0x2] sm:$0x3]  ;;  %v4347_v1 = vrot.slane %v6670_v34, %v8642_v29 }
0x14a5   :  { %4835 = vmatpush1.bf16.msra.mxu0 %v7688_v62  ;;  %v4343_v62 = vrot.slane %v6670_v34, %v8645_v30 }
0x14a6   :  { %4836 = vmatprep.subr.bf16.mxu0 %v7696_v2  ;;  %4794 = vmatpush1.bf16.msra.mxu1 %v7691_v51 }
0x14a7   :  { %4795 = vmatprep.subr.bf16.mxu1 %v7699_v45 }
0x14a9   :  { %4837 = vmatpush1.bf16.msra.mxu0 %v7694_v8 }
0x14aa   :  { %4838 = vmatprep.subr.bf16.mxu0 %v7702_v9  ;;  %4796 = vmatpush1.bf16.msra.mxu1 %v7697_v38  ;;  %v4358_v9 = vrot.slane %v6671_v59, %v8645_v30  ;;  %v4362_v38 = vrot.slane %v6671_v59, %v8642_v29 }
0x14ab   :  { %4797 = vmatprep.subr.bf16.mxu1 %v7705_v42 }
0x14ad   :  { %4839 = vmatpush1.bf16.msra.mxu0 %v7700_v10 }
0x14ae   :  { %4840 = vmatprep.subr.bf16.mxu0 %v7708_v46  ;;  %4798 = vmatpush1.bf16.msra.mxu1 %v7703_v50 }
0x14b1   :  { %4841 = vmatpush1.bf16.msra.mxu0 %v7706_v20 }
0x14b2   :  { %4842 = vmatprep.subr.bf16.mxu0 %v7714_v55  ;;  %v7757_v55 = vld [vmem:[#allocation14 + $0x240] ss:$8 sps:$4 sm:$0xff]  }
0x151c   :  { %v4309_v49 = vpop.xlane.xlu0 %4308 }
0x151d   :  { %v4313_v13 = vmul.f32 0.00390625, %v4309_v49 }
0x151e   :  { %v4312_v15 = vpop.xlane.xlu1 %4311 }
0x151f   :  { %v9095_v16 = vsub.f32 %v9079_v27, %v4313_v13  ;;  %v9098_v17 = vsub.f32 %v9082_v61, %v4313_v13  ;;  %v4314_v18 = vmul.f32 0.00390625, %v4312_v15  ;;  %v7711_v61 = vld [vmem:[#allocation13 + $0x344] ss:$16 sps:$4 sm:$0xff]  }
0x1520   :  { %4799 = vmatprep.subr.bf16.mxu1 %v7711_v61  ;;  %v7759_v61 = vld [vmem:[#allocation14 + $0x244] ss:$8 sps:$4 sm:$0xff]  }
0x1521   :  { %v9101_v19 = vsub.f32 %v9085_v7, %v4314_v18  ;;  %v9104_v24 = vsub.f32 %v9088_v14, %v4314_v18  ;;  %v4319_v25 = vmul.f32 %v9095_v16, %v9095_v16  ;;  %v4320_v23 = vmul.f32 %v9098_v17, %v9098_v17  ;;  %v7709_v7 = vld [vmem:[#allocation13 + $0x340] ss:$16 sps:$4 sm:$0xff]   ;;  %v7712_v14 = vld [vmem:[#allocation13 + $0x348] ss:$16 sps:$4 sm:$0xff]  }
0x1522   :  { %4800 = vmatpush1.bf16.msra.mxu1 %v7709_v7  ;;  %4843 = vmatpush1.bf16.msra.mxu0 %v7712_v14  ;;  %v7762_v7 = vld [vmem:[#allocation14 + $0x254] ss:$8 sps:$4 sm:$0xff]   ;;  %v7760_v14 = vld [vmem:[#allocation14 + $0x250] ss:$8 sps:$4 sm:$0xff]  }
0x1523   :  { %v4323_v26 = vadd.f32 %v4320_v23, %v4319_v25  ;;  %v4321_v27 = vmul.f32 %v9101_v19, %v9101_v19  ;;  %v4322_v33 = vmul.f32 %v9104_v24, %v9104_v24  ;;  %4801 = vmatprep.subr.bf16.mxu1 %v7717_v36  ;;  %4844 = vmatprep.subr.bf16.mxu0 %v7720_v0  ;;  %v7745_v25 = vld [vmem:[#allocation14 + $0x200] ss:$8 sps:$4 sm:$0xff]   ;;  %v7748_v23 = vld [vmem:[#allocation14 + $0x210] ss:$8 sps:$4 sm:$0xff]   ;;  %v7765_v36 = vld [vmem:[#allocation14 + $0x264] ss:$8 sps:$4 sm:$0xff]  }
0x1524   :  { %v7763_v0 = vld [vmem:[#allocation14 + $0x260] ss:$8 sps:$4 sm:$0xff]  }
0x1525   :  { %4324 = vadd.xlane.f32.xlu0 %v4323_v26  ;;  %v4326_v31 = vadd.f32 %v4322_v33, %v4321_v27  ;;  %v7753_v26 = vld [vmem:[#allocation14 + $0x224] ss:$8 sps:$4 sm:$0xff]   ;;  %v7751_v27 = vld [vmem:[#allocation14 + $0x220] ss:$8 sps:$4 sm:$0xff]   ;;  %v7756_v33 = vld [vmem:[#allocation14 + $0x234] ss:$8 sps:$4 sm:$0xff]  }
0x1526   :  { %4802 = vmatpush1.bf16.msra.mxu1 %v7715_v4  ;;  %4845 = vmatpush1.bf16.msra.mxu0 %v7718_v48  ;;  %v7768_v4 = vld [vmem:[#allocation14 + $0x274] ss:$8 sps:$4 sm:$0xff]   ;;  %v7766_v48 = vld [vmem:[#allocation14 + $0x270] ss:$8 sps:$4 sm:$0xff]  }
0x1527   :  { %4327 = vadd.xlane.f32.xlu1 %v4326_v31  ;;  %4803 = vmatprep.subr.bf16.mxu1 %v7723_v56  ;;  %v7754_v31 = vld [vmem:[#allocation14 + $0x230] ss:$8 sps:$4 sm:$0xff]   ;;  %v7771_v56 = vld [vmem:[#allocation14 + $0x284] ss:$8 sps:$4 sm:$0xff]  }
0x1528   :  { %4846 = vmatprep.subr.bf16.mxu0 %v7726_v39  ;;  %v7769_v39 = vld [vmem:[#allocation14 + $0x280] ss:$8 sps:$4 sm:$0xff]  }
0x152a   :  { %4804 = vmatpush1.bf16.msra.mxu1 %v7721_v43  ;;  %4847 = vmatpush1.bf16.msra.mxu0 %v7724_v40  ;;  %v7774_v43 = vld [vmem:[#allocation14 + $0x294] ss:$8 sps:$4 sm:$0xff]   ;;  %v7772_v40 = vld [vmem:[#allocation14 + $0x290] ss:$8 sps:$4 sm:$0xff]  }
0x152b   :  { %4805 = vmatprep.subr.bf16.mxu1 %v7729_v11  ;;  %4848 = vmatprep.subr.bf16.mxu0 %v7732_v54  ;;  %v7777_v11 = vld [vmem:[#allocation14 + $0x2a4] ss:$8 sps:$4 sm:$0xff]   ;;  %v7778_v54 = vld [vmem:[#allocation14 + $0x2b0] ss:$8 sps:$4 sm:$0xff]  }
0x152e   :  { %4806 = vmatpush1.bf16.msra.mxu1 %v7727_v35  ;;  %4849 = vmatpush1.bf16.msra.mxu0 %v7730_v28  ;;  %v7775_v35 = vld [vmem:[#allocation14 + $0x2a0] ss:$8 sps:$4 sm:$0xff]   ;;  %v7780_v28 = vld [vmem:[#allocation14 + $0x2b4] ss:$8 sps:$4 sm:$0xff]  }
0x152f   :  { %4807 = vmatprep.subr.bf16.mxu1 %v7735_v3  ;;  %4850 = vmatprep.subr.bf16.mxu0 %v7738_v63  ;;  %v7783_v3 = vld [vmem:[#allocation14 + $0x2c4] ss:$8 sps:$4 sm:$0xff]   ;;  %v7781_v63 = vld [vmem:[#allocation14 + $0x2c0] ss:$8 sps:$4 sm:$0xff]  }
0x1532   :  { %4808 = vmatpush1.bf16.msra.mxu1 %v7733_v47  ;;  %4851 = vmatpush1.bf16.msra.mxu0 %v7736_v41  ;;  %v7786_v47 = vld [vmem:[#allocation14 + $0x2d4] ss:$8 sps:$4 sm:$0xff]   ;;  %v7784_v41 = vld [vmem:[#allocation14 + $0x2d0] ss:$8 sps:$4 sm:$0xff]  }
0x1533   :  { %4809 = vmatprep.subr.bf16.mxu1 %v7741_v32  ;;  %4852 = vmatprep.subr.bf16.mxu0 %v7744_v53  ;;  %v7789_v32 = vld [vmem:[#allocation14 + $0x2e4] ss:$8 sps:$4 sm:$0xff]   ;;  %v7787_v53 = vld [vmem:[#allocation14 + $0x2e0] ss:$8 sps:$4 sm:$0xff]  }
0x1536   :  { %4810 = vmatpush1.bf16.msra.mxu1 %v7739_v5  ;;  %4853 = vmatpush1.bf16.msra.mxu0 %v7742_v22  ;;  %v7792_v5 = vld [vmem:[#allocation14 + $0x2f4] ss:$8 sps:$4 sm:$0xff]   ;;  %v7790_v22 = vld [vmem:[#allocation14 + $0x2f0] ss:$8 sps:$4 sm:$0xff]  }
0x1537   :  { %5339 = vmatprep.subr.bf16.mxu1 %v7747_v37  ;;  %v7795_v37 = vld [vmem:[#allocation14 + $0x304] ss:$8 sps:$4 sm:$0xff]  }
0x15b2   :  { %v4325_v6 = vpop.xlane.xlu0 %4324 }
0x15b3   :  { %v4329_v12 = vmul.f32 0.00390625, %v4325_v6  ;;  %v6672_v6 = vld [vmem:[%s9415_s11 + $0x4] sm:$0xf] }
0x15b4   :  { %v4328_v52 = vpop.xlane.xlu1 %4327 }
0x15b5   :  { %v4331_v57 = vadd.f32 1e-12, %v4329_v12  ;;  %v4330_v58 = vmul.f32 0.00390625, %v4328_v52  ;;  %v4442_v12 = vrot.slane %v6672_v6, %v8645_v30  ;;  %v4450_v52 = vrot.slane %v6672_v6, %v8676_v21 }
0x15b7   :  { %8013 = vrsqrt.f32 %v4331_v57  ;;  %v4332_v60 = vadd.f32 1e-12, %v4330_v58  ;;  %v4446_v57 = vrot.slane %v6672_v6, %v8642_v29  ;;  %v4454_v58 = vrot.slane %v6672_v6, %v8732_v44 }
0x15b9   :  { %8015 = vrsqrt.f32 %v4332_v60 }
0x15c1   :  { %v8014_v2 = vpop.eup %8013 }
0x15c2   :  { %v4335_v51 = vmul.f32 %v8014_v2, %v9095_v16  ;;  %v4336_v8 = vmul.f32 %v8014_v2, %v9098_v17 }
0x15c3   :  { %v8016_v45 = vpop.eup %8015 }
0x15c4   :  { %v4337_v10 = vmul.f32 %v8016_v45, %v9101_v19  ;;  %v4338_v42 = vmul.f32 %v8016_v45, %v9104_v24  ;;  %v4351_v46 = vmul.f32 %v4347_v1, %v4336_v8  ;;  %v4350_v50 = vmul.f32 %v4343_v62, %v4335_v51  ;;  %v7750_v24 = vld [vmem:[#allocation14 + $0x214] ss:$8 sps:$4 sm:$0xff]  }
0x15c6   :  { %v4353_v20 = vmul.f32 %v4347_v1, %v4338_v42  ;;  %v4352_v49 = vmul.f32 %v4343_v62, %v4337_v10  ;;  %v9128_v13 = vadd.f32 %v4362_v38, %v4351_v46  ;;  %v9132_v16 = vadd.f32 %v4358_v9, %v4350_v50 }
0x15c8   :  { %v9130_v15 = vadd.f32 %v4362_v38, %v4353_v20  ;;  %v9134_v17 = vadd.f32 %v4358_v9, %v4352_v49 }
0x15ca   :  { %v4370_v18 = vpack.c.bf16 %v9130_v15, %v9128_v13  ;;  %v4369_v19 = vpack.c.bf16 %v9134_v17, %v9132_v16 }
0x15cc   :  { %4811 = vmatprep.mubr.bf16.mxu1 %v4370_v18  ;;  %4854 = vmatprep.mubr.bf16.mxu0 %v4370_v18 }
0x15cd   :  { %4812 = vmatmul.mubr.bf16.vlgmr.msra.gmra.mrb[72].mxu1 %v4369_v19  ;;  %4855 = vmatmul.mubr.bf16.vlgmr.msra.gmra.mrb[36].mxu0 %v4369_v19 }
0x15ce   :  { %5340 = vmatpush1.bf16.msra.mxu1 %v7745_v25 }
0x15cf   :  { %5341 = vmatprep.subr.bf16.mxu1 %v7750_v24 }
0x15d2   :  { %5342 = vmatpush1.bf16.msra.mxu1 %v7748_v23 }
0x15d3   :  { %5343 = vmatprep.subr.bf16.mxu1 %v7753_v26 }
0x15d6   :  { %5344 = vmatpush1.bf16.msra.mxu1 %v7751_v27 }
0x15d7   :  { %5345 = vmatprep.subr.bf16.mxu1 %v7756_v33 }
0x15da   :  { %5346 = vmatpush1.bf16.msra.mxu1 %v7754_v31 }
0x15db   :  { %5347 = vmatprep.subr.bf16.mxu1 %v7759_v61 }
0x15de   :  { %5348 = vmatpush1.bf16.msra.mxu1 %v7757_v55 }
0x15df   :  { %5349 = vmatprep.subr.bf16.mxu1 %v7762_v7 }
0x15e2   :  { %5350 = vmatpush1.bf16.msra.mxu1 %v7760_v14 }
0x15e3   :  { %5351 = vmatprep.subr.bf16.mxu1 %v7765_v36 }
0x15e6   :  { %5352 = vmatpush1.bf16.msra.mxu1 %v7763_v0 }
0x15e7   :  { %5353 = vmatprep.subr.bf16.mxu1 %v7768_v4 }
0x15ea   :  { %5354 = vmatpush1.bf16.msra.mxu1 %v7766_v48 }
0x15eb   :  { %5355 = vmatprep.subr.bf16.mxu1 %v7771_v56 }
0x15ee   :  { %5356 = vmatpush1.bf16.msra.mxu1 %v7769_v39 }
0x15ef   :  { %5357 = vmatprep.subr.bf16.mxu1 %v7774_v43 }
0x15f2   :  { %5358 = vmatpush1.bf16.msra.mxu1 %v7772_v40 }
0x15f3   :  { %5359 = vmatprep.subr.bf16.mxu1 %v7777_v11 }
0x15f6   :  { %5360 = vmatpush1.bf16.msra.mxu1 %v7775_v35 }
0x15f7   :  { %5361 = vmatprep.subr.bf16.mxu1 %v7780_v28 }
0x15fa   :  { %5362 = vmatpush1.bf16.msra.mxu1 %v7778_v54 }
0x15fb   :  { %5363 = vmatprep.subr.bf16.mxu1 %v7783_v3 }
0x15fe   :  { %5364 = vmatpush1.bf16.msra.mxu1 %v7781_v63 }
0x15ff   :  { %5365 = vmatprep.subr.bf16.mxu1 %v7786_v47 }
0x1602   :  { %5366 = vmatpush1.bf16.msra.mxu1 %v7784_v41 }
0x1603   :  { %5367 = vmatprep.subr.bf16.mxu1 %v7789_v32 }
0x1606   :  { %5368 = vmatpush1.bf16.msra.mxu1 %v7787_v53 }
0x1607   :  { %5369 = vmatprep.subr.bf16.mxu1 %v7792_v5 }
0x160a   :  { %5370 = vmatpush1.bf16.msra.mxu1 %v7790_v22 }
0x160b   :  { %5382 = vmatprep.subr.bf16.mxu1 %v7795_v37 }
0x16a0   :  { %v4813_v60 = vpop.f32.mrb[72].mxu1  ;;  %v4856_v34 = vpop.f32.mrb[36].mxu0 }
0x16a1   :  { %v9147_v59 = vadd.f32 %v4813_v60, %v4442_v12  ;;  %v9149_v62 = vadd.f32 %v4856_v34, %v4450_v52  ;;  %v4815_v1 = vpop.f32.mrb[73].mxu1  ;;  %v4858_v2 = vpop.f32.mrb[37].mxu0 }
0x16a2   :  { %v9151_v51 = vadd.f32 %v4815_v1, %v4446_v57  ;;  %v9153_v8 = vadd.f32 %v4858_v2, %v4454_v58  ;;  %v4817_v45 = vpop.f32.mrb[74].mxu1  ;;  %v4860_v9 = vpop.f32.mrb[38].mxu0 }
0x16a3   :  { %v4873_v21 = vmul.f32 0.044715, %v9147_v59  ;;  %v4875_v38 = vmul.f32 0.044715, %v9149_v62  ;;  %v4818_v10 = vadd.f32 %v4817_v45, %v4442_v12  ;;  %v4861_v44 = vadd.f32 %v4860_v9, %v4450_v52  ;;  %v4819_v42 = vpop.f32.mrb[75].mxu1  ;;  %v4862_v46 = vpop.f32.mrb[39].mxu0 }
0x16a4   :  { %v4874_v50 = vmul.f32 0.044715, %v9151_v51  ;;  %v4876_v20 = vmul.f32 0.044715, %v9153_v8  ;;  %v9159_v49 = vadd.f32 %v4819_v42, %v4446_v57  ;;  %v9161_v18 = vadd.f32 %v4862_v46, %v4454_v58 }
0x16a5   :  { %v4881_v19 = vmul.f32 %v4873_v21, %v9147_v59  ;;  %v4883_v25 = vmul.f32 %v4875_v38, %v9149_v62  ;;  %v4877_v24 = vmul.f32 0.044715, %v4818_v10  ;;  %v4879_v23 = vmul.f32 0.044715, %v4861_v44 }
0x16a6   :  { %v4882_v26 = vmul.f32 %v4874_v50, %v9151_v51  ;;  %v4884_v27 = vmul.f32 %v4876_v20, %v9153_v8  ;;  %v4878_v33 = vmul.f32 0.044715, %v9159_v49  ;;  %v4880_v31 = vmul.f32 0.044715, %v9161_v18 }
0x16a7   :  { %v4889_v61 = vmul.f32 %v4881_v19, %v9147_v59  ;;  %v4891_v55 = vmul.f32 %v4883_v25, %v9149_v62  ;;  %v4885_v7 = vmul.f32 %v4877_v24, %v4818_v10  ;;  %v4887_v14 = vmul.f32 %v4879_v23, %v4861_v44 }
0x16a8   :  { %v4890_v36 = vmul.f32 %v4882_v26, %v9151_v51  ;;  %v4886_v0 = vmul.f32 %v4878_v33, %v9159_v49  ;;  %v4888_v4 = vmul.f32 %v4880_v31, %v9161_v18  ;;  %v4892_v40 = vmul.f32 %v4884_v27, %v9153_v8 }
0x16a9   :  { %v4897_v48 = vadd.f32 %v4889_v61, %v9147_v59  ;;  %v4899_v56 = vadd.f32 %v4891_v55, %v9149_v62  ;;  %v4893_v39 = vmul.f32 %v4885_v7, %v4818_v10  ;;  %v4895_v43 = vmul.f32 %v4887_v14, %v4861_v44 }
0x16aa   :  { %v4894_v11 = vmul.f32 %v4886_v0, %v9159_v49  ;;  %v4896_v35 = vmul.f32 %v4888_v4, %v9161_v18  ;;  %v4898_v47 = vadd.f32 %v4890_v36, %v9151_v51  ;;  %v4900_v37 = vadd.f32 %v4892_v40, %v9153_v8  ;;  %v7804_v40 = vld [vmem:[#allocation14 + $0x334] ss:$8 sps:$4 sm:$0xff]  }
0x16ab   :  { %v4905_v28 = vmul.f32 0.7978846, %v4897_v48  ;;  %v4907_v54 = vmul.f32 0.7978846, %v4899_v56  ;;  %v4901_v3 = vadd.f32 %v4893_v39, %v4818_v10  ;;  %v4903_v63 = vadd.f32 %v4895_v43, %v4861_v44  ;;  %v7798_v56 = vld [vmem:[#allocation14 + $0x314] ss:$8 sps:$4 sm:$0xff]  }
0x16ac   :  { %v4902_v41 = vadd.f32 %v4894_v11, %v9159_v49  ;;  %v4906_v5 = vmul.f32 0.7978846, %v4898_v47  ;;  %v4904_v6 = vadd.f32 %v4896_v35, %v9161_v18  ;;  %v4908_v12 = vmul.f32 0.7978846, %v4900_v37  ;;  %v7799_v43 = vld [vmem:[#allocation14 + $0x320] ss:$8 sps:$4 sm:$0xff]  }
0x16ad   :  { %8017 = vtanh.f32 %v4905_v28  ;;  %v4909_v32 = vmul.f32 0.7978846, %v4901_v3  ;;  %v4911_v53 = vmul.f32 0.7978846, %v4903_v63  ;;  %v4865_v45 = vmul.f32 0.5, %v9147_v59 }
0x16ae   :  { %8019 = vtanh.f32 %v4907_v54  ;;  %v4910_v22 = vmul.f32 0.7978846, %v4902_v41  ;;  %v4912_v52 = vmul.f32 0.7978846, %v4904_v6  ;;  %v4869_v9 = vmul.f32 0.5, %v4818_v10 }
0x16af   :  { %8021 = vtanh.f32 %v4909_v32  ;;  %v4867_v42 = vmul.f32 0.5, %v9149_v62  ;;  %v4871_v46 = vmul.f32 0.5, %v4861_v44  ;;  %v4866_v19 = vmul.f32 0.5, %v9151_v51  ;;  %v7802_v11 = vld [vmem:[#allocation14 + $0x330] ss:$8 sps:$4 sm:$0xff]  }
0x16b0   :  { %8023 = vtanh.f32 %v4911_v53  ;;  %v4870_v27 = vmul.f32 0.5, %v9159_v49  ;;  %v4868_v62 = vmul.f32 0.5, %v9153_v8  ;;  %v4872_v44 = vmul.f32 0.5, %v9161_v18  ;;  %v7793_v49 = vld [vmem:[#allocation14 + $0x300] ss:$8 sps:$4 sm:$0xff]  }
0x16b1   :  { %8025 = vtanh.f32 %v4906_v5  ;;  %v7796_v8 = vld [vmem:[#allocation14 + $0x310] ss:$8 sps:$4 sm:$0xff]   ;;  %v7801_v18 = vld [vmem:[#allocation14 + $0x324] ss:$8 sps:$4 sm:$0xff]   ;;  %v7805_v28 = vld [vmem:[#allocation14 + $0x340] ss:$8 sps:$4 sm:$0xff]  }
0x16b2   :  { %8027 = vtanh.f32 %v4910_v22  ;;  %v7807_v35 = vld [vmem:[#allocation14 + $0x344] ss:$8 sps:$4 sm:$0xff]   ;;  %v7810_v54 = vld [vmem:[#allocation14 + $0x354] ss:$8 sps:$4 sm:$0xff]   ;;  %v7808_v3 = vld [vmem:[#allocation14 + $0x350] ss:$8 sps:$4 sm:$0xff]  }
0x16b3   :  { %8029 = vtanh.f32 %v4908_v12  ;;  %v7813_v63 = vld [vmem:[#allocation14 + $0x364] ss:$8 sps:$4 sm:$0xff]   ;;  %v7811_v47 = vld [vmem:[#allocation14 + $0x360] ss:$8 sps:$4 sm:$0xff]   ;;  %v7816_v41 = vld [vmem:[#allocation14 + $0x374] ss:$8 sps:$4 sm:$0xff]  }
0x16b4   :  { %8031 = vtanh.f32 %v4912_v52  ;;  %v7814_v32 = vld [vmem:[#allocation14 + $0x370] ss:$8 sps:$4 sm:$0xff]   ;;  %v7819_v53 = vld [vmem:[#allocation14 + $0x384] ss:$8 sps:$4 sm:$0xff]   ;;  %v7817_v5 = vld [vmem:[#allocation14 + $0x380] ss:$8 sps:$4 sm:$0xff]  }
0x16b5   :  { %v7822_v22 = vld [vmem:[#allocation14 + $0x394] ss:$8 sps:$4 sm:$0xff]   ;;  %v7820_v37 = vld [vmem:[#allocation14 + $0x390] ss:$8 sps:$4 sm:$0xff]   ;;  %v7825_v6 = vld [vmem:[#allocation14 + $0x3a4] ss:$8 sps:$4 sm:$0xff]  }
0x16b6   :  { %v7823_v12 = vld [vmem:[#allocation14 + $0x3a0] ss:$8 sps:$4 sm:$0xff]   ;;  %v7828_v52 = vld [vmem:[#allocation14 + $0x3b4] ss:$8 sps:$4 sm:$0xff]  }
0x16b7   :  { %v8018_v57 = vpop.eup %8017 }
0x16b8   :  { %v8020_v58 = vpop.eup %8019  ;;  %v4921_v60 = vadd.f32 1.0, %v8018_v57  ;;  %v7826_v57 = vld [vmem:[#allocation14 + $0x3b0] ss:$8 sps:$4 sm:$0xff]  }
0x16b9   :  { %v8022_v34 = vpop.eup %8021  ;;  %v4923_v1 = vadd.f32 1.0, %v8020_v58  ;;  %v7831_v58 = vld [vmem:[#allocation14 + $0x3c4] ss:$8 sps:$4 sm:$0xff]  }
0x16ba   :  { %v8024_v2 = vpop.eup %8023  ;;  %v4925_v21 = vadd.f32 1.0, %v8022_v34  ;;  %v4929_v24 = vmul.f32 %v4921_v60, %v4865_v45  ;;  %v7829_v60 = vld [vmem:[#allocation14 + $0x3c0] ss:$8 sps:$4 sm:$0xff]   ;;  %v7834_v34 = vld [vmem:[#allocation14 + $0x3d4] ss:$8 sps:$4 sm:$0xff]  }
0x16bb   :  { %v8026_v38 = vpop.eup %8025  ;;  %v4927_v50 = vadd.f32 1.0, %v8024_v2  ;;  %v9187_v31 = vmul.f32 %v4923_v1, %v4867_v42  ;;  %v7832_v1 = vld [vmem:[#allocation14 + $0x3d0] ss:$8 sps:$4 sm:$0xff]   ;;  %v7837_v2 = vld [vmem:[#allocation14 + $0x3e4] ss:$8 sps:$4 sm:$0xff]  }
0x16bc   :  { %v8028_v20 = vpop.eup %8027  ;;  %v4922_v25 = vadd.f32 1.0, %v8026_v38  ;;  %v4933_v23 = vmul.f32 %v4925_v21, %v4869_v9  ;;  %v7835_v45 = vld [vmem:[#allocation14 + $0x3e0] ss:$8 sps:$4 sm:$0xff]   ;;  %v7840_v9 = vld [vmem:[#allocation14 + $0x3f4] ss:$8 sps:$4 sm:$0xff]  }
0x16bd   :  { %v8030_v26 = vpop.eup %8029  ;;  %v4926_v33 = vadd.f32 1.0, %v8028_v20  ;;  %v9189_v59 = vmul.f32 %v4927_v50, %v4871_v46  ;;  %v7838_v21 = vld [vmem:[#allocation14 + $0x3f0] ss:$8 sps:$4 sm:$0xff]   ;;  %v6737_v38 = vld [vmem:[%s9417_s13 + $0x2] sm:$0x3] }
0x16be   :  { %v8032_v10 = vpop.eup %8031  ;;  %v4937_v61 = vpack.c.bf16 %v4933_v23, %v4929_v24  ;;  %v4924_v55 = vadd.f32 1.0, %v8030_v26  ;;  %v4930_v7 = vmul.f32 %v4922_v25, %v4866_v19  ;;  %v5012_v42 = vrot.slane %v6737_v38, %v8645_v30 }
0x16bf   :  { %v4934_v51 = vmul.f32 %v4926_v33, %v4870_v27  ;;  %v4928_v14 = vadd.f32 1.0, %v8032_v10  ;;  %v4939_v36 = vpack.c.bf16 %v9189_v59, %v9187_v31  ;;  %v5016_v46 = vrot.slane %v6737_v38, %v8642_v29  ;;  %v9223_v38 = vld [vmem:[#allocation17 + $0x4] ss:$8 sps:$4 sm:$0xff]  }
0x16c0   :  { %v4932_v4 = vmul.f32 %v4924_v55, %v4868_v62  ;;  %v7843_v55 = vld [vmem:[#allocation16 + $0x4] ss:$8 sps:$4 sm:$0xff]  }
0x16c1   :  { %v4938_v0 = vpack.c.bf16 %v4934_v51, %v4930_v7  ;;  %v4936_v48 = vmul.f32 %v4928_v14, %v4872_v44  ;;  %v7841_v44 = vld [vmem:[#allocation16] ss:$8 sps:$4 sm:$0xff]   ;;  %v7846_v7 = vld [vmem:[#allocation16 + $0x14] ss:$8 sps:$4 sm:$0xff]   ;;  %5710 = vmatprep.subr.bf16.mxu0 %v7843_v55  ;;  %v7844_v51 = vld [vmem:[#allocation16 + $0x10] ss:$8 sps:$4 sm:$0xff]  }
0x16c2   :  { %5711 = vmatpush1.bf16.msra.mxu0 %v7841_v44  ;;  %v7847_v14 = vld [vmem:[#allocation16 + $0x20] ss:$8 sps:$4 sm:$0xff]   ;;  %v9271_v44 = vld [vmem:[#allocation17 + $0x84] ss:$8 sps:$4 sm:$0xff]  }
0x16c3   :  { %5371 = vmatprep.mubr.bf16.mxu1 %v4938_v0  ;;  %v4940_v39 = vpack.c.bf16 %v4936_v48, %v4932_v4  ;;  %5712 = vmatprep.subr.bf16.mxu0 %v7846_v7  ;;  %v7858_v0 = vld [vmem:[#allocation16 + $0x54] ss:$8 sps:$4 sm:$0xff]   ;;  %v7861_v4 = vld [vmem:[#allocation16 + $0x64] ss:$8 sps:$4 sm:$0xff]   ;;  %v7859_v48 = vld [vmem:[#allocation16 + $0x60] ss:$8 sps:$4 sm:$0xff]  }
0x16c4   :  { %5372 = vmatmul.mubr.bf16.vlgmr.msra.gmra.mrb[76].mxu1 %v4937_v61  ;;  %v9275_v55 = vld [vmem:[#allocation17 + $0x80] ss:$8 sps:$4 sm:$0xff]   ;;  %v9277_v7 = vld [vmem:[#allocation17 + $0x94] ss:$8 sps:$4 sm:$0xff]  }
0x16c5   :  { %5383 = vmatpush1.bf16.msra.mxu1 %v7793_v49  ;;  %5414 = vmatprep.mubr.bf16.mxu1 %v4940_v39  ;;  %v7856_v49 = vld [vmem:[#allocation16 + $0x50] ss:$8 sps:$4 sm:$0xff]  }
0x16c6   :  { %5384 = vmatprep.subr.bf16.mxu1 %v7798_v56  ;;  %5713 = vmatpush1.bf16.msra.mxu0 %v7844_v51  ;;  %v7864_v56 = vld [vmem:[#allocation16 + $0x74] ss:$8 sps:$4 sm:$0xff]   ;;  %v7862_v39 = vld [vmem:[#allocation16 + $0x70] ss:$8 sps:$4 sm:$0xff]  }
0x16c7   :  { %v9281_v51 = vld [vmem:[#allocation17 + $0x90] ss:$8 sps:$4 sm:$0xff]  }
0x16c9   :  { %5385 = vmatpush1.bf16.msra.mxu1 %v7796_v8  ;;  %v7867_v8 = vld [vmem:[#allocation16 + $0x84] ss:$8 sps:$4 sm:$0xff]  }
0x16ca   :  { %5386 = vmatprep.subr.bf16.mxu1 %v7801_v18  ;;  %v7865_v18 = vld [vmem:[#allocation16 + $0x80] ss:$8 sps:$4 sm:$0xff]  }
0x16cd   :  { %5387 = vmatpush1.bf16.msra.mxu1 %v7799_v43 }
0x16ce   :  { %5388 = vmatprep.subr.bf16.mxu1 %v7804_v40 }
0x16d1   :  { %5389 = vmatpush1.bf16.msra.mxu1 %v7802_v11 }
0x16d2   :  { %5390 = vmatprep.subr.bf16.mxu1 %v7807_v35 }
0x16d5   :  { %5391 = vmatpush1.bf16.msra.mxu1 %v7805_v28 }
0x16d6   :  { %5392 = vmatprep.subr.bf16.mxu1 %v7810_v54 }
0x16d9   :  { %5393 = vmatpush1.bf16.msra.mxu1 %v7808_v3 }
0x16da   :  { %5394 = vmatprep.subr.bf16.mxu1 %v7813_v63 }
0x16dd   :  { %5395 = vmatpush1.bf16.msra.mxu1 %v7811_v47 }
0x16de   :  { %5396 = vmatprep.subr.bf16.mxu1 %v7816_v41 }
0x16e1   :  { %5397 = vmatpush1.bf16.msra.mxu1 %v7814_v32 }
0x16e2   :  { %5398 = vmatprep.subr.bf16.mxu1 %v7819_v53 }
0x16e5   :  { %5399 = vmatpush1.bf16.msra.mxu1 %v7817_v5 }
0x16e6   :  { %5400 = vmatprep.subr.bf16.mxu1 %v7822_v22 }
0x16e9   :  { %5401 = vmatpush1.bf16.msra.mxu1 %v7820_v37  ;;  %v7870_v37 = vld [vmem:[#allocation16 + $0x94] ss:$8 sps:$4 sm:$0xff]  }
0x16ea   :  { %5402 = vmatprep.subr.bf16.mxu1 %v7825_v6  ;;  %v7868_v6 = vld [vmem:[#allocation16 + $0x90] ss:$8 sps:$4 sm:$0xff]  }
0x16ed   :  { %5403 = vmatpush1.bf16.msra.mxu1 %v7823_v12  ;;  %v7873_v12 = vld [vmem:[#allocation16 + $0xa4] ss:$8 sps:$4 sm:$0xff]  }
0x16ee   :  { %5404 = vmatprep.subr.bf16.mxu1 %v7828_v52  ;;  %v7871_v52 = vld [vmem:[#allocation16 + $0xa0] ss:$8 sps:$4 sm:$0xff]  }
0x16f1   :  { %5405 = vmatpush1.bf16.msra.mxu1 %v7826_v57  ;;  %v7876_v57 = vld [vmem:[#allocation16 + $0xb4] ss:$8 sps:$4 sm:$0xff]  }
0x16f2   :  { %5406 = vmatprep.subr.bf16.mxu1 %v7831_v58  ;;  %v7874_v58 = vld [vmem:[#allocation16 + $0xb0] ss:$8 sps:$4 sm:$0xff]  }
0x16f5   :  { %5407 = vmatpush1.bf16.msra.mxu1 %v7829_v60  ;;  %v7877_v60 = vld [vmem:[#allocation16 + $0xc0] ss:$8 sps:$4 sm:$0xff]  }
0x16f6   :  { %5408 = vmatprep.subr.bf16.mxu1 %v7834_v34  ;;  %v7879_v34 = vld [vmem:[#allocation16 + $0xc4] ss:$8 sps:$4 sm:$0xff]  }
0x16f9   :  { %5409 = vmatpush1.bf16.msra.mxu1 %v7832_v1  ;;  %v7882_v1 = vld [vmem:[#allocation16 + $0xd4] ss:$8 sps:$4 sm:$0xff]  }
0x16fa   :  { %5410 = vmatprep.subr.bf16.mxu1 %v7837_v2  ;;  %v7880_v2 = vld [vmem:[#allocation16 + $0xd0] ss:$8 sps:$4 sm:$0xff]  }
0x16fd   :  { %5411 = vmatpush1.bf16.msra.mxu1 %v7835_v45  ;;  %v7885_v45 = vld [vmem:[#allocation16 + $0xe4] ss:$8 sps:$4 sm:$0xff]  }
0x16fe   :  { %5412 = vmatprep.subr.bf16.mxu1 %v7840_v9  ;;  %v7883_v9 = vld [vmem:[#allocation16 + $0xe0] ss:$8 sps:$4 sm:$0xff]  }
0x1701   :  { %5413 = vmatpush1.bf16.msra.mxu1 %v7838_v21  ;;  %v7888_v21 = vld [vmem:[#allocation16 + $0xf4] ss:$8 sps:$4 sm:$0xff]  }
0x1702   :  { %5992 = vmatprep.subr.bf16.mxu1 %v9223_v38 }
0x1704   :  { %5415 = vmatmul.mubr.bf16.vlgmr.msra.gmra.mrb[76].mxu1 %v4939_v36  ;;  %v7853_v36 = vld [vmem:[#allocation16 + $0x40] ss:$8 sps:$4 sm:$0xff]  }
0x17d7   :  { %v5416_v50 = vpop.f32.mrb[76].mxu1 }
0x17d8   :  { %v7038_v20 = vadd.f32 %v5416_v50, %v5012_v42  ;;  %v5418_v19 = vpop.f32.mrb[77].mxu1  ;;  %v9227_v50 = vld [vmem:[#allocation17 + $0x14] ss:$8 sps:$4 sm:$0xff]  }
0x17d9   :  { %v7039_v25 = vadd.f32 %v5418_v19, %v5016_v46  ;;  %v5420_v24 = vpop.f32.mrb[78].mxu1  ;;  %v9234_v19 = vld [vmem:[#allocation17 + $0x24] ss:$8 sps:$4 sm:$0xff]  }
0x17da   :  { %v5425_v23 = vadd.f32 %v7038_v20, %v9132_v16  ;;  %v7040_v26 = vadd.f32 %v5420_v24, %v5012_v42  ;;  %v5422_v27 = vpop.f32.mrb[79].mxu1  ;;  %v7849_v16 = vld [vmem:[#allocation16 + $0x24] ss:$8 sps:$4 sm:$0xff]   ;;  %v9225_v42 = vld [vmem:[#allocation17] ss:$8 sps:$4 sm:$0xff]  }
0x17db   :  { %v5426_v33 = vadd.f32 %v7039_v25, %v9128_v13  ;;  %v7041_v31 = vadd.f32 %v5422_v27, %v5016_v46  ;;  %5714 = vmatprep.subr.bf16.mxu0 %v7849_v16  ;;  %v7852_v13 = vld [vmem:[#allocation16 + $0x34] ss:$8 sps:$4 sm:$0xff]   ;;  %v7886_v46 = vld [vmem:[#allocation16 + $0xf0] ss:$8 sps:$4 sm:$0xff]   ;;  %5993 = vmatpush1.bf16.msra.mxu1 %v9225_v42  ;;  %v9239_v25 = vld [vmem:[#allocation17 + $0x20] ss:$8 sps:$4 sm:$0xff]  }
0x17dc   :  { %v5427_v59 = vadd.f32 %v7040_v26, %v9134_v17  ;;  %5715 = vmatpush1.bf16.msra.mxu0 %v7847_v14  ;;  %v7850_v17 = vld [vmem:[#allocation16 + $0x30] ss:$8 sps:$4 sm:$0xff]   ;;  %5994 = vmatprep.subr.bf16.mxu1 %v9227_v50  ;;  %v9241_v24 = vld [vmem:[#allocation17 + $0x34] ss:$8 sps:$4 sm:$0xff]   ;;  %v9247_v26 = vld [vmem:[#allocation17 + $0x44] ss:$8 sps:$4 sm:$0xff]  }
0x17dd   :  { %v5428_v10 = vadd.f32 %v7041_v31, %v9130_v15  ;;  %v5433_v61 = vadd.f32 %v5426_v33, %v5425_v23  ;;  %5716 = vmatprep.subr.bf16.mxu0 %v7852_v13  ;;  %v7855_v15 = vld [vmem:[#allocation16 + $0x44] ss:$8 sps:$4 sm:$0xff]   ;;  %v9232_v20 = vld [vmem:[#allocation17 + $0x10] ss:$8 sps:$4 sm:$0xff]   ;;  %v9251_v27 = vld [vmem:[#allocation17 + $0x40] ss:$8 sps:$4 sm:$0xff]  }
0x17de   :  { %v9257_v31 = vld [vmem:[#allocation17 + $0x50] ss:$8 sps:$4 sm:$0xff]   ;;  %v9283_v16 = vld [vmem:[#allocation17 + $0xa4] ss:$8 sps:$4 sm:$0xff]   ;;  %v9287_v14 = vld [vmem:[#allocation17 + $0xa0] ss:$8 sps:$4 sm:$0xff]  }
0x17df   :  { %5434 = vadd.xlane.f32.xlu1 %v5433_v61  ;;  %v5436_v62 = vadd.f32 %v5428_v10, %v5427_v59  ;;  %5995 = vmatpush1.bf16.msra.mxu1 %v9232_v20  ;;  %v9265_v61 = vld [vmem:[#allocation17 + $0x74] ss:$8 sps:$4 sm:$0xff]  }
0x17e0   :  { %5717 = vmatpush1.bf16.msra.mxu0 %v7850_v17  ;;  %5996 = vmatprep.subr.bf16.mxu1 %v9234_v19  ;;  %v9289_v13 = vld [vmem:[#allocation17 + $0xb4] ss:$8 sps:$4 sm:$0xff]   ;;  %v9293_v17 = vld [vmem:[#allocation17 + $0xb0] ss:$8 sps:$4 sm:$0xff]  }
0x17e1   :  { %5437 = vadd.xlane.f32.xlu0 %v5436_v62  ;;  %5718 = vmatprep.subr.bf16.mxu0 %v7855_v15  ;;  %v9269_v62 = vld [vmem:[#allocation17 + $0x70] ss:$8 sps:$4 sm:$0xff]   ;;  %v9295_v15 = vld [vmem:[#allocation17 + $0xc4] ss:$8 sps:$4 sm:$0xff]  }
0x17e3   :  { %5997 = vmatpush1.bf16.msra.mxu1 %v9239_v25 }
0x17e4   :  { %5719 = vmatpush1.bf16.msra.mxu0 %v7853_v36  ;;  %5998 = vmatprep.subr.bf16.mxu1 %v9241_v24  ;;  %v9299_v36 = vld [vmem:[#allocation17 + $0xc0] ss:$8 sps:$4 sm:$0xff]  }
0x17e5   :  { %5720 = vmatprep.subr.bf16.mxu0 %v7858_v0  ;;  %v9301_v0 = vld [vmem:[#allocation17 + $0xd4] ss:$8 sps:$4 sm:$0xff]  }
0x17e8   :  { %5721 = vmatpush1.bf16.msra.mxu0 %v7856_v49  ;;  %v9305_v49 = vld [vmem:[#allocation17 + $0xd0] ss:$8 sps:$4 sm:$0xff]  }
0x17e9   :  { %5722 = vmatprep.subr.bf16.mxu0 %v7861_v4  ;;  %v9307_v4 = vld [vmem:[#allocation17 + $0xe4] ss:$8 sps:$4 sm:$0xff]  }
0x17ec   :  { %5723 = vmatpush1.bf16.msra.mxu0 %v7859_v48  ;;  %v9311_v48 = vld [vmem:[#allocation17 + $0xe0] ss:$8 sps:$4 sm:$0xff]  }
0x17ed   :  { %5724 = vmatprep.subr.bf16.mxu0 %v7864_v56 }
0x17f0   :  { %5725 = vmatpush1.bf16.msra.mxu0 %v7862_v39 }
0x17f1   :  { %5726 = vmatprep.subr.bf16.mxu0 %v7867_v8 }
0x17f4   :  { %5727 = vmatpush1.bf16.msra.mxu0 %v7865_v18 }
0x17f5   :  { %5728 = vmatprep.subr.bf16.mxu0 %v7870_v37 }
0x17f8   :  { %5729 = vmatpush1.bf16.msra.mxu0 %v7868_v6 }
0x17f9   :  { %5730 = vmatprep.subr.bf16.mxu0 %v7873_v12 }
0x17fc   :  { %5731 = vmatpush1.bf16.msra.mxu0 %v7871_v52 }
0x17fd   :  { %5732 = vmatprep.subr.bf16.mxu0 %v7876_v57 }
0x1800   :  { %5733 = vmatpush1.bf16.msra.mxu0 %v7874_v58 }
0x1801   :  { %5734 = vmatprep.subr.bf16.mxu0 %v7879_v34 }
0x1804   :  { %5735 = vmatpush1.bf16.msra.mxu0 %v7877_v60 }
0x1805   :  { %5736 = vmatprep.subr.bf16.mxu0 %v7882_v1 }
0x1808   :  { %5737 = vmatpush1.bf16.msra.mxu0 %v7880_v2 }
0x1809   :  { %5738 = vmatprep.subr.bf16.mxu0 %v7885_v45 }
0x180c   :  { %5739 = vmatpush1.bf16.msra.mxu0 %v7883_v9 }
0x180d   :  { %5740 = vmatprep.subr.bf16.mxu0 %v7888_v21 }
0x1810   :  { %5741 = vmatpush1.bf16.msra.mxu0 %v7886_v46 }
0x1811   :  { %5945 = vmatprep.subr.bf16.mxu0 %v9223_v38 }
0x186c   :  { %v5435_v43 = vpop.xlane.xlu1 %5434 }
0x186d   :  { %v5439_v40 = vmul.f32 0.00390625, %v5435_v43 }
0x186e   :  { %v5438_v11 = vpop.xlane.xlu0 %5437 }
0x186f   :  { %v9207_v35 = vsub.f32 %v5425_v23, %v5439_v40  ;;  %v9209_v28 = vsub.f32 %v5426_v33, %v5439_v40  ;;  %v5440_v54 = vmul.f32 0.00390625, %v5438_v11  ;;  %v9245_v23 = vld [vmem:[#allocation17 + $0x30] ss:$8 sps:$4 sm:$0xff]   ;;  %v9253_v33 = vld [vmem:[#allocation17 + $0x54] ss:$8 sps:$4 sm:$0xff]  }
0x1870   :  { %5999 = vmatpush1.bf16.msra.mxu1 %v9245_v23  ;;  %v6802_v11 = vld [vmem:[%s9418_s14 + $0x2] sm:$0x3] }
0x1871   :  { %v9211_v3 = vsub.f32 %v5427_v59, %v5440_v54  ;;  %v9213_v63 = vsub.f32 %v5428_v10, %v5440_v54  ;;  %v5445_v47 = vmul.f32 %v9207_v35, %v9207_v35  ;;  %v5446_v41 = vmul.f32 %v9209_v28, %v9209_v28  ;;  %6000 = vmatprep.subr.bf16.mxu1 %v9247_v26  ;;  %v9259_v59 = vld [vmem:[#allocation17 + $0x64] ss:$8 sps:$4 sm:$0xff]   ;;  %v9263_v10 = vld [vmem:[#allocation17 + $0x60] ss:$8 sps:$4 sm:$0xff]  }
0x1873   :  { %v5449_v32 = vadd.f32 %v5446_v41, %v5445_v47  ;;  %v5447_v53 = vmul.f32 %v9211_v3, %v9211_v3  ;;  %v5448_v5 = vmul.f32 %v9213_v63, %v9213_v63  ;;  %v5469_v47 = vrot.slane %v6802_v11, %v8645_v30 }
0x1874   :  { %6001 = vmatpush1.bf16.msra.mxu1 %v9251_v27 }
0x1875   :  { %5450 = vadd.xlane.f32.xlu1 %v5449_v32  ;;  %v5452_v22 = vadd.f32 %v5448_v5, %v5447_v53  ;;  %6002 = vmatprep.subr.bf16.mxu1 %v9253_v33  ;;  %v6803_v53 = vld [vmem:[%s9419_s15 + $0x2] sm:$0x3]  ;;  %v5473_v5 = vrot.slane %v6802_v11, %v8642_v29 }
0x1876   :  { %v5484_v12 = vrot.slane %v6803_v53, %v8645_v30  ;;  %v5488_v52 = vrot.slane %v6803_v53, %v8642_v29 }
0x1877   :  { %5453 = vadd.xlane.f32.xlu0 %v5452_v22 }
0x1878   :  { %6003 = vmatpush1.bf16.msra.mxu1 %v9257_v31 }
0x1879   :  { %6004 = vmatprep.subr.bf16.mxu1 %v9259_v59 }
0x187c   :  { %6005 = vmatpush1.bf16.msra.mxu1 %v9263_v10 }
0x187d   :  { %6006 = vmatprep.subr.bf16.mxu1 %v9265_v61 }
0x1880   :  { %6007 = vmatpush1.bf16.msra.mxu1 %v9269_v62 }
0x1881   :  { %6008 = vmatprep.subr.bf16.mxu1 %v9271_v44 }
0x1884   :  { %6009 = vmatpush1.bf16.msra.mxu1 %v9275_v55 }
0x1885   :  { %6010 = vmatprep.subr.bf16.mxu1 %v9277_v7 }
0x1888   :  { %6011 = vmatpush1.bf16.msra.mxu1 %v9281_v51 }
0x1889   :  { %6012 = vmatprep.subr.bf16.mxu1 %v9283_v16 }
0x188c   :  { %6013 = vmatpush1.bf16.msra.mxu1 %v9287_v14 }
0x188d   :  { %6014 = vmatprep.subr.bf16.mxu1 %v9289_v13 }
0x1890   :  { %6015 = vmatpush1.bf16.msra.mxu1 %v9293_v17 }
0x1891   :  { %6016 = vmatprep.subr.bf16.mxu1 %v9295_v15 }
0x1894   :  { %6017 = vmatpush1.bf16.msra.mxu1 %v9299_v36 }
0x1895   :  { %6018 = vmatprep.subr.bf16.mxu1 %v9301_v0 }
0x1898   :  { %6019 = vmatpush1.bf16.msra.mxu1 %v9305_v49 }
0x1899   :  { %6020 = vmatprep.subr.bf16.mxu1 %v9307_v4 }
0x189c   :  { %6021 = vmatpush1.bf16.msra.mxu1 %v9311_v48 }
0x1902   :  { %v5451_v56 = vpop.xlane.xlu1 %5450 }
0x1903   :  { %v5455_v39 = vmul.f32 0.00390625, %v5451_v56 }
0x1904   :  { %v5454_v8 = vpop.xlane.xlu0 %5453 }
0x1905   :  { %v5457_v18 = vadd.f32 1e-12, %v5455_v39  ;;  %v5456_v43 = vmul.f32 0.00390625, %v5454_v8  ;;  %v7936_v39 = vld [vmem:[#allocation17 + $0xf4] ss:$8 sps:$4 sm:$0xff]  }
0x1906   :  { %6022 = vmatprep.subr.bf16.mxu1 %v7936_v39  ;;  %v5538_v8 = vld [vmem:[%s9421_s17] sm:$0x3]  ;;  %s8337_s17 = smov [#allocation20]  }
0x1907   :  { %8033 = vrsqrt.f32 %v5457_v18  ;;  %v5458_v40 = vadd.f32 1e-12, %v5456_v43  ;;  %v5543_v18 = vrot.slane %v5538_v8, %v8645_v30  ;;  %v5547_v43 = vrot.slane %v5538_v8, %v8642_v29  ;;  %s6261_s10 = sshll.u32 %s8337_s17, 4  ;;  %s6262_s10 = int_to_ptr.vmem [resolvable:$true] %s6261_s10 }
0x1908   :  { %s8279_s18 = scalar_lea.vmem %s6262_s10, 32  ;;  %p8284_p5 = scmp.lt.s32.totalorder %s6262_s10, %s6262_s10 }
0x1909   :  { %8035 = vrsqrt.f32 %v5458_v40  ;;  %p8280_p4 = scmp.ne.s32.totalorder %s6262_s10, %s8279_s18  ;;  %p8285_p6 = scmp.lt.s32.totalorder %s8279_s18, %s8279_s18 }
0x190b   :  { %p8286_p7 = por %p8285_p6, %p8284_p5 }
0x190d   :  { %p8287_p8 = pnand %p8286_p7, %p8280_p4 }
0x1911   :  { %v8034_v54 = vpop.eup %8033 }
0x1912   :  { %v5461_v41 = vmul.f32 %v8034_v54, %v9207_v35  ;;  %v5462_v32 = vmul.f32 %v8034_v54, %v9209_v28 }
0x1913   :  { %v8036_v22 = vpop.eup %8035 }
0x1914   :  { %v5463_v37 = vmul.f32 %v8036_v22, %v9211_v3  ;;  %v5464_v6 = vmul.f32 %v8036_v22, %v9213_v63  ;;  %v5476_v57 = vmul.f32 %v5469_v47, %v5461_v41  ;;  %v5477_v35 = vmul.f32 %v5473_v5, %v5462_v32  ;;  %v7934_v63 = vld [vmem:[#allocation17 + $0xf0] ss:$8 sps:$4 sm:$0xff]  }
0x1915   :  { %6023 = vmatpush1.bf16.msra.mxu1 %v7934_v63  ;;  %v7949_v22 = vld [vmem:[#allocation19 + $0x70] sm:$0xff]  }
0x1916   :  { %v5478_v58 = vmul.f32 %v5469_v47, %v5463_v37  ;;  %v5479_v60 = vmul.f32 %v5473_v5, %v5464_v6  ;;  %v5492_v1 = vadd.f32 %v5488_v52, %v5477_v35  ;;  %v5491_v45 = vadd.f32 %v5484_v12, %v5476_v57  ;;  %v7950_v37 = vld [vmem:[#allocation19 + $0x30] sm:$0xff]   ;;  %v7951_v6 = vld [vmem:[#allocation19 + $0x78] sm:$0xff]  }
0x1918   :  { %v5494_v28 = vadd.f32 %v5488_v52, %v5479_v60  ;;  %v5493_v34 = vadd.f32 %v5484_v12, %v5478_v58  ;;  %v7952_v12 = vld [vmem:[#allocation19 + $0x38] sm:$0xff]  }
0x191a   :  { %v5498_v2 = vrot.slane %v5494_v28, 7  ;;  %v5497_v9 = vrot.slane %v5493_v34, 7 }
0x191c   :  { %v5503_v21 = vsel %vm5501_vm3, %v5492_v1, %v5498_v2  ;;  %v5502_v46 = vsel %vm5501_vm3, %v5491_v45, %v5497_v9 }
0x191d   :  { %v5505_v3 = vpack.c.bf16 %v5503_v21, %v5503_v21  ;;  %v5504_v56 = vpack.c.bf16 %v5502_v46, %v5502_v46 }
0x191f   :  { %5742 = vmatprep.mubr.bf16.mxu0 %v5505_v3 }
0x1920   :  { %5743 = vmatmul.mubr.bf16.vlgmr.msra.gmra.mrb[40].mxu0 %v5504_v56 }
0x1921   :  { %5946 = vmatpush1.bf16.msra.mxu0 %v9225_v42 }
0x1922   :  { %5947 = vmatprep.subr.bf16.mxu0 %v9227_v50 }
0x1925   :  { %5948 = vmatpush1.bf16.msra.mxu0 %v9232_v20 }
0x1926   :  { %5949 = vmatprep.subr.bf16.mxu0 %v9234_v19 }
0x1929   :  { %5950 = vmatpush1.bf16.msra.mxu0 %v9239_v25 }
0x192a   :  { %5951 = vmatprep.subr.bf16.mxu0 %v9241_v24 }
0x192d   :  { %5952 = vmatpush1.bf16.msra.mxu0 %v9245_v23 }
0x192e   :  { %5953 = vmatprep.subr.bf16.mxu0 %v9247_v26 }
0x1931   :  { %5954 = vmatpush1.bf16.msra.mxu0 %v9251_v27 }
0x1932   :  { %5955 = vmatprep.subr.bf16.mxu0 %v9253_v33 }
0x1935   :  { %5956 = vmatpush1.bf16.msra.mxu0 %v9257_v31 }
0x1936   :  { %5957 = vmatprep.subr.bf16.mxu0 %v9259_v59 }
0x1939   :  { %5958 = vmatpush1.bf16.msra.mxu0 %v9263_v10 }
0x193a   :  { %5959 = vmatprep.subr.bf16.mxu0 %v9265_v61 }
0x193d   :  { %5960 = vmatpush1.bf16.msra.mxu0 %v9269_v62 }
0x193e   :  { %5961 = vmatprep.subr.bf16.mxu0 %v9271_v44 }
0x1941   :  { %5962 = vmatpush1.bf16.msra.mxu0 %v9275_v55 }
0x1942   :  { %5963 = vmatprep.subr.bf16.mxu0 %v9277_v7 }
0x1945   :  { %5964 = vmatpush1.bf16.msra.mxu0 %v9281_v51 }
0x1946   :  { %5965 = vmatprep.subr.bf16.mxu0 %v9283_v16 }
0x1949   :  { %5966 = vmatpush1.bf16.msra.mxu0 %v9287_v14 }
0x194a   :  { %5967 = vmatprep.subr.bf16.mxu0 %v9289_v13 }
0x194d   :  { %5968 = vmatpush1.bf16.msra.mxu0 %v9293_v17 }
0x194e   :  { %5969 = vmatprep.subr.bf16.mxu0 %v9295_v15 }
0x1951   :  { %5970 = vmatpush1.bf16.msra.mxu0 %v9299_v36 }
0x1952   :  { %5971 = vmatprep.subr.bf16.mxu0 %v9301_v0 }
0x1955   :  { %5972 = vmatpush1.bf16.msra.mxu0 %v9305_v49 }
0x1956   :  { %5973 = vmatprep.subr.bf16.mxu0 %v9307_v4 }
0x1959   :  { %5974 = vmatpush1.bf16.msra.mxu0 %v9311_v48 }
0x195a   :  { %5975 = vmatprep.subr.bf16.mxu0 %v7936_v39 }
0x195d   :  { %5976 = vmatpush1.bf16.msra.mxu0 %v7934_v63 }
0x195e   :  { %6039 = vmatprep.subr.bf16.mxu0 %v9223_v38 }
0x19f3   :  { %v5744_v40 = vpop.f32.mrb[40].mxu0 }
0x19f4   :  { %v5745_v11 = vadd.f32 %v5744_v40, %v5543_v18  ;;  %v5746_v54 = vpop.f32.mrb[41].mxu0 }
0x19f5   :  { %v5747_v47 = vadd.f32 %v5746_v54, %v5547_v43  ;;  %v5748_v41 = vpop.f32.mrb[42].mxu0 }
0x19f6   :  { %v5749_v32 = vpop.f32.mrb[43].mxu0  ;;  %v5751_v5 = vpack.c.bf16 %v5745_v11, %v5745_v11 }
0x19f7   :  { %v5752_v53 = vpack.c.bf16 %v5747_v47, %v5747_v47 }
0x19f9   :  { %5977 = vmatprep.mubr.bf16.mxu0 %v5752_v53 }
0x19fa   :  { %5978 = vmatmul.mubr.bf16.vlgmr.msra.gmra.mrb[44].mxu0 %v5751_v5 }
0x19fb   :  { %6040 = vmatpush1.bf16.msra.mxu0 %v9225_v42 }
0x19fc   :  { %6041 = vmatprep.subr.bf16.mxu0 %v9227_v50 }
0x19ff   :  { %6042 = vmatpush1.bf16.msra.mxu0 %v9232_v20 }
0x1a00   :  { %6043 = vmatprep.subr.bf16.mxu0 %v9234_v19 }
0x1a03   :  { %6044 = vmatpush1.bf16.msra.mxu0 %v9239_v25 }
0x1a04   :  { %6045 = vmatprep.subr.bf16.mxu0 %v9241_v24 }
0x1a07   :  { %6046 = vmatpush1.bf16.msra.mxu0 %v9245_v23 }
0x1a08   :  { %6047 = vmatprep.subr.bf16.mxu0 %v9247_v26  ;;  %v7937_v26 = vld [vmem:[#allocation19 + $0x40] sm:$0xff]  }
0x1a09   :  { %6916 = vmatprep.subr.bf16.mxu1 %v7937_v26 }
0x1a0b   :  { %6048 = vmatpush1.bf16.msra.mxu0 %v9251_v27  ;;  %v7938_v27 = vld [vmem:[#allocation19] sm:$0xff]  }
0x1a0c   :  { %6049 = vmatprep.subr.bf16.mxu0 %v9253_v33  ;;  %v7939_v33 = vld [vmem:[#allocation19 + $0x48] sm:$0xff]  }
0x1a0f   :  { %6050 = vmatpush1.bf16.msra.mxu0 %v9257_v31  ;;  %v7940_v31 = vld [vmem:[#allocation19 + $0x8] sm:$0xff]  }
0x1a10   :  { %6051 = vmatprep.subr.bf16.mxu0 %v9259_v59  ;;  %v7941_v59 = vld [vmem:[#allocation19 + $0x50] sm:$0xff]  }
0x1a13   :  { %6052 = vmatpush1.bf16.msra.mxu0 %v9263_v10  ;;  %v7942_v10 = vld [vmem:[#allocation19 + $0x10] sm:$0xff]  }
0x1a14   :  { %6053 = vmatprep.subr.bf16.mxu0 %v9265_v61  ;;  %v7943_v61 = vld [vmem:[#allocation19 + $0x58] sm:$0xff]  }
0x1a17   :  { %6054 = vmatpush1.bf16.msra.mxu0 %v9269_v62  ;;  %v7944_v62 = vld [vmem:[#allocation19 + $0x18] sm:$0xff]  }
0x1a18   :  { %6055 = vmatprep.subr.bf16.mxu0 %v9271_v44  ;;  %v7945_v44 = vld [vmem:[#allocation19 + $0x60] sm:$0xff]  }
0x1a1b   :  { %6056 = vmatpush1.bf16.msra.mxu0 %v9275_v55  ;;  %v7946_v55 = vld [vmem:[#allocation19 + $0x20] sm:$0xff]  }
0x1a1c   :  { %6057 = vmatprep.subr.bf16.mxu0 %v9277_v7  ;;  %v7947_v7 = vld [vmem:[#allocation19 + $0x68] sm:$0xff]  }
0x1a1f   :  { %6058 = vmatpush1.bf16.msra.mxu0 %v9281_v51  ;;  %v7948_v51 = vld [vmem:[#allocation19 + $0x28] sm:$0xff]  }
0x1a20   :  { %6059 = vmatprep.subr.bf16.mxu0 %v9283_v16 }
0x1a23   :  { %6060 = vmatpush1.bf16.msra.mxu0 %v9287_v14 }
0x1a24   :  { %6061 = vmatprep.subr.bf16.mxu0 %v9289_v13 }
0x1a27   :  { %6062 = vmatpush1.bf16.msra.mxu0 %v9293_v17 }
0x1a28   :  { %6063 = vmatprep.subr.bf16.mxu0 %v9295_v15 }
0x1a2b   :  { %6064 = vmatpush1.bf16.msra.mxu0 %v9299_v36 }
0x1a2c   :  { %6065 = vmatprep.subr.bf16.mxu0 %v9301_v0 }
0x1a2f   :  { %6066 = vmatpush1.bf16.msra.mxu0 %v9305_v49 }
0x1a30   :  { %6067 = vmatprep.subr.bf16.mxu0 %v9307_v4 }
0x1a33   :  { %6068 = vmatpush1.bf16.msra.mxu0 %v9311_v48 }
0x1a34   :  { %6069 = vmatprep.subr.bf16.mxu0 %v7936_v39 }
0x1a37   :  { %6070 = vmatpush1.bf16.msra.mxu0 %v7934_v63 }
0x1acd   :  { %v5979_v29 = vpop.f32.mrb[44].mxu0 }
0x1ace   :  { %v5986_v30 = vmul.f32 %v5979_v29, %v5745_v11  ;;  %v5981_v38 = vpop.f32.mrb[45].mxu0 }
0x1acf   :  { %v5987_v42 = vmul.f32 %v5981_v38, %v5747_v47  ;;  %v5983_v50 = vpop.f32.mrb[46].mxu0 }
0x1ad0   :  { %v5988_v20 = vadd.f32 %v5986_v30, %v5979_v29  ;;  %v5984_v19 = vpop.f32.mrb[47].mxu0 }
0x1ad1   :  { %v5989_v25 = vadd.f32 %v5987_v42, %v5981_v38 }
0x1ad2   :  { %v5990_v23 = vpack.c.bf16 %v5988_v20, %v5988_v20 }
0x1ad3   :  { %v5991_v24 = vpack.c.bf16 %v5989_v25, %v5989_v25 }
0x1ad5   :  { %6024 = vmatprep.mubr.bf16.mxu1 %v5991_v24 }
0x1ad6   :  { %6025 = vmatmul.mubr.bf16.vlgmr.msra.gmra.mrb[80].mxu1 %v5990_v23 }
0x1ad7   :  { %6917 = vmatpush3.bf16.msra.mxu1 %v7938_v27 }
0x1ad8   :  { %6918 = vmatprep.subr.bf16.mxu1 %v7939_v33 }
0x1adb   :  { %6919 = vmatpush3.bf16.msra.mxu1 %v7940_v31 }
0x1adc   :  { %6920 = vmatprep.subr.bf16.mxu1 %v7941_v59 }
0x1adf   :  { %6921 = vmatpush3.bf16.msra.mxu1 %v7942_v10 }
0x1ae0   :  { %6922 = vmatprep.subr.bf16.mxu1 %v7943_v61 }
0x1ae3   :  { %6923 = vmatpush3.bf16.msra.mxu1 %v7944_v62 }
0x1ae4   :  { %6924 = vmatprep.subr.bf16.mxu1 %v7945_v44 }
0x1ae7   :  { %6925 = vmatpush3.bf16.msra.mxu1 %v7946_v55 }
0x1ae8   :  { %6926 = vmatprep.subr.bf16.mxu1 %v7947_v7 }
0x1aeb   :  { %6927 = vmatpush3.bf16.msra.mxu1 %v7948_v51 }
0x1aec   :  { %6928 = vmatprep.subr.bf16.mxu1 %v7949_v22 }
0x1aef   :  { %6929 = vmatpush3.bf16.msra.mxu1 %v7950_v37 }
0x1af0   :  { %6930 = vmatprep.subr.bf16.mxu1 %v7951_v6 }
0x1af3   :  { %6931 = vmatpush3.bf16.msra.mxu1 %v7952_v12 }
0x1ba9   :  { %v6026_v16 = vpop.f32.mrb[80].mxu1 }
0x1baa   :  { %v6033_v14 = vmul.f32 %v6026_v16, %v5988_v20  ;;  %v6028_v13 = vpop.f32.mrb[81].mxu1 }
0x1bab   :  { %v6034_v17 = vmul.f32 %v6028_v13, %v5989_v25  ;;  %v6030_v15 = vpop.f32.mrb[82].mxu1 }
0x1bac   :  { %v6035_v36 = vadd.f32 %v6033_v14, %v6026_v16  ;;  %v6031_v0 = vpop.f32.mrb[83].mxu1 }
0x1bad   :  { %v6036_v49 = vadd.f32 %v6034_v17, %v6028_v13 }
0x1bae   :  { %v6037_v48 = vpack.c.bf16 %v6035_v36, %v6035_v36 }
0x1baf   :  { %v6038_v4 = vpack.c.bf16 %v6036_v49, %v6036_v49 }
0x1bb1   :  { %6071 = vmatprep.mubr.bf16.mxu0 %v6038_v4 }
0x1bb2   :  { %6072 = vmatmul.mubr.bf16.vlgmr.msra.gmra.mrb[48].mxu0 %v6037_v48 }
0x1c85   :  { %v6073_v52 = vpop.f32.mrb[48].mxu0 }
0x1c86   :  { %v6080_v57 = vmul.f32 %v6073_v52, %v6035_v36  ;;  %v6075_v58 = vpop.f32.mrb[49].mxu0 }
0x1c87   :  { %v6081_v35 = vmul.f32 %v6075_v58, %v6036_v49  ;;  %v6077_v60 = vpop.f32.mrb[50].mxu0 }
0x1c88   :  { %v6082_v28 = vadd.f32 %v6080_v57, %v6073_v52  ;;  %v6078_v34 = vpop.f32.mrb[51].mxu0 }
0x1c89   :  { %v6083_v1 = vadd.f32 %v6081_v35, %v6075_v58 }
0x1c8a   :  { %v6084_v45 = vpack.c.bf16 %v6082_v28, %v6082_v28 }
0x1c8b   :  { %v6085_v2 = vpack.c.bf16 %v6083_v1, %v6083_v1 }
0x1c8d   :  { %6246 = vmatprep.mubr.bf16.mxu1 %v6085_v2 }
0x1c8e   :  { %6247 = vmatmul.mubr.bf16.vlgmr.msra.gmra.mrb[84].mxu1 %v6084_v45 }
0x1d61   :  { %v6932_v9 = vpop.f32.mrb[84].mxu1 }
0x1d62   :  { %v6933_v21 = vpop.f32.mrb[85].mxu1 }
0x1d63   :  { %v6934_v46 = vadd.f32 %v6933_v21, %v6932_v9  ;;  %v6935_v3 = vpop.f32.mrb[86].mxu1 }
0x1d64   :  { %v6936_v56 = vpop.f32.mrb[87].mxu1 }
0x1d65   :  { %6254 = vst [vmem:[#allocation20] sm:$0x3] %v6934_v46 }
0x1d66   :  { %8290 = shalt.err (!%p8287_p8)
}
0x1d67   :  { %s9446_s24 = sld [smem:[#allocation33_spill]] }
0x1d6d   :  { %s8291_s3 = scalar_lea.hbm %s9446_s24, 32 }
0x1d6e   :  { %p8292_p9 = scmp.ne.s32.totalorder %s9446_s24, %s8291_s3  ;;  %p8295_p10 = scmp.lt.u32.totalorder %s8291_s3, %s9446_s24 }
0x1d70   :  { %p8297_p11 = pnand %p8295_p10, %p8292_p9 }
0x1d72   :  { %8300 = shalt.err (!%p8297_p11)
}
0x1d73   :  { %6264 = dma.vmem_to_hbm [thread:$0]  %s6262_s10, 32, %s9446_s24, [#allocation4]  }
0x1d74   :  { %8313 = dma.done.wait [#allocation4], 32  }
0x1d75   :  { %8314 = vsyncadd [#allocation4], 4294967264 }
0x1d76   :  { %6268 = vsyncpa [#allocation3], 1 }
0x1d77   :  { %6269 = vsyncpa [#allocation6], 1 }
0x1d78   :  { %6270 = vsyncpa [#allocation9], 1 }
0x1d79   :  { %6271 = vsyncpa [#allocation12], 1 }
0x1d7a   :  { %6272 = vsyncpa [#allocation15], 1 }
0x1d7b   :  { %6273 = vsyncpa [#allocation18], 1 }
0x1d7c   :  { %6274 = vsyncpa [#allocation4], 1 }

</bundles_post_ra>
